<compile_context>
chip_gen: v7x
topology: tpu7x:2x2x1
jax: 0.10.0
libtpu: 0.0.40
codegen_flags: <defaults>
</compile_context>

<pallas_src>
import math
import functools

import jax
import jax.numpy as jnp
from jax.experimental import pallas as pl
from jax.experimental.pallas import tpu as pltpu


# ---------------- math helpers (used inside the kernel, all f32) ----------------

def _softplus(x):
    # numerically stable softplus
    return jnp.maximum(x, 0.0) + jnp.log1p(jnp.exp(-jnp.abs(x)))


def _mish(x):
    return x * jnp.tanh(_softplus(x))


# ---------------- fused forward kernel ----------------

def _fused_forward_kernel(p_ref, cw_ref, cb_ref,
                          w1_ref, b1_ref, s1_ref, t1_ref,
                          wa_ref, ba_ref, wb_ref, bb_ref, wc_ref, bc_ref,
                          out_ref, cat_ref,
                          *, B, n_pool, pool_k, NF):
    # ---- Conv1d (all filter sizes fused column-wise) + Mish ----------------------
    # p_ref: (B*Lp, C*max_fs) im2col patches; cw_ref: (C*max_fs, NF) embedded weights.
    y = jnp.dot(p_ref[...], cw_ref[...], preferred_element_type=jnp.float32)   # (B*Lp, NF)
    y = _mish(y + cb_ref[...])
    # ---- F.max_pool1d(kernel_size=pool_k, stride=pool_k) -------------------------
    # tiling-preserving reshape: innermost split factor == pool_k (8 for L=80).
    y = y.reshape(B, n_pool, pool_k, NF).max(axis=2)                           # (B, n_pool, NF)
    # ---- flatten + concat + fc1, via the pre-arranged (n_pool, NF, H1) weight -----
    acc = jnp.zeros((B, w1_ref.shape[-1]), jnp.float32)
    for p in range(n_pool):   # unrolled: n_pool small MXU passes, fc1 weight stays in VMEM
        acc = acc + jnp.dot(y[:, p, :], w1_ref[p].astype(jnp.float32),
                            preferred_element_type=jnp.float32)
    # ---- fc1 bias + BatchNorm1d (eval running stats, fused affine) ----------------
    h = (acc + b1_ref[...]) * s1_ref[...] + t1_ref[...]                        # (B, 512)
    cat_ref[...] = h.astype(cat_ref.dtype)
    # ---- fc head: Linear -> Mish -> Dropout(id) -> Linear -> Mish -> Linear -------
    z = _mish(jnp.dot(h, wa_ref[...], preferred_element_type=jnp.float32) + ba_ref[...])
    z = _mish(jnp.dot(z, wb_ref[...], preferred_element_type=jnp.float32) + bb_ref[...])
    z = jnp.dot(z, wc_ref[...], preferred_element_type=jnp.float32) + bc_ref[...]
    out_ref[...] = z.astype(out_ref.dtype)


# ---------------- forward pass (wrapper: im2col + one pallas_call) ----------------

def textcnn_block1_forward(params, DLM_fea, seq_data, chr_data):
    del seq_data, chr_data                       # unused by the reference forward()
    B, L, C = DLM_fea.shape
    filter_sizes = params["filter_sizes"]
    assert all(fs % 2 == 1 for fs in filter_sizes), \
        "padding='same' fusion assumes odd filter sizes (matches torch only for odd fs)"
    max_fs = max(filter_sizes)
    F_ = params["convs1"][0][0].shape[0]
    NF = F_ * len(filter_sizes)

    pool_k = math.ceil(L // 10)                  # exactly the module's formula (== L // 10)
    n_pool = (L - pool_k) // pool_k + 1          # F.max_pool1d default stride = kernel_size
    Lp = n_pool * pool_k                         # only these conv positions survive pooling

    # im2col patches in a common max_fs-tap window (channel-major, tap-minor flattening,
    # matching torch's weight.reshape(F, C*fs))
    x_cl = jnp.transpose(jnp.asarray(DLM_fea, jnp.float32), (0, 2, 1))      # permute(0,2,1)
    pad = (max_fs - 1) // 2
    xp = jnp.pad(x_cl, ((0, 0), (0, 0), (pad, pad)))
    taps = jnp.stack([xp[:, :, t:t + Lp] for t in range(max_fs)], axis=-1)  # (B, C, Lp, max_fs)
    patches = jnp.transpose(taps, (0, 2, 1, 3)).reshape(B * Lp, C * max_fs)

    # embed each Conv1d weight into the common tap window, fuse branches column-wise
    w_cols, b_cols = [], []
    for fs, (w, b) in zip(filter_sizes, params["convs1"]):
        off = (max_fs - fs) // 2
        w_emb = jnp.zeros((F_, C, max_fs), jnp.float32).at[:, :, off:off + fs].set(
            jnp.asarray(w, jnp.float32))
        w_cols.append(w_emb.reshape(F_, C * max_fs).T)                      # (C*max_fs, F)
        b_cols.append(jnp.asarray(b, jnp.float32))
    cw = jnp.concatenate(w_cols, axis=1)                                    # (C*max_fs, NF)
    cb = jnp.concatenate(b_cols).reshape(1, NF)

    H1 = params["fc1_b"].shape[0]
    Ha = params["fcA_b"].shape[0]
    Hb = params["fcB_b"].shape[0]
    out_dim = params["fcC_b"].shape[0]
    assert params["fc1_w"].shape == (n_pool, NF, H1)

    kern = functools.partial(_fused_forward_kernel,
                             B=B, n_pool=n_pool, pool_k=pool_k, NF=NF)
    z2 = lambda i: (0, 0)
    z3 = lambda i: (0, 0, 0)
    out, cat_i = pl.pallas_call(
        kern,
        out_shape=(jax.ShapeDtypeStruct((B, out_dim), jnp.float32),
                   jax.ShapeDtypeStruct((B, H1), jnp.float32)),
        grid=(1,),
        in_specs=[
            pl.BlockSpec((B * Lp, C * max_fs), z2),    # patches
            pl.BlockSpec((C * max_fs, NF), z2),        # fused conv weights
            pl.BlockSpec((1, NF), z2),                 # fused conv bias
            pl.BlockSpec((n_pool, NF, H1), z3),        # fc1 weight (bf16, pre-arranged)
            pl.BlockSpec((1, H1), z2),                 # fc1 bias
            pl.BlockSpec((1, H1), z2),                 # BN1 scale
            pl.BlockSpec((1, H1), z2),                 # BN1 shift
            pl.BlockSpec((H1, Ha), z2),                # fc[0] weight
            pl.BlockSpec((1, Ha), z2),
            pl.BlockSpec((Ha, Hb), z2),                # fc[3] weight
            pl.BlockSpec((1, Hb), z2),
            pl.BlockSpec((Hb, out_dim), z2),           # fc[5] weight
            pl.BlockSpec((1, out_dim), z2),
        ],
        out_specs=(pl.BlockSpec((B, out_dim), z2),
                   pl.BlockSpec((B, H1), z2)),
        compiler_params=pltpu.CompilerParams(
            dimension_semantics=("arbitrary",),
            vmem_limit_bytes=32 * 1024 * 1024),
    )(patches, cw, cb,
      params["fc1_w"], params["fc1_b"].reshape(1, H1),
      params["bn1_scale"].reshape(1, H1), params["bn1_shift"].reshape(1, H1),
      params["fcA_w"], params["fcA_b"].reshape(1, Ha),
      params["fcB_w"], params["fcB_b"].reshape(1, Hb),
      params["fcC_w"], params["fcC_b"].reshape(1, out_dim))
    return out, cat_i


# ---------------- deterministic parameter init ----------------

def init_params(key, *, DLM_seq_len=80, embedding_dim_DLM=4, n_filters=64,
                filter_sizes=(3, 5, 7), output_dim=2, fc1_in=1920, fc1_out=512):
    keys = iter(jax.random.split(key, 32))
    std = 0.05

    def rnd(shape):
        return std * jax.random.normal(next(keys), shape, dtype=jnp.float32)

    pool_k = math.ceil(DLM_seq_len // 10)
    n_pool = (DLM_seq_len - pool_k) // pool_k + 1
    NF = n_filters * len(filter_sizes)
    assert n_pool * NF == fc1_in, "fc1 input dim (hard-coded 1920) must match conv/pool output"

    # fc1 weight is generated in (in, out) layout (torch fc1.weight.T) and pre-arranged
    # ONCE at init into (n_pool, NF, fc1_out): torch flatten index i = c*n_pool + p with
    # c = branch*n_filters + f, so Wk[p, c, o] = W1[c*n_pool + p, o].  Stored bf16.
    w1 = rnd((fc1_in, fc1_out))
    w1_k = jnp.transpose(w1.reshape(NF, n_pool, fc1_out), (1, 0, 2)).astype(jnp.bfloat16)

    # BatchNorm1d(512) eval stats fused into scale/shift
    eps = 1e-5
    gamma = 1.0 + rnd((fc1_out,))
    beta = rnd((fc1_out,))
    rmean = rnd((fc1_out,))
    rvar = 1.0 + jnp.abs(rnd((fc1_out,)))
    scale = gamma / jnp.sqrt(rvar + eps)
    shift = beta - rmean * scale

    return {
        "filter_sizes": tuple(filter_sizes),
        "convs1": [(rnd((n_filters, embedding_dim_DLM, fs)), rnd((n_filters,)))
                   for fs in filter_sizes],
        "fc1_w": w1_k, "fc1_b": rnd((fc1_out,)),
        "bn1_scale": scale, "bn1_shift": shift,
        "fcA_w": rnd((fc1_out, 32)), "fcA_b": rnd((32,)),
        "fcB_w": rnd((32, 8)), "fcB_b": rnd((8,)),
        "fcC_w": rnd((8, output_dim)), "fcC_b": rnd((output_dim,)),
    }


if __name__ == "__main__":
    key = jax.random.PRNGKey(0)
    kp, k1, k2, k3 = jax.random.split(key, 4)

    # DLM_seq_len L=80 => pool kernel 8, 10 pooled positions,
    # 3 filter sizes * 64 filters * 10 = 1920 = fc1 input dim (hard-coded in the module).
    B, L, C = 2, 80, 4
    params = init_params(kp, DLM_seq_len=L, embedding_dim_DLM=C)

    DLM_fea = jax.random.normal(k1, (B, L, C), dtype=jnp.float32)
    seq_data = jax.random.normal(k2, (B, L, 4), dtype=jnp.float32)   # unused by forward()
    chr_data = jax.random.normal(k3, (B, 919), dtype=jnp.float32)    # unused by forward()

    out, cat_i = textcnn_block1_forward(params, DLM_fea, seq_data, chr_data)
    jax.block_until_ready((out, cat_i))
    assert out.shape == (B, 2) and cat_i.shape == (B, 512)
    assert bool(jnp.all(jnp.isfinite(out))) and bool(jnp.all(jnp.isfinite(cat_i)))
    print("KERNEL_OK")
</pallas_src>

<mosaic_0001>
module attributes {stable_mosaic.version = 11 : i64} {
  func.func @_fused_forward_kernel(%arg0: i32, %arg1: memref<160x28xf32, #tpu.memory_space<vmem>>, %arg2: memref<28x192xf32, #tpu.memory_space<vmem>>, %arg3: memref<1x192xf32, #tpu.memory_space<vmem>>, %arg4: memref<10x192x512xbf16, #tpu.memory_space<vmem>>, %arg5: memref<1x512xf32, #tpu.memory_space<vmem>>, %arg6: memref<1x512xf32, #tpu.memory_space<vmem>>, %arg7: memref<1x512xf32, #tpu.memory_space<vmem>>, %arg8: memref<512x32xf32, #tpu.memory_space<vmem>>, %arg9: memref<1x32xf32, #tpu.memory_space<vmem>>, %arg10: memref<32x8xf32, #tpu.memory_space<vmem>>, %arg11: memref<1x8xf32, #tpu.memory_space<vmem>>, %arg12: memref<8x2xf32, #tpu.memory_space<vmem>>, %arg13: memref<1x2xf32, #tpu.memory_space<vmem>>, %arg14: memref<2x2xf32, #tpu.memory_space<vmem>>, %arg15: memref<2x512xf32, #tpu.memory_space<vmem>>) attributes {dimension_semantics = [#tpu.dimension_semantics<arbitrary>], iteration_bounds = array<i64: 1>, scalar_prefetch = 0 : i64, scratch_operands = 0 : i64, tpu.core_type = #tpu.core_type<tc>, window_params = [{pipeline_mode = #tpu.pipeline_mode<synchronous>, transform_indices = @transform_0, window_bounds = array<i64: 160, 28>}, {pipeline_mode = #tpu.pipeline_mode<synchronous>, transform_indices = @transform_1, window_bounds = array<i64: 28, 192>}, {pipeline_mode = #tpu.pipeline_mode<synchronous>, transform_indices = @transform_2, window_bounds = array<i64: 1, 192>}, {pipeline_mode = #tpu.pipeline_mode<synchronous>, transform_indices = @transform_3, window_bounds = array<i64: 10, 192, 512>}, {pipeline_mode = #tpu.pipeline_mode<synchronous>, transform_indices = @transform_4, window_bounds = array<i64: 1, 512>}, {pipeline_mode = #tpu.pipeline_mode<synchronous>, transform_indices = @transform_5, window_bounds = array<i64: 1, 512>}, {pipeline_mode = #tpu.pipeline_mode<synchronous>, transform_indices = @transform_6, window_bounds = array<i64: 1, 512>}, {pipeline_mode = #tpu.pipeline_mode<synchronous>, transform_indices = @transform_7, window_bounds = array<i64: 512, 32>}, {pipeline_mode = #tpu.pipeline_mode<synchronous>, transform_indices = @transform_8, window_bounds = array<i64: 1, 32>}, {pipeline_mode = #tpu.pipeline_mode<synchronous>, transform_indices = @transform_9, window_bounds = array<i64: 32, 8>}, {pipeline_mode = #tpu.pipeline_mode<synchronous>, transform_indices = @transform_10, window_bounds = array<i64: 1, 8>}, {pipeline_mode = #tpu.pipeline_mode<synchronous>, transform_indices = @transform_11, window_bounds = array<i64: 8, 2>}, {pipeline_mode = #tpu.pipeline_mode<synchronous>, transform_indices = @transform_12, window_bounds = array<i64: 1, 2>}, {pipeline_mode = #tpu.pipeline_mode<synchronous>, transform_indices = @transform_13, window_bounds = array<i64: 2, 2>}, {pipeline_mode = #tpu.pipeline_mode<synchronous>, transform_indices = @transform_14, window_bounds = array<i64: 2, 512>}]} {
    %c0 = arith.constant 0 : index
    %c0_0 = arith.constant 0 : index
    %0 = vector.load %arg1[%c0, %c0_0] : memref<160x28xf32, #tpu.memory_space<vmem>>, vector<160x28xf32>
    %c0_1 = arith.constant 0 : index
    %c0_2 = arith.constant 0 : index
    %1 = vector.load %arg2[%c0_1, %c0_2] : memref<28x192xf32, #tpu.memory_space<vmem>>, vector<28x192xf32>
    %cst = arith.constant dense<0.000000e+00> : vector<160x192xf32>
    %2 = tpu.matmul %0, %1, %cst {dimension_numbers = #tpu.dot_dimension_numbers<[1], [0], [0], [1], [0, 0, 1, 1], [], []>} : vector<160x28xf32>, vector<28x192xf32>, vector<160x192xf32> -> vector<160x192xf32>
    %c0_3 = arith.constant 0 : index
    %c0_4 = arith.constant 0 : index
    %3 = vector.load %arg3[%c0_3, %c0_4] : memref<1x192xf32, #tpu.memory_space<vmem>>, vector<1x192xf32>
    %4 = vector.broadcast %3 : vector<1x192xf32> to vector<160x192xf32>
    %5 = arith.addf %2, %4 : vector<160x192xf32>
    %cst_5 = arith.constant 0.000000e+00 : f32
    %6 = vector.broadcast %cst_5 : f32 to vector<160x192xf32>
    %7 = arith.maximumf %5, %6 : vector<160x192xf32>
    %8 = math.absf %5 : vector<160x192xf32>
    %cst_6 = arith.constant 0.000000e+00 : f32
    %9 = vector.broadcast %cst_6 : f32 to vector<160x192xf32>
    %10 = arith.subf %9, %8 : vector<160x192xf32>
    %11 = math.exp %10 : vector<160x192xf32>
    %12 = math.log1p %11 : vector<160x192xf32>
    %13 = arith.addf %7, %12 : vector<160x192xf32>
    %14 = math.tanh %13 : vector<160x192xf32>
    %15 = arith.mulf %5, %14 : vector<160x192xf32>
    %16 = vector.shape_cast %15 : vector<160x192xf32> to vector<2x10x8x192xf32>
    %cst_7 = arith.constant dense<0xFF800000> : vector<2x10x192xf32>
    %17 = vector.multi_reduction <maximumf>, %16, %cst_7 [2] : vector<2x10x8x192xf32> to vector<2x10x192xf32>
    %cst_8 = arith.constant 0.000000e+00 : f32
    %18 = vector.broadcast %cst_8 : f32 to vector<2x512xf32>
    %19 = vector.extract_strided_slice %17 {offsets = [0, 0, 0], sizes = [2, 1, 192], strides = [1, 1, 1]} : vector<2x10x192xf32> to vector<2x1x192xf32>
    %20 = vector.shape_cast %19 : vector<2x1x192xf32> to vector<2x192xf32>
    %c0_9 = arith.constant 0 : index
    %c0_10 = arith.constant 0 : index
    %c0_11 = arith.constant 0 : index
    %21 = vector.load %arg4[%c0_9, %c0_10, %c0_11] : memref<10x192x512xbf16, #tpu.memory_space<vmem>>, vector<1x192x512xbf16>
    %22 = vector.shape_cast %21 : vector<1x192x512xbf16> to vector<192x512xbf16>
    %23 = arith.extf %22 : vector<192x512xbf16> to vector<192x512xf32>
    %cst_12 = arith.constant dense<0.000000e+00> : vector<2x512xf32>
    %24 = tpu.matmul %20, %23, %cst_12 {dimension_numbers = #tpu.dot_dimension_numbers<[1], [0], [0], [1], [0, 0, 1, 1], [], []>} : vector<2x192xf32>, vector<192x512xf32>, vector<2x512xf32> -> vector<2x512xf32>
    %25 = arith.addf %18, %24 : vector<2x512xf32>
    %26 = vector.extract_strided_slice %17 {offsets = [0, 1, 0], sizes = [2, 1, 192], strides = [1, 1, 1]} : vector<2x10x192xf32> to vector<2x1x192xf32>
    %27 = vector.shape_cast %26 : vector<2x1x192xf32> to vector<2x192xf32>
    %c1 = arith.constant 1 : index
    %c0_13 = arith.constant 0 : index
    %c0_14 = arith.constant 0 : index
    %28 = vector.load %arg4[%c1, %c0_13, %c0_14] : memref<10x192x512xbf16, #tpu.memory_space<vmem>>, vector<1x192x512xbf16>
    %29 = vector.shape_cast %28 : vector<1x192x512xbf16> to vector<192x512xbf16>
    %30 = arith.extf %29 : vector<192x512xbf16> to vector<192x512xf32>
    %cst_15 = arith.constant dense<0.000000e+00> : vector<2x512xf32>
    %31 = tpu.matmul %27, %30, %cst_15 {dimension_numbers = #tpu.dot_dimension_numbers<[1], [0], [0], [1], [0, 0, 1, 1], [], []>} : vector<2x192xf32>, vector<192x512xf32>, vector<2x512xf32> -> vector<2x512xf32>
    %32 = arith.addf %25, %31 : vector<2x512xf32>
    %33 = vector.extract_strided_slice %17 {offsets = [0, 2, 0], sizes = [2, 1, 192], strides = [1, 1, 1]} : vector<2x10x192xf32> to vector<2x1x192xf32>
    %34 = vector.shape_cast %33 : vector<2x1x192xf32> to vector<2x192xf32>
    %c2 = arith.constant 2 : index
    %c0_16 = arith.constant 0 : index
    %c0_17 = arith.constant 0 : index
    %35 = vector.load %arg4[%c2, %c0_16, %c0_17] : memref<10x192x512xbf16, #tpu.memory_space<vmem>>, vector<1x192x512xbf16>
    %36 = vector.shape_cast %35 : vector<1x192x512xbf16> to vector<192x512xbf16>
    %37 = arith.extf %36 : vector<192x512xbf16> to vector<192x512xf32>
    %cst_18 = arith.constant dense<0.000000e+00> : vector<2x512xf32>
    %38 = tpu.matmul %34, %37, %cst_18 {dimension_numbers = #tpu.dot_dimension_numbers<[1], [0], [0], [1], [0, 0, 1, 1], [], []>} : vector<2x192xf32>, vector<192x512xf32>, vector<2x512xf32> -> vector<2x512xf32>
    %39 = arith.addf %32, %38 : vector<2x512xf32>
    %40 = vector.extract_strided_slice %17 {offsets = [0, 3, 0], sizes = [2, 1, 192], strides = [1, 1, 1]} : vector<2x10x192xf32> to vector<2x1x192xf32>
    %41 = vector.shape_cast %40 : vector<2x1x192xf32> to vector<2x192xf32>
    %c3 = arith.constant 3 : index
    %c0_19 = arith.constant 0 : index
    %c0_20 = arith.constant 0 : index
    %42 = vector.load %arg4[%c3, %c0_19, %c0_20] : memref<10x192x512xbf16, #tpu.memory_space<vmem>>, vector<1x192x512xbf16>
    %43 = vector.shape_cast %42 : vector<1x192x512xbf16> to vector<192x512xbf16>
    %44 = arith.extf %43 : vector<192x512xbf16> to vector<192x512xf32>
    %cst_21 = arith.constant dense<0.000000e+00> : vector<2x512xf32>
    %45 = tpu.matmul %41, %44, %cst_21 {dimension_numbers = #tpu.dot_dimension_numbers<[1], [0], [0], [1], [0, 0, 1, 1], [], []>} : vector<2x192xf32>, vector<192x512xf32>, vector<2x512xf32> -> vector<2x512xf32>
    %46 = arith.addf %39, %45 : vector<2x512xf32>
    %47 = vector.extract_strided_slice %17 {offsets = [0, 4, 0], sizes = [2, 1, 192], strides = [1, 1, 1]} : vector<2x10x192xf32> to vector<2x1x192xf32>
    %48 = vector.shape_cast %47 : vector<2x1x192xf32> to vector<2x192xf32>
    %c4 = arith.constant 4 : index
    %c0_22 = arith.constant 0 : index
    %c0_23 = arith.constant 0 : index
    %49 = vector.load %arg4[%c4, %c0_22, %c0_23] : memref<10x192x512xbf16, #tpu.memory_space<vmem>>, vector<1x192x512xbf16>
    %50 = vector.shape_cast %49 : vector<1x192x512xbf16> to vector<192x512xbf16>
    %51 = arith.extf %50 : vector<192x512xbf16> to vector<192x512xf32>
    %cst_24 = arith.constant dense<0.000000e+00> : vector<2x512xf32>
    %52 = tpu.matmul %48, %51, %cst_24 {dimension_numbers = #tpu.dot_dimension_numbers<[1], [0], [0], [1], [0, 0, 1, 1], [], []>} : vector<2x192xf32>, vector<192x512xf32>, vector<2x512xf32> -> vector<2x512xf32>
    %53 = arith.addf %46, %52 : vector<2x512xf32>
    %54 = vector.extract_strided_slice %17 {offsets = [0, 5, 0], sizes = [2, 1, 192], strides = [1, 1, 1]} : vector<2x10x192xf32> to vector<2x1x192xf32>
    %55 = vector.shape_cast %54 : vector<2x1x192xf32> to vector<2x192xf32>
    %c5 = arith.constant 5 : index
    %c0_25 = arith.constant 0 : index
    %c0_26 = arith.constant 0 : index
    %56 = vector.load %arg4[%c5, %c0_25, %c0_26] : memref<10x192x512xbf16, #tpu.memory_space<vmem>>, vector<1x192x512xbf16>
    %57 = vector.shape_cast %56 : vector<1x192x512xbf16> to vector<192x512xbf16>
    %58 = arith.extf %57 : vector<192x512xbf16> to vector<192x512xf32>
    %cst_27 = arith.constant dense<0.000000e+00> : vector<2x512xf32>
    %59 = tpu.matmul %55, %58, %cst_27 {dimension_numbers = #tpu.dot_dimension_numbers<[1], [0], [0], [1], [0, 0, 1, 1], [], []>} : vector<2x192xf32>, vector<192x512xf32>, vector<2x512xf32> -> vector<2x512xf32>
    %60 = arith.addf %53, %59 : vector<2x512xf32>
    %61 = vector.extract_strided_slice %17 {offsets = [0, 6, 0], sizes = [2, 1, 192], strides = [1, 1, 1]} : vector<2x10x192xf32> to vector<2x1x192xf32>
    %62 = vector.shape_cast %61 : vector<2x1x192xf32> to vector<2x192xf32>
    %c6 = arith.constant 6 : index
    %c0_28 = arith.constant 0 : index
    %c0_29 = arith.constant 0 : index
    %63 = vector.load %arg4[%c6, %c0_28, %c0_29] : memref<10x192x512xbf16, #tpu.memory_space<vmem>>, vector<1x192x512xbf16>
    %64 = vector.shape_cast %63 : vector<1x192x512xbf16> to vector<192x512xbf16>
    %65 = arith.extf %64 : vector<192x512xbf16> to vector<192x512xf32>
    %cst_30 = arith.constant dense<0.000000e+00> : vector<2x512xf32>
    %66 = tpu.matmul %62, %65, %cst_30 {dimension_numbers = #tpu.dot_dimension_numbers<[1], [0], [0], [1], [0, 0, 1, 1], [], []>} : vector<2x192xf32>, vector<192x512xf32>, vector<2x512xf32> -> vector<2x512xf32>
    %67 = arith.addf %60, %66 : vector<2x512xf32>
    %68 = vector.extract_strided_slice %17 {offsets = [0, 7, 0], sizes = [2, 1, 192], strides = [1, 1, 1]} : vector<2x10x192xf32> to vector<2x1x192xf32>
    %69 = vector.shape_cast %68 : vector<2x1x192xf32> to vector<2x192xf32>
    %c7 = arith.constant 7 : index
    %c0_31 = arith.constant 0 : index
    %c0_32 = arith.constant 0 : index
    %70 = vector.load %arg4[%c7, %c0_31, %c0_32] : memref<10x192x512xbf16, #tpu.memory_space<vmem>>, vector<1x192x512xbf16>
    %71 = vector.shape_cast %70 : vector<1x192x512xbf16> to vector<192x512xbf16>
    %72 = arith.extf %71 : vector<192x512xbf16> to vector<192x512xf32>
    %cst_33 = arith.constant dense<0.000000e+00> : vector<2x512xf32>
    %73 = tpu.matmul %69, %72, %cst_33 {dimension_numbers = #tpu.dot_dimension_numbers<[1], [0], [0], [1], [0, 0, 1, 1], [], []>} : vector<2x192xf32>, vector<192x512xf32>, vector<2x512xf32> -> vector<2x512xf32>
    %74 = arith.addf %67, %73 : vector<2x512xf32>
    %75 = vector.extract_strided_slice %17 {offsets = [0, 8, 0], sizes = [2, 1, 192], strides = [1, 1, 1]} : vector<2x10x192xf32> to vector<2x1x192xf32>
    %76 = vector.shape_cast %75 : vector<2x1x192xf32> to vector<2x192xf32>
    %c8 = arith.constant 8 : index
    %c0_34 = arith.constant 0 : index
    %c0_35 = arith.constant 0 : index
    %77 = vector.load %arg4[%c8, %c0_34, %c0_35] : memref<10x192x512xbf16, #tpu.memory_space<vmem>>, vector<1x192x512xbf16>
    %78 = vector.shape_cast %77 : vector<1x192x512xbf16> to vector<192x512xbf16>
    %79 = arith.extf %78 : vector<192x512xbf16> to vector<192x512xf32>
    %cst_36 = arith.constant dense<0.000000e+00> : vector<2x512xf32>
    %80 = tpu.matmul %76, %79, %cst_36 {dimension_numbers = #tpu.dot_dimension_numbers<[1], [0], [0], [1], [0, 0, 1, 1], [], []>} : vector<2x192xf32>, vector<192x512xf32>, vector<2x512xf32> -> vector<2x512xf32>
    %81 = arith.addf %74, %80 : vector<2x512xf32>
    %82 = vector.extract_strided_slice %17 {offsets = [0, 9, 0], sizes = [2, 1, 192], strides = [1, 1, 1]} : vector<2x10x192xf32> to vector<2x1x192xf32>
    %83 = vector.shape_cast %82 : vector<2x1x192xf32> to vector<2x192xf32>
    %c9 = arith.constant 9 : index
    %c0_37 = arith.constant 0 : index
    %c0_38 = arith.constant 0 : index
    %84 = vector.load %arg4[%c9, %c0_37, %c0_38] : memref<10x192x512xbf16, #tpu.memory_space<vmem>>, vector<1x192x512xbf16>
    %85 = vector.shape_cast %84 : vector<1x192x512xbf16> to vector<192x512xbf16>
    %86 = arith.extf %85 : vector<192x512xbf16> to vector<192x512xf32>
    %cst_39 = arith.constant dense<0.000000e+00> : vector<2x512xf32>
    %87 = tpu.matmul %83, %86, %cst_39 {dimension_numbers = #tpu.dot_dimension_numbers<[1], [0], [0], [1], [0, 0, 1, 1], [], []>} : vector<2x192xf32>, vector<192x512xf32>, vector<2x512xf32> -> vector<2x512xf32>
    %88 = arith.addf %81, %87 : vector<2x512xf32>
    %c0_40 = arith.constant 0 : index
    %c0_41 = arith.constant 0 : index
    %89 = vector.load %arg5[%c0_40, %c0_41] : memref<1x512xf32, #tpu.memory_space<vmem>>, vector<1x512xf32>
    %90 = vector.broadcast %89 : vector<1x512xf32> to vector<2x512xf32>
    %91 = arith.addf %88, %90 : vector<2x512xf32>
    %c0_42 = arith.constant 0 : index
    %c0_43 = arith.constant 0 : index
    %92 = vector.load %arg6[%c0_42, %c0_43] : memref<1x512xf32, #tpu.memory_space<vmem>>, vector<1x512xf32>
    %93 = vector.broadcast %92 : vector<1x512xf32> to vector<2x512xf32>
    %94 = arith.mulf %91, %93 : vector<2x512xf32>
    %c0_44 = arith.constant 0 : index
    %c0_45 = arith.constant 0 : index
    %95 = vector.load %arg7[%c0_44, %c0_45] : memref<1x512xf32, #tpu.memory_space<vmem>>, vector<1x512xf32>
    %96 = vector.broadcast %95 : vector<1x512xf32> to vector<2x512xf32>
    %97 = arith.addf %94, %96 : vector<2x512xf32>
    %c0_46 = arith.constant 0 : index
    %c0_47 = arith.constant 0 : index
    %98 = vector.load %arg15[%c0_46, %c0_47] : memref<2x512xf32, #tpu.memory_space<vmem>>, vector<2x512xf32>
    tpu.vector_store %arg15[%c0_46, %c0_47], %97 {strides = array<i32>} : memref<2x512xf32, #tpu.memory_space<vmem>>, vector<2x512xf32>,
    %c0_48 = arith.constant 0 : index
    %c0_49 = arith.constant 0 : index
    %99 = vector.load %arg8[%c0_48, %c0_49] : memref<512x32xf32, #tpu.memory_space<vmem>>, vector<512x32xf32>
    %cst_50 = arith.constant dense<0.000000e+00> : vector<2x32xf32>
    %100 = tpu.matmul %97, %99, %cst_50 {dimension_numbers = #tpu.dot_dimension_numbers<[1], [0], [0], [1], [0, 0, 1, 1], [], []>} : vector<2x512xf32>, vector<512x32xf32>, vector<2x32xf32> -> vector<2x32xf32>
    %c0_51 = arith.constant 0 : index
    %c0_52 = arith.constant 0 : index
    %101 = vector.load %arg9[%c0_51, %c0_52] : memref<1x32xf32, #tpu.memory_space<vmem>>, vector<1x32xf32>
    %102 = vector.broadcast %101 : vector<1x32xf32> to vector<2x32xf32>
    %103 = arith.addf %100, %102 : vector<2x32xf32>
    %cst_53 = arith.constant 0.000000e+00 : f32
    %104 = vector.broadcast %cst_53 : f32 to vector<2x32xf32>
    %105 = arith.maximumf %103, %104 : vector<2x32xf32>
    %106 = math.absf %103 : vector<2x32xf32>
    %cst_54 = arith.constant 0.000000e+00 : f32
    %107 = vector.broadcast %cst_54 : f32 to vector<2x32xf32>
    %108 = arith.subf %107, %106 : vector<2x32xf32>
    %109 = math.exp %108 : vector<2x32xf32>
    %110 = math.log1p %109 : vector<2x32xf32>
    %111 = arith.addf %105, %110 : vector<2x32xf32>
    %112 = math.tanh %111 : vector<2x32xf32>
    %113 = arith.mulf %103, %112 : vector<2x32xf32>
    %c0_55 = arith.constant 0 : index
    %c0_56 = arith.constant 0 : index
    %114 = vector.load %arg10[%c0_55, %c0_56] : memref<32x8xf32, #tpu.memory_space<vmem>>, vector<32x8xf32>
    %cst_57 = arith.constant dense<0.000000e+00> : vector<2x8xf32>
    %115 = tpu.matmul %113, %114, %cst_57 {dimension_numbers = #tpu.dot_dimension_numbers<[1], [0], [0], [1], [0, 0, 1, 1], [], []>} : vector<2x32xf32>, vector<32x8xf32>, vector<2x8xf32> -> vector<2x8xf32>
    %c0_58 = arith.constant 0 : index
    %c0_59 = arith.constant 0 : index
    %116 = vector.load %arg11[%c0_58, %c0_59] : memref<1x8xf32, #tpu.memory_space<vmem>>, vector<1x8xf32>
    %117 = vector.broadcast %116 : vector<1x8xf32> to vector<2x8xf32>
    %118 = arith.addf %115, %117 : vector<2x8xf32>
    %cst_60 = arith.constant 0.000000e+00 : f32
    %119 = vector.broadcast %cst_60 : f32 to vector<2x8xf32>
    %120 = arith.maximumf %118, %119 : vector<2x8xf32>
    %121 = math.absf %118 : vector<2x8xf32>
    %cst_61 = arith.constant 0.000000e+00 : f32
    %122 = vector.broadcast %cst_61 : f32 to vector<2x8xf32>
    %123 = arith.subf %122, %121 : vector<2x8xf32>
    %124 = math.exp %123 : vector<2x8xf32>
    %125 = math.log1p %124 : vector<2x8xf32>
    %126 = arith.addf %120, %125 : vector<2x8xf32>
    %127 = math.tanh %126 : vector<2x8xf32>
    %128 = arith.mulf %118, %127 : vector<2x8xf32>
    %c0_62 = arith.constant 0 : index
    %c0_63 = arith.constant 0 : index
    %129 = vector.load %arg12[%c0_62, %c0_63] : memref<8x2xf32, #tpu.memory_space<vmem>>, vector<8x2xf32>
    %cst_64 = arith.constant dense<0.000000e+00> : vector<2x2xf32>
    %130 = tpu.matmul %128, %129, %cst_64 {dimension_numbers = #tpu.dot_dimension_numbers<[1], [0], [0], [1], [0, 0, 1, 1], [], []>} : vector<2x8xf32>, vector<8x2xf32>, vector<2x2xf32> -> vector<2x2xf32>
    %c0_65 = arith.constant 0 : index
    %c0_66 = arith.constant 0 : index
    %131 = vector.load %arg13[%c0_65, %c0_66] : memref<1x2xf32, #tpu.memory_space<vmem>>, vector<1x2xf32>
    %132 = vector.broadcast %131 : vector<1x2xf32> to vector<2x2xf32>
    %133 = arith.addf %130, %132 : vector<2x2xf32>
    %c0_67 = arith.constant 0 : index
    %c0_68 = arith.constant 0 : index
    %134 = vector.load %arg14[%c0_67, %c0_68] : memref<2x2xf32, #tpu.memory_space<vmem>>, vector<2x2xf32>
    tpu.vector_store %arg14[%c0_67, %c0_68], %133 {strides = array<i32>} : memref<2x2xf32, #tpu.memory_space<vmem>>, vector<2x2xf32>,
    return
  }
  func.func @transform_0(%arg0: i32) -> (i32, i32) {
    %c0_i32 = arith.constant 0 : i32
    %c0_i32_0 = arith.constant 0 : i32
    %c0_i32_1 = arith.constant 0 : i32
    return %c0_i32, %c0_i32_0 : i32, i32
  }
  func.func @transform_1(%arg0: i32) -> (i32, i32) {
    %c0_i32 = arith.constant 0 : i32
    %c0_i32_0 = arith.constant 0 : i32
    %c0_i32_1 = arith.constant 0 : i32
    return %c0_i32, %c0_i32_0 : i32, i32
  }
  func.func @transform_2(%arg0: i32) -> (i32, i32) {
    %c0_i32 = arith.constant 0 : i32
    %c0_i32_0 = arith.constant 0 : i32
    %c0_i32_1 = arith.constant 0 : i32
    return %c0_i32, %c0_i32_0 : i32, i32
  }
  func.func @transform_3(%arg0: i32) -> (i32, i32, i32) {
    %c0_i32 = arith.constant 0 : i32
    %c0_i32_0 = arith.constant 0 : i32
    %c0_i32_1 = arith.constant 0 : i32
    %c0_i32_2 = arith.constant 0 : i32
    return %c0_i32, %c0_i32_0, %c0_i32_1 : i32, i32, i32
  }
  func.func @transform_4(%arg0: i32) -> (i32, i32) {
    %c0_i32 = arith.constant 0 : i32
    %c0_i32_0 = arith.constant 0 : i32
    %c0_i32_1 = arith.constant 0 : i32
    return %c0_i32, %c0_i32_0 : i32, i32
  }
  func.func @transform_5(%arg0: i32) -> (i32, i32) {
    %c0_i32 = arith.constant 0 : i32
    %c0_i32_0 = arith.constant 0 : i32
    %c0_i32_1 = arith.constant 0 : i32
    return %c0_i32, %c0_i32_0 : i32, i32
  }
  func.func @transform_6(%arg0: i32) -> (i32, i32) {
    %c0_i32 = arith.constant 0 : i32
    %c0_i32_0 = arith.constant 0 : i32
    %c0_i32_1 = arith.constant 0 : i32
    return %c0_i32, %c0_i32_0 : i32, i32
  }
  func.func @transform_7(%arg0: i32) -> (i32, i32) {
    %c0_i32 = arith.constant 0 : i32
    %c0_i32_0 = arith.constant 0 : i32
    %c0_i32_1 = arith.constant 0 : i32
    return %c0_i32, %c0_i32_0 : i32, i32
  }
  func.func @transform_8(%arg0: i32) -> (i32, i32) {
    %c0_i32 = arith.constant 0 : i32
    %c0_i32_0 = arith.constant 0 : i32
    %c0_i32_1 = arith.constant 0 : i32
    return %c0_i32, %c0_i32_0 : i32, i32
  }
  func.func @transform_9(%arg0: i32) -> (i32, i32) {
    %c0_i32 = arith.constant 0 : i32
    %c0_i32_0 = arith.constant 0 : i32
    %c0_i32_1 = arith.constant 0 : i32
    return %c0_i32, %c0_i32_0 : i32, i32
  }
  func.func @transform_10(%arg0: i32) -> (i32, i32) {
    %c0_i32 = arith.constant 0 : i32
    %c0_i32_0 = arith.constant 0 : i32
    %c0_i32_1 = arith.constant 0 : i32
    return %c0_i32, %c0_i32_0 : i32, i32
  }
  func.func @transform_11(%arg0: i32) -> (i32, i32) {
    %c0_i32 = arith.constant 0 : i32
    %c0_i32_0 = arith.constant 0 : i32
    %c0_i32_1 = arith.constant 0 : i32
    return %c0_i32, %c0_i32_0 : i32, i32
  }
  func.func @transform_12(%arg0: i32) -> (i32, i32) {
    %c0_i32 = arith.constant 0 : i32
    %c0_i32_0 = arith.constant 0 : i32
    %c0_i32_1 = arith.constant 0 : i32
    return %c0_i32, %c0_i32_0 : i32, i32
  }
  func.func @transform_13(%arg0: i32) -> (i32, i32) {
    %c0_i32 = arith.constant 0 : i32
    %c0_i32_0 = arith.constant 0 : i32
    %c0_i32_1 = arith.constant 0 : i32
    return %c0_i32, %c0_i32_0 : i32, i32
  }
  func.func @transform_14(%arg0: i32) -> (i32, i32) {
    %c0_i32 = arith.constant 0 : i32
    %c0_i32_0 = arith.constant 0 : i32
    %c0_i32_1 = arith.constant 0 : i32
    return %c0_i32, %c0_i32_0 : i32, i32
  }
}

</mosaic_0001>

<bundles_post_ra>
// kernel: tpu_custom_call.1
= control target key start
LH: loop header
LB: loop body
LE: loop exit
PB: predicated region body
PF: predicated region fallthrough
CT: control target
= control target key end

     0   :  { %20 = vsyncpa [#allocation3], 0  ;;  %s9507_s0 = inlined_call_operand.vmem [shape: f32[160,28], index: 0, kind: input, shape index: {}]   ;;  %s9508_s1 = inlined_call_operand.hbm [shape: f32[28,192], index: 1, kind: input, shape index: {}]   ;;  %s9509_s2 = inlined_call_operand.hbm [shape: f32[1,192], index: 2, kind: input, shape index: {}]   ;;  %s9510_s3 = inlined_call_operand.hbm [shape: bf16[10,192,512], index: 3, kind: input, shape index: {}]   ;;  %s9511_s4 = inlined_call_operand.hbm [shape: f32[1,512], index: 4, kind: input, shape index: {}]   ;;  %s9512_s5 = inlined_call_operand.hbm [shape: f32[1,512], index: 5, kind: input, shape index: {}]   ;;  %s9513_s6 = inlined_call_operand.hbm [shape: f32[1,512], index: 6, kind: input, shape index: {}]   ;;  %s9514_s7 = inlined_call_operand.vmem [shape: f32[512,32], index: 7, kind: input, shape index: {}]   ;;  %s9515_s8 = inlined_call_operand.hbm [shape: f32[1,32], index: 8, kind: input, shape index: {}]   ;;  %s9516_s9 = inlined_call_operand.vmem [shape: f32[32,8], index: 9, kind: input, shape index: {}]   ;;  %s9517_s10 = inlined_call_operand.hbm [shape: f32[1,8], index: 10, kind: input, shape index: {}]   ;;  %s9518_s11 = inlined_call_operand.vmem [shape: f32[8,2], index: 11, kind: input, shape index: {}]   ;;  %s9519_s12 = inlined_call_operand.hbm [shape: f32[1,2], index: 12, kind: input, shape index: {}]   ;;  %s9520_s13 = inlined_call_operand.hbm [shape: f32[2,2], index: 13, kind: output, shape index: {0}]   ;;  %s9521_s14 = inlined_call_operand.hbm [shape: f32[2,512], index: 14, kind: output, shape index: {1}]  }
   0x1   :  { %21 = vsyncpa [#allocation6], 0 }
   0x2   :  { %22 = vsyncpa [#allocation9], 0 }
   0x3   :  { %23 = vsyncpa [#allocation12], 0 }
   0x4   :  { %24 = vsyncpa [#allocation15], 0 }
   0x5   :  { %25 = vsyncpa [#allocation4], 0 }
   0x6   :  { %26 = vsyncpa [#allocation19], 0  ;;  %s7872_s29 = smov [#allocation5]   ;;  %s7873_s15 = smov [#allocation8]  }
   0x7   :  { %s47_s30 = sshll.u32 %s7872_s29, 4  ;;  %s69_s16 = sshll.u32 %s7873_s15, 4  ;;  %s48_s30 = int_to_ptr.vmem [resolvable:$true] %s47_s30  ;;  %s70_s16 = int_to_ptr.vmem [resolvable:$true] %s69_s16 }
   0x8   :  { %s7616_s19 = scalar_lea.hbm %s9509_s2, 32 }
   0x9   :  { %p7617_p0 = scmp.ne.s32.totalorder %s9509_s2, %s7616_s19  ;;  %p7620_p1 = scmp.lt.u32.totalorder %s7616_s19, %s9509_s2 }
   0xb   :  { %p7622_p2 = pnand %p7620_p1, %p7617_p0 }
   0xd   :  { %7625 = shalt.err (!%p7622_p2)
}
   0xe   :  { %s7626_s24 = scalar_lea.vmem %s48_s30, 32  ;;  %p7631_p4 = scmp.lt.s32.totalorder %s48_s30, %s48_s30 }
   0xf   :  { %p7627_p3 = scmp.ne.s32.totalorder %s48_s30, %s7626_s24  ;;  %p7632_p5 = scmp.lt.s32.totalorder %s7626_s24, %s7626_s24 }
  0x11   :  { %p7633_p6 = por %p7632_p5, %p7631_p4 }
  0x13   :  { %p7634_p7 = pnand %p7633_p6, %p7627_p3 }
  0x15   :  { %7637 = shalt.err (!%p7634_p7)
}
  0x16   :  { %50 = dma.hbm_to_vmem [thread:$0]  %s9509_s2, 32, %s48_s30, [#allocation6]  }
  0x17   :  { %s7638_s29 = scalar_lea.hbm %s9511_s4, 64 }
  0x18   :  { %p7639_p8 = scmp.ne.s32.totalorder %s9511_s4, %s7638_s29  ;;  %p7642_p9 = scmp.lt.u32.totalorder %s7638_s29, %s9511_s4 }
  0x1a   :  { %p7644_p10 = pnand %p7642_p9, %p7639_p8 }
  0x1c   :  { %7647 = shalt.err (!%p7644_p10)
}
  0x1d   :  { %s7648_s20 = scalar_lea.vmem %s70_s16, 64  ;;  %p7653_p12 = scmp.lt.s32.totalorder %s70_s16, %s70_s16 }
  0x1e   :  { %p7649_p11 = scmp.ne.s32.totalorder %s70_s16, %s7648_s20  ;;  %p7654_p13 = scmp.lt.s32.totalorder %s7648_s20, %s7648_s20 }
  0x20   :  { %p7655_p0 = por %p7654_p13, %p7653_p12 }
  0x22   :  { %p7656_p1 = pnand %p7655_p0, %p7649_p11 }
  0x24   :  { %7659 = shalt.err (!%p7656_p1)
}
  0x25   :  { %72 = dma.hbm_to_vmem [thread:$0]  %s9511_s4, 64, %s70_s16, [#allocation9]  }
  0x26   :  { %s7874_s21 = smov [#allocation11]   ;;  %s7875_s23 = smov [#allocation14]  }
  0x27   :  { %s89_s22 = sshll.u32 %s7874_s21, 4  ;;  %s113_s24 = sshll.u32 %s7875_s23, 4  ;;  %s90_s22 = int_to_ptr.vmem [resolvable:$true] %s89_s22  ;;  %s114_s24 = int_to_ptr.vmem [resolvable:$true] %s113_s24 }
  0x28   :  { %s7660_s27 = scalar_lea.hbm %s9513_s6, 64 }
  0x29   :  { %p7661_p2 = scmp.ne.s32.totalorder %s9513_s6, %s7660_s27  ;;  %p7664_p3 = scmp.lt.u32.totalorder %s7660_s27, %s9513_s6 }
  0x2b   :  { %p7666_p4 = pnand %p7664_p3, %p7661_p2 }
  0x2d   :  { %7669 = shalt.err (!%p7666_p4)
}
  0x2e   :  { %s7670_s4 = scalar_lea.vmem %s90_s22, 64  ;;  %p7675_p6 = scmp.lt.s32.totalorder %s90_s22, %s90_s22 }
  0x2f   :  { %p7671_p5 = scmp.ne.s32.totalorder %s90_s22, %s7670_s4  ;;  %p7676_p7 = scmp.lt.s32.totalorder %s7670_s4, %s7670_s4 }
  0x31   :  { %p7677_p8 = por %p7676_p7, %p7675_p6 }
  0x33   :  { %p7678_p9 = pnand %p7677_p8, %p7671_p5 }
  0x35   :  { %7681 = shalt.err (!%p7678_p9)
}
  0x36   :  { %92 = dma.hbm_to_vmem [thread:$0]  %s9513_s6, 64, %s90_s22, [#allocation12]  }
  0x37   :  { %s7682_s2 = scalar_lea.hbm %s9517_s10, 16 }
  0x38   :  { %p7683_p10 = scmp.ne.s32.totalorder %s9517_s10, %s7682_s2  ;;  %p7686_p11 = scmp.lt.u32.totalorder %s7682_s2, %s9517_s10 }
  0x3a   :  { %p7688_p12 = pnand %p7686_p11, %p7683_p10 }
  0x3c   :  { %7691 = shalt.err (!%p7688_p12)
}
  0x3d   :  { %s7692_s26 = scalar_lea.vmem %s114_s24, 16  ;;  %s7696_s27 = scalar_lea.vmem %s114_s24, 32 }
  0x3e   :  { %p7693_p13 = scmp.ne.s32.totalorder %s114_s24, %s7692_s26  ;;  %p7697_p0 = scmp.lt.s32.totalorder %s114_s24, %s114_s24 }
  0x3f   :  { %p7698_p1 = scmp.lt.s32.totalorder %s7696_s27, %s7692_s26 }
  0x41   :  { %p7699_p2 = por %p7698_p1, %p7697_p0 }
  0x43   :  { %p7700_p3 = pnand %p7699_p2, %p7693_p13 }
  0x45   :  { %7703 = shalt.err (!%p7700_p3)
}
  0x46   :  { %116 = dma.hbm_to_vmem [thread:$0]  %s9517_s10, 16, %s114_s24, [#allocation15]  }
  0x47   :  { %s7876_s28 = smov [#allocation2]   ;;  %s7704_s4 = scalar_lea.hbm %s9508_s1, 1024 }
  0x48   :  { %s34_s29 = sshll.u32 %s7876_s28, 4  ;;  %p7705_p4 = scmp.ne.s32.totalorder %s9508_s1, %s7704_s4  ;;  %s35_s29 = int_to_ptr.vmem [resolvable:$true] %s34_s29 }
  0x49   :  { %p7708_p5 = scmp.lt.u32.totalorder %s7704_s4, %s9508_s1 }
  0x4b   :  { %p7710_p6 = pnand %p7708_p5, %p7705_p4 }
  0x4d   :  { %7713 = shalt.err (!%p7710_p6)
}
  0x4e   :  { %s7714_s2 = scalar_lea.vmem %s35_s29, 1024  ;;  %p7719_p8 = scmp.lt.s32.totalorder %s35_s29, %s35_s29 }
  0x4f   :  { %p7715_p7 = scmp.ne.s32.totalorder %s35_s29, %s7714_s2  ;;  %p7720_p9 = scmp.lt.s32.totalorder %s7714_s2, %s7714_s2 }
  0x51   :  { %p7721_p10 = por %p7720_p9, %p7719_p8 }
  0x53   :  { %p7722_p11 = pnand %p7721_p10, %p7715_p7 }
  0x55   :  { %7725 = shalt.err (!%p7722_p11)
}
  0x56   :  { %s7877_s10 = smov 256   ;;  %s7878_s24 = smov 16  }
  0x57   :  { %40 = dma.hbm_to_vmem [thread:$0]  %s9508_s1, 1024, %s35_s29, [#allocation3], %s7877_s10, %s7877_s10, %s7878_s24  }
  0x58   :  { %s7879_s23 = smov [#allocation7]   ;;  %s7880_s26 = smov [#allocation10]  }
  0x59   :  { %s56_s25 = sshll.u32 %s7879_s23, 4  ;;  %s79_s27 = sshll.u32 %s7880_s26, 4  ;;  %s57_s25 = int_to_ptr.vmem [resolvable:$true] %s56_s25  ;;  %s80_s27 = int_to_ptr.vmem [resolvable:$true] %s79_s27 }
  0x5a   :  { %s7726_s28 = scalar_lea.hbm %s9510_s3, 61440 }
  0x5b   :  { %p7727_p12 = scmp.ne.s32.totalorder %s9510_s3, %s7726_s28  ;;  %p7730_p13 = scmp.lt.u32.totalorder %s7726_s28, %s9510_s3 }
  0x5d   :  { %p7732_p0 = pnand %p7730_p13, %p7727_p12 }
  0x5f   :  { %7735 = shalt.err (!%p7732_p0)
}
  0x60   :  { %s7736_s1 = scalar_lea.vmem %s57_s25, 61440  ;;  %p7741_p2 = scmp.lt.s32.totalorder %s57_s25, %s57_s25 }
  0x61   :  { %p7737_p1 = scmp.ne.s32.totalorder %s57_s25, %s7736_s1  ;;  %p7742_p3 = scmp.lt.s32.totalorder %s7736_s1, %s7736_s1 }
  0x63   :  { %p7743_p4 = por %p7742_p3, %p7741_p2 }
  0x65   :  { %p7744_p5 = pnand %p7743_p4, %p7737_p1 }
  0x67   :  { %7747 = shalt.err (!%p7744_p5)
}
  0x68   :  { %62 = dma.hbm_to_vmem [thread:$0]  %s9510_s3, 61440, %s57_s25, [#allocation6], %s7877_s10, %s7877_s10, %s7878_s24  }
  0x69   :  { %s7748_s2 = scalar_lea.hbm %s9512_s5, 64 }
  0x6a   :  { %p7749_p6 = scmp.ne.s32.totalorder %s9512_s5, %s7748_s2  ;;  %p7752_p7 = scmp.lt.u32.totalorder %s7748_s2, %s9512_s5 }
  0x6c   :  { %p7754_p8 = pnand %p7752_p7, %p7749_p6 }
  0x6e   :  { %7757 = shalt.err (!%p7754_p8)
}
  0x6f   :  { %s7758_s6 = scalar_lea.vmem %s80_s27, 64  ;;  %p7763_p10 = scmp.lt.s32.totalorder %s80_s27, %s80_s27 }
  0x70   :  { %p7759_p9 = scmp.ne.s32.totalorder %s80_s27, %s7758_s6  ;;  %p7764_p11 = scmp.lt.s32.totalorder %s7758_s6, %s7758_s6 }
  0x72   :  { %p7765_p12 = por %p7764_p11, %p7763_p10 }
  0x74   :  { %p7766_p13 = pnand %p7765_p12, %p7759_p9 }
  0x76   :  { %7769 = shalt.err (!%p7766_p13)
}
  0x77   :  { %82 = dma.hbm_to_vmem [thread:$0]  %s9512_s5, 64, %s80_s27, [#allocation9]  }
  0x78   :  { %s7881_s24 = smov [#allocation13]   ;;  %s7882_s22 = smov [#allocation16]  }
  0x79   :  { %s101_s25 = sshll.u32 %s7881_s24, 4  ;;  %s125_s28 = sshll.u32 %s7882_s22, 4  ;;  %s102_s25 = int_to_ptr.vmem [resolvable:$true] %s101_s25  ;;  %s126_s28 = int_to_ptr.vmem [resolvable:$true] %s125_s28 }
  0x7a   :  { %s7770_s4 = scalar_lea.hbm %s9515_s8, 16 }
  0x7b   :  { %p7771_p0 = scmp.ne.s32.totalorder %s9515_s8, %s7770_s4  ;;  %p7774_p1 = scmp.lt.u32.totalorder %s7770_s4, %s9515_s8 }
  0x7d   :  { %p7776_p2 = pnand %p7774_p1, %p7771_p0 }
  0x7f   :  { %7779 = shalt.err (!%p7776_p2)
}
  0x80   :  { %s7780_s5 = scalar_lea.vmem %s102_s25, 16  ;;  %s7784_s27 = scalar_lea.vmem %s102_s25, 32 }
  0x81   :  { %p7781_p3 = scmp.ne.s32.totalorder %s102_s25, %s7780_s5  ;;  %p7785_p4 = scmp.lt.s32.totalorder %s102_s25, %s102_s25 }
  0x82   :  { %p7786_p5 = scmp.lt.s32.totalorder %s7784_s27, %s7780_s5 }
  0x84   :  { %p7787_p6 = por %p7786_p5, %p7785_p4 }
  0x86   :  { %p7788_p7 = pnand %p7787_p6, %p7781_p3 }
  0x88   :  { %7791 = shalt.err (!%p7788_p7)
}
  0x89   :  { %104 = dma.hbm_to_vmem [thread:$0]  %s9515_s8, 16, %s102_s25, [#allocation12]  }
  0x8a   :  { %s7792_s21 = scalar_lea.hbm %s9519_s12, 16 }
  0x8b   :  { %p7793_p8 = scmp.ne.s32.totalorder %s9519_s12, %s7792_s21  ;;  %p7796_p9 = scmp.lt.u32.totalorder %s7792_s21, %s9519_s12 }
  0x8d   :  { %p7798_p10 = pnand %p7796_p9, %p7793_p8 }
  0x8f   :  { %7801 = shalt.err (!%p7798_p10)
}
  0x90   :  { %s7802_s10 = scalar_lea.vmem %s126_s28, 16  ;;  %s7806_s24 = scalar_lea.vmem %s126_s28, 32 }
  0x91   :  { %p7803_p11 = scmp.ne.s32.totalorder %s126_s28, %s7802_s10  ;;  %p7807_p12 = scmp.lt.s32.totalorder %s126_s28, %s126_s28 }
  0x92   :  { %p7808_p13 = scmp.lt.s32.totalorder %s7806_s24, %s7802_s10 }
  0x94   :  { %p7809_p0 = por %p7808_p13, %p7807_p12 }
  0x96   :  { %p7810_p1 = pnand %p7809_p0, %p7803_p11 }
  0x98   :  { %7813 = shalt.err (!%p7810_p1)
}
  0x99   :  { %128 = dma.hbm_to_vmem [thread:$0]  %s9519_s12, 16, %s126_s28, [#allocation15]  }
  0x9a   :  { %7858 = dma.done.wait [#allocation3], 1024  }
  0x9b   :  { %7859 = vsyncadd [#allocation3], 4294966272 }
  0x9c   :  { %7860 = dma.done.wait [#allocation6], 61472  }
  0x9d   :  { %7861 = vsyncadd [#allocation6], 4294905824 }
  0x9e   :  { %7862 = dma.done.wait [#allocation9], 128  }
  0x9f   :  { %7863 = vsyncadd [#allocation9], 4294967168 }
  0xa0   :  { %7864 = dma.done.wait [#allocation12], 80  }
  0xa1   :  { %7865 = vsyncadd [#allocation12], 4294967216 }
  0xa2   :  { %7866 = dma.done.wait [#allocation15], 32  }
  0xa3   :  { %7867 = vsyncadd [#allocation15], 4294967264  ;;  %v9522_v0 = vmov 0.0   ;;  %vm257_vm0 = vcmask 1043456   ;;  %v177_v1 = vld [vmem:[#allocation2 + $0x8] sm:$0xff]  ;;  %v179_v2 = vld [vmem:[#allocation2 + $0x18] sm:$0xff]  ;;  %v186_v33 = vlaneseq }
  0xa4   :  { %328 = vmatprep.mubr.f32.mxu0 %v9522_v0  ;;  %v176_v3 = vld [vmem:[#allocation2] sm:$0xff]  ;;  %v5070_v4 = vpack.c.bf16 %v179_v2, %v177_v1  ;;  %v178_v5 = vld [vmem:[#allocation2 + $0x10] sm:$0xff]  ;;  %v181_v6 = vld [vmem:[#allocation2 + $0x28] sm:$0xff]  ;;  %vm7884_vm1 = vmmov 1   ;;  %vm196_vm3 = vcmask 228352   ;;  %vm1135_vm10 = vcmask 523264  }
  0xa5   :  { %v183_v7 = vld [vmem:[#allocation2 + $0x38] sm:$0xf]  ;;  %v5072_v8 = vpack.c.bf16 %v178_v5, %v176_v3  ;;  %vm5075_vm2 = vmpackc.low %vm257_vm0, %vm7884_vm1  ;;  %v180_v10 = vld [vmem:[#allocation2 + $0x20] sm:$0xff]  ;;  %v8173_v34 = vshrl.u32 %v186_v33, 7 }
  0xa6   :  { %v5074_v9 = vpack.c.bf16 %v183_v7, %v181_v6  ;;  %v182_v11 = vld [vmem:[#allocation2 + $0x30] sm:$0xf]  ;;  %5071 = vmatprep.subr.bf16.mxu0 %v5070_v4  ;;  %v156_v13 = vld [vmem:[%s9507_s0] sm:$0xff]  ;;  %v157_v14 = vld [vmem:[%s9507_s0 + $0x8] sm:$0xff] }
  0xa7   :  { %5073 = vmatpush1.bf16.msra.mxu0 %v5072_v8  ;;  %v5077_v12 = vpack.c.bf16 %v182_v11, %v180_v10  ;;  %v158_v15 = vld [vmem:[%s9507_s0 + $0x10] sm:$0xff]  ;;  %v159_v16 = vld [vmem:[%s9507_s0 + $0x18] sm:$0xff]  ;;  %v160_v17 = vld [vmem:[%s9507_s0 + $0x20] sm:$0xff]  ;;  %9542 = vst [vmem:[#allocation27_spill] sm:$0xff] %v8173_v34  ;;  %v8176_v35 = vsub.s32 0, %v8173_v34  ;;  %v8179_v37 = vsub.s32 1, %v8173_v34 }
  0xa8   :  { %5076 = vmatprep.subr.msk.bf16.mxu0 %vm5075_vm2, %v5074_v9  ;;  %v161_v18 = vld [vmem:[%s9507_s0 + $0x28] sm:$0xff]  ;;  %v162_v19 = vld [vmem:[%s9507_s0 + $0x30] sm:$0xff]  ;;  %v163_v20 = vld [vmem:[%s9507_s0 + $0x38] sm:$0xff] }
  0xa9   :  { %v164_v21 = vld [vmem:[%s9507_s0 + $0x40] sm:$0xff]  ;;  %v165_v22 = vld [vmem:[%s9507_s0 + $0x48] sm:$0xff]  ;;  %v166_v23 = vld [vmem:[%s9507_s0 + $0x50] sm:$0xff]  ;;  %9543 = vst [vmem:[#allocation28_spill] sm:$0xff] %v8176_v35 }
  0xaa   :  { %v167_v24 = vld [vmem:[%s9507_s0 + $0x58] sm:$0xff]  ;;  %v168_v25 = vld [vmem:[%s9507_s0 + $0x60] sm:$0xff]  ;;  %v169_v26 = vld [vmem:[%s9507_s0 + $0x68] sm:$0xff]  ;;  %9544 = vst [vmem:[#allocation29_spill] sm:$0xff] %v8179_v37 }
  0xab   :  { %5079 = vmatpush1.bf16.msk.msra.mxu0 %vm5075_vm2, %v5077_v12  ;;  %v170_v27 = vld [vmem:[%s9507_s0 + $0x70] sm:$0xff]  ;;  %v171_v28 = vld [vmem:[%s9507_s0 + $0x78] sm:$0xff]  ;;  %v172_v29 = vld [vmem:[%s9507_s0 + $0x80] sm:$0xff] }
  0xac   :  { %v173_v30 = vld [vmem:[%s9507_s0 + $0x88] sm:$0xff]  ;;  %v174_v31 = vld [vmem:[%s9507_s0 + $0x90] sm:$0xff]  ;;  %v175_v32 = vld [vmem:[%s9507_s0 + $0x98] sm:$0xff] }
  0xad   :  { %v184_v36 = vld [vmem:[#allocation5] sm:$0x3] }
  0xae   :  { %4932 = vmatmul.mubr.msk.f32.vlgmr.msra.gmra.mrb[0].mxu0 %vm196_vm3, %v156_v13  ;;  %v8182_v38 = vrot.slane %v184_v36, %v8176_v35  ;;  %v8185_v39 = vrot.slane %v184_v36, %v8179_v37  ;;  %v6676_v37 = vld [vmem:[#allocation7 + $0x22c] ss:$16 sps:$4 sm:$0xff]  }
  0xaf   :  { %334 = vmatprep.mubr.f32.mxu0 %v9522_v0 }
  0xb2   :  { %4933 = vmatmul.mubr.msk.f32.gmra.mrb[2].mxu0 %vm196_vm3, %v157_v14 }
  0xb3   :  { %340 = vmatprep.mubr.f32.mxu0 %v9522_v0 }
  0xb6   :  { %4934 = vmatmul.mubr.msk.f32.gmra.mrb[4].mxu0 %vm196_vm3, %v158_v15 }
  0xb7   :  { %346 = vmatprep.mubr.f32.mxu0 %v9522_v0 }
  0xba   :  { %4935 = vmatmul.mubr.msk.f32.gmra.mrb[6].mxu0 %vm196_vm3, %v159_v16 }
  0xbb   :  { %352 = vmatprep.mubr.f32.mxu0 %v9522_v0 }
  0xbe   :  { %4936 = vmatmul.mubr.msk.f32.gmra.mrb[8].mxu0 %vm196_vm3, %v160_v17 }
  0xbf   :  { %358 = vmatprep.mubr.f32.mxu0 %v9522_v0 }
  0xc2   :  { %4937 = vmatmul.mubr.msk.f32.gmra.mrb[10].mxu0 %vm196_vm3, %v161_v18 }
  0xc3   :  { %364 = vmatprep.mubr.f32.mxu0 %v9522_v0 }
  0xc6   :  { %4938 = vmatmul.mubr.msk.f32.gmra.mrb[12].mxu0 %vm196_vm3, %v162_v19 }
  0xc7   :  { %370 = vmatprep.mubr.f32.mxu0 %v9522_v0 }
  0xca   :  { %4939 = vmatmul.mubr.msk.f32.gmra.mrb[14].mxu0 %vm196_vm3, %v163_v20 }
  0xcb   :  { %376 = vmatprep.mubr.f32.mxu0 %v9522_v0 }
  0xce   :  { %4940 = vmatmul.mubr.msk.f32.gmra.mrb[16].mxu0 %vm196_vm3, %v164_v21 }
  0xcf   :  { %382 = vmatprep.mubr.f32.mxu0 %v9522_v0 }
  0xd2   :  { %4941 = vmatmul.mubr.msk.f32.gmra.mrb[18].mxu0 %vm196_vm3, %v165_v22 }
  0xd3   :  { %388 = vmatprep.mubr.f32.mxu0 %v9522_v0 }
  0xd6   :  { %4942 = vmatmul.mubr.msk.f32.gmra.mrb[20].mxu0 %vm196_vm3, %v166_v23 }
  0xd7   :  { %394 = vmatprep.mubr.f32.mxu0 %v9522_v0 }
  0xda   :  { %4943 = vmatmul.mubr.msk.f32.gmra.mrb[22].mxu0 %vm196_vm3, %v167_v24 }
  0xdb   :  { %400 = vmatprep.mubr.f32.mxu0 %v9522_v0 }
  0xde   :  { %4944 = vmatmul.mubr.msk.f32.gmra.mrb[24].mxu0 %vm196_vm3, %v168_v25 }
  0xdf   :  { %406 = vmatprep.mubr.f32.mxu0 %v9522_v0 }
  0xe2   :  { %4945 = vmatmul.mubr.msk.f32.gmra.mrb[26].mxu0 %vm196_vm3, %v169_v26 }
  0xe3   :  { %412 = vmatprep.mubr.f32.mxu0 %v9522_v0 }
  0xe6   :  { %4946 = vmatmul.mubr.msk.f32.gmra.mrb[28].mxu0 %vm196_vm3, %v170_v27 }
  0xe7   :  { %418 = vmatprep.mubr.f32.mxu0 %v9522_v0 }
  0xea   :  { %4947 = vmatmul.mubr.msk.f32.gmra.mrb[30].mxu0 %vm196_vm3, %v171_v28 }
  0xeb   :  { %424 = vmatprep.mubr.f32.mxu0 %v9522_v0 }
  0xee   :  { %4948 = vmatmul.mubr.msk.f32.gmra.mrb[32].mxu0 %vm196_vm3, %v172_v29 }
  0xef   :  { %430 = vmatprep.mubr.f32.mxu0 %v9522_v0 }
  0xf2   :  { %4949 = vmatmul.mubr.msk.f32.gmra.mrb[34].mxu0 %vm196_vm3, %v173_v30 }
  0xf3   :  { %436 = vmatprep.mubr.f32.mxu0 %v9522_v0 }
  0xf6   :  { %4950 = vmatmul.mubr.msk.f32.gmra.mrb[36].mxu0 %vm196_vm3, %v174_v31 }
  0xf7   :  { %442 = vmatprep.mubr.f32.mxu0 %v9522_v0 }
  0xfa   :  { %4951 = vmatmul.mubr.msk.f32.gmra.mrb[38].mxu0 %vm196_vm3, %v175_v32 }
 0x181   :  { %v330_v40 = vpop.f32.mrb[0].mxu0 }
 0x182   :  { %v8188_v41 = vadd.f32 %v330_v40, %v8182_v38  ;;  %v332_v42 = vpop.f32.mrb[1].mxu0 }
 0x183   :  { %v8191_v43 = vadd.f32 %v332_v42, %v8185_v39 }
 0x184   :  { %v489_v44 = vand.u32 2147483647, %v8188_v41  ;;  %v449_v18 = vmax.f32 %v8188_v41, 0.0 }
 0x185   :  { %v490_v45 = vand.u32 2147483647, %v8191_v43  ;;  %v336_v46 = vpop.f32.mrb[2].mxu0  ;;  %v450_v19 = vmax.f32 %v8191_v43, 0.0 }
 0x186   :  { %v529_v47 = vsub.f32 0.0, %v489_v44  ;;  %v8196_v48 = vadd.f32 %v336_v46, %v8182_v38  ;;  %v338_v49 = vpop.f32.mrb[3].mxu0 }
 0x187   :  { %v530_v50 = vsub.f32 0.0, %v490_v45  ;;  %v8199_v51 = vadd.f32 %v338_v49, %v8185_v39 }
 0x188   :  { %v569_v52 = vmul.f32 1.442695, %v529_v47  ;;  %v491_v53 = vand.u32 2147483647, %v8196_v48  ;;  %v451_v20 = vmax.f32 %v8196_v48, 0.0 }
 0x189   :  { %v571_v54 = vmul.f32 1.442695, %v530_v50  ;;  %v492_v55 = vand.u32 2147483647, %v8199_v51  ;;  %v342_v56 = vpop.f32.mrb[4].mxu0  ;;  %v452_v25 = vmax.f32 %v8199_v51, 0.0 }
 0x18a   :  { %7364 = vpow2.f32 %v569_v52  ;;  %v531_v57 = vsub.f32 0.0, %v491_v53  ;;  %v8204_v58 = vadd.f32 %v342_v56, %v8182_v38  ;;  %v344_v59 = vpop.f32.mrb[5].mxu0 }
 0x18b   :  { %7366 = vpow2.f32 %v571_v54  ;;  %v532_v60 = vsub.f32 0.0, %v492_v55  ;;  %v8207_v61 = vadd.f32 %v344_v59, %v8185_v39 }
 0x18c   :  { %v573_v62 = vmul.f32 1.442695, %v531_v57  ;;  %v493_v63 = vand.u32 2147483647, %v8204_v58  ;;  %v453_v26 = vmax.f32 %v8204_v58, 0.0 }
 0x18d   :  { %v575_v1 = vmul.f32 1.442695, %v532_v60  ;;  %v494_v2 = vand.u32 2147483647, %v8207_v61  ;;  %v348_v3 = vpop.f32.mrb[6].mxu0  ;;  %v454_v32 = vmax.f32 %v8207_v61, 0.0 }
 0x18e   :  { %7368 = vpow2.f32 %v573_v62  ;;  %v533_v4 = vsub.f32 0.0, %v493_v63  ;;  %v8212_v5 = vadd.f32 %v348_v3, %v8182_v38  ;;  %v350_v6 = vpop.f32.mrb[7].mxu0 }
 0x18f   :  { %7370 = vpow2.f32 %v575_v1  ;;  %v534_v7 = vsub.f32 0.0, %v494_v2  ;;  %v8215_v8 = vadd.f32 %v350_v6, %v8185_v39  ;;  %v6652_v2 = vld [vmem:[#allocation7 + $0x1ac] ss:$16 sps:$4 sm:$0xff]  }
 0x190   :  { %v577_v9 = vmul.f32 1.442695, %v533_v4  ;;  %v495_v10 = vand.u32 2147483647, %v8212_v5  ;;  %v455_v44 = vmax.f32 %v8212_v5, 0.0 }
 0x191   :  { %v579_v11 = vmul.f32 1.442695, %v534_v7  ;;  %v354_v12 = vpop.f32.mrb[8].mxu0  ;;  %v496_v16 = vand.u32 2147483647, %v8215_v8  ;;  %v456_v52 = vmax.f32 %v8215_v8, 0.0 }
 0x192   :  { %7372 = vpow2.f32 %v577_v9  ;;  %v535_v13 = vsub.f32 0.0, %v495_v10  ;;  %v8219_v14 = vadd.f32 %v354_v12, %v8182_v38  ;;  %v356_v15 = vpop.f32.mrb[9].mxu0 }
 0x193   :  { %7374 = vpow2.f32 %v579_v11  ;;  %v536_v33 = vsub.f32 0.0, %v496_v16  ;;  %v8233_v45 = vadd.f32 %v356_v15, %v8185_v39 }
 0x194   :  { %v7365_v17 = vpop.eup %7364  ;;  %v581_v21 = vmul.f32 1.442695, %v535_v13  ;;  %v497_v29 = vand.u32 2147483647, %v8219_v14 }
 0x195   :  { %v7367_v22 = vpop.eup %7366  ;;  %v649_v23 = vadd.f32 1.0, %v7365_v17  ;;  %v652_v24 = vmul.f32 -0.5, %v7365_v17  ;;  %v360_v30 = vpop.f32.mrb[10].mxu0  ;;  %v655_v31 = vand.u32 2147483647, %v7365_v17 }
 0x196   :  { %v658_v27 = vadd.f32 1.0, %v7367_v22  ;;  %v661_v28 = vmul.f32 -0.5, %v7367_v22  ;;  %7376 = vpow2.f32 %v581_v21  ;;  %v8229_v36 = vpop.f32.mrb[11].mxu0  ;;  %v664_v42 = vand.u32 2147483647, %v7367_v22 }
 0x197   :  { %7378 = vlog2.f32 %v649_v23  ;;  %v653_v47 = vadd.f32 1.0, %v652_v24  ;;  %v537_v57 = vsub.f32 0.0, %v497_v29  ;;  %vm8244_vm4 = vcmp.lt.f32.partialorder %v655_v31, 0.0004427343  ;;  %v6644_v31 = vld [vmem:[#allocation7 + $0x18c] ss:$16 sps:$4 sm:$0xff]  }
 0x198   :  { %v7369_v40 = vpop.eup %7368  ;;  %7380 = vlog2.f32 %v658_v27  ;;  %v662_v54 = vadd.f32 1.0, %v661_v28  ;;  %v583_v63 = vmul.f32 1.442695, %v536_v33  ;;  %vm8250_vm5 = vcmp.lt.f32.partialorder %v664_v42, 0.0004427343  ;;  %5129 = vmatprep.subr.bf16.mxu0 %v6644_v31 }
 0x199   :  { %v8235_v46 = vpop.eup %7370  ;;  %v667_v49 = vadd.f32 1.0, %v7369_v40  ;;  %v670_v50 = vmul.f32 -0.5, %v7369_v40  ;;  %v8238_v53 = vpop.f32.mrb[12].mxu0  ;;  %v673_v62 = vand.u32 2147483647, %v7369_v40  ;;  %v654_v9 = vmul.f32 %v7365_v17, %v653_v47 }
 0x19a   :  { %v676_v55 = vadd.f32 1.0, %v8235_v46  ;;  %v8242_v59 = vpop.f32.mrb[13].mxu0  ;;  %v679_v3 = vmul.f32 -0.5, %v8235_v46  ;;  %v498_v6 = vand.u32 2147483647, %v8233_v45  ;;  %v663_v15 = vmul.f32 %v7367_v22, %v662_v54 }
 0x19b   :  { %7382 = vlog2.f32 %v667_v49  ;;  %v671_v10 = vadd.f32 1.0, %v670_v50  ;;  %v682_v11 = vand.u32 2147483647, %v8235_v46  ;;  %v585_v23 = vmul.f32 1.442695, %v537_v57 }
 0x19c   :  { %v8248_v1 = vpop.eup %7372  ;;  %7384 = vlog2.f32 %v676_v55  ;;  %vm8267_vm6 = vcmp.lt.f32.partialorder %v673_v62, 0.0004427343  ;;  %v538_v29 = vsub.f32 0.0, %v498_v6  ;;  %v680_v22 = vadd.f32 1.0, %v679_v3  ;;  %v6646_v49 = vld [vmem:[#allocation7 + $0x188] ss:$16 sps:$4 sm:$0xff]  }
 0x19d   :  { %v8257_v7 = vpop.eup %7374  ;;  %v685_v12 = vadd.f32 1.0, %v8248_v1  ;;  %v8261_v13 = vpop.f32.mrb[14].mxu0  ;;  %v688_v16 = vmul.f32 -0.5, %v8248_v1  ;;  %v691_v17 = vand.u32 2147483647, %v8248_v1  ;;  %v8277_v47 = vadd.f32 %v360_v30, %v8182_v38  ;;  %5131 = vmatpush1.bf16.msra.mxu0 %v6646_v49 }
 0x19e   :  { %v694_v21 = vadd.f32 1.0, %v8257_v7  ;;  %v8265_v24 = vpop.f32.mrb[15].mxu0  ;;  %v697_v28 = vmul.f32 -0.5, %v8257_v7  ;;  %v700_v42 = vand.u32 2147483647, %v8257_v7  ;;  %v672_v54 = vmul.f32 %v7369_v40, %v671_v10  ;;  %5133 = vmatprep.subr.bf16.mxu0 %v6652_v2 }
 0x19f   :  { %7386 = vlog2.f32 %v685_v12  ;;  %vm8279_vm7 = vcmp.lt.f32.partialorder %v682_v11, 0.0004427343  ;;  %v587_v30 = vmul.f32 1.442695, %v538_v29  ;;  %vm8289_vm8 = vcmp.lt.f32.partialorder %v691_v17, 0.0004427343 }
 0x1a0   :  { %v8273_v33 = vpop.eup %7376  ;;  %7388 = vlog2.f32 %v694_v21  ;;  %v689_v21 = vadd.f32 1.0, %v688_v16  ;;  %v698_v11 = vadd.f32 1.0, %v697_v28  ;;  %vm8295_vm9 = vcmp.lt.f32.partialorder %v700_v42, 0.0004427343  ;;  %v6647_v29 = vld [vmem:[#allocation7 + $0x184] ss:$16 sps:$4 sm:$0xff]  }
 0x1a1   :  { %v7379_v50 = vpop.eup %7378  ;;  %v703_v57 = vadd.f32 1.0, %v8273_v33  ;;  %v706_v62 = vmul.f32 -0.5, %v8273_v33  ;;  %v8285_v6 = vpop.f32.mrb[16].mxu0  ;;  %7390 = vpow2.f32 %v583_v63  ;;  %v709_v63 = vand.u32 2147483647, %v8273_v33  ;;  %5081 = vmatprep.subr.bf16.mxu1 %v6647_v29 }
 0x1a2   :  { %v7381_v3 = vpop.eup %7380  ;;  %v651_v12 = vmul.f32 0.6931472, %v7379_v50  ;;  %v8287_v0 = vpop.f32.mrb[17].mxu0  ;;  %v499_v16 = vand.u32 2147483647, %v8277_v47  ;;  %v8311_v56 = vadd.f32 %v8229_v36, %v8185_v39  ;;  %v8320_v36 = vadd.f32 %v8238_v53, %v8182_v38 }
 0x1a3   :  { %v660_v40 = vmul.f32 0.6931472, %v7381_v3  ;;  %7392 = vlog2.f32 %v703_v57  ;;  %v707_v50 = vadd.f32 1.0, %v706_v62  ;;  %v6650_v42 = vld [vmem:[#allocation7 + $0x1a4] ss:$16 sps:$4 sm:$0xff]  }
 0x1a4   :  { %v657_v4 = vsel %vm8244_vm4, %v654_v9, %v651_v12  ;;  %7394 = vpow2.f32 %v585_v23  ;;  %v6649_v9 = vld [vmem:[#allocation7 + $0x180] ss:$16 sps:$4 sm:$0xff]   ;;  %v539_v12 = vsub.f32 0.0, %v499_v16  ;;  %v6654_v62 = vld [vmem:[#allocation7 + $0x1a8] ss:$16 sps:$4 sm:$0xff]  }
 0x1a5   :  { %v7383_v49 = vpop.eup %7382  ;;  %v1009_v17 = vadd.f32 %v657_v4, %v449_v18  ;;  %v666_v28 = vsel %vm8250_vm5, %v663_v15, %v660_v40  ;;  %7396 = vpow2.f32 %v587_v30  ;;  %v8305_v60 = vpop.f32.mrb[18].mxu0  ;;  %v681_v15 = vmul.f32 %v8235_v46, %v680_v22  ;;  %5083 = vmatpush1.bf16.msra.mxu1 %v6649_v9  ;;  %v6655_v30 = vld [vmem:[#allocation7 + $0x1a0] ss:$16 sps:$4 sm:$0xff]   ;;  %5135 = vmatpush1.bf16.msra.mxu0 %v6654_v62 }
 0x1a6   :  { %v7385_v57 = vpop.eup %7384  ;;  %v1010_v23 = vadd.f32 %v666_v28, %v450_v19  ;;  %v669_v3 = vmul.f32 0.6931472, %v7383_v49  ;;  %v8313_v18 = vpop.f32.mrb[19].mxu0  ;;  %v589_v40 = vmul.f32 1.442695, %v539_v12  ;;  %5085 = vmatprep.subr.bf16.mxu1 %v6650_v42  ;;  %v690_v22 = vmul.f32 %v8248_v1, %v689_v21 }
 0x1a7   :  { %7398 = vtanh.f32 %v1009_v17  ;;  %v678_v4 = vmul.f32 0.6931472, %v7385_v57  ;;  %v699_v49 = vmul.f32 %v8257_v7, %v698_v11  ;;  %v500_v28 = vand.u32 2147483647, %v8311_v56 }
 0x1a8   :  { %7400 = vtanh.f32 %v1010_v23  ;;  %v675_v19 = vsel %vm8267_vm6, %v672_v54, %v669_v3  ;;  %vm8335_vm11 = vcmp.lt.f32.partialorder %v709_v63, 0.0004427343  ;;  %v459_v7 = vmax.f32 %v8277_v47, 0.0 }
 0x1a9   :  { %v7387_v16 = vpop.eup %7386  ;;  %v1011_v29 = vadd.f32 %v675_v19, %v451_v20  ;;  %v684_v46 = vsel %vm8279_vm7, %v681_v15, %v678_v4  ;;  %v8328_v27 = vpop.f32.mrb[20].mxu0  ;;  %7402 = vpow2.f32 %v589_v40  ;;  %5087 = vmatpush1.bf16.msra.mxu1 %v6655_v30  ;;  %v708_v11 = vmul.f32 %v8273_v33, %v707_v50 }
 0x1aa   :  { %v7389_v54 = vpop.eup %7388  ;;  %v1012_v53 = vadd.f32 %v684_v46, %v452_v25  ;;  %v687_v17 = vmul.f32 0.6931472, %v7387_v16  ;;  %v8333_v20 = vpop.f32.mrb[21].mxu0  ;;  %v501_v9 = vand.u32 2147483647, %v8320_v36  ;;  %v8353_v3 = vadd.f32 %v8242_v59, %v8185_v39 }
 0x1ab   :  { %7404 = vtanh.f32 %v1011_v29  ;;  %v696_v55 = vmul.f32 0.6931472, %v7389_v54  ;;  %v8340_v21 = vpop.eup %7390  ;;  %v6667_v59 = vld [vmem:[#allocation7 + $0x1e0] ss:$16 sps:$4 sm:$0xff]  }
 0x1ac   :  { %7406 = vtanh.f32 %v1012_v53  ;;  %v693_v25 = vsel %vm8289_vm8, %v690_v22, %v687_v17  ;;  %v712_v23 = vadd.f32 1.0, %v8340_v21  ;;  %v715_v31 = vmul.f32 -0.5, %v8340_v21 }
 0x1ad   :  { %v7393_v42 = vpop.eup %7392  ;;  %v1013_v63 = vadd.f32 %v693_v25, %v453_v26  ;;  %v702_v57 = vsel %vm8295_vm9, %v699_v49, %v696_v55  ;;  %v8355_v12 = vpop.f32.mrb[22].mxu0  ;;  %v540_v26 = vsub.f32 0.0, %v500_v28  ;;  %v541_v19 = vsub.f32 0.0, %v501_v9  ;;  %v6656_v55 = vld [vmem:[#allocation7 + $0x1c4] ss:$16 sps:$4 sm:$0xff]  }
 0x1ae   :  { %v8357_v10 = vpop.eup %7394  ;;  %v1014_v33 = vadd.f32 %v702_v57, %v454_v32  ;;  %v705_v50 = vmul.f32 0.6931472, %v7393_v42  ;;  %v8367_v62 = vpop.f32.mrb[23].mxu0  ;;  %v718_v29 = vand.u32 2147483647, %v8340_v21  ;;  %5089 = vmatprep.subr.bf16.mxu1 %v6656_v55  ;;  %v9567_v55 = vmax.f32 %v8219_v14, 0.0 }
 0x1af   :  { %v8362_v4 = vpop.eup %7396  ;;  %7408 = vtanh.f32 %v1013_v63  ;;  %v721_v15 = vadd.f32 1.0, %v8357_v10  ;;  %v724_v32 = vmul.f32 -0.5, %v8357_v10  ;;  %v502_v46 = vand.u32 2147483647, %v8353_v3  ;;  %v6660_v9 = vld [vmem:[#allocation7 + $0x1c8] ss:$16 sps:$4 sm:$0xff]  }
 0x1b0   :  { %7410 = vtanh.f32 %v1014_v33  ;;  %v711_v30 = vsel %vm8335_vm11, %v708_v11, %v705_v50  ;;  %v730_v53 = vadd.f32 1.0, %v8362_v4  ;;  %v591_v17 = vmul.f32 1.442695, %v540_v26  ;;  %v6658_v11 = vld [vmem:[#allocation7 + $0x1cc] ss:$16 sps:$4 sm:$0xff]  }
 0x1b1   :  { %v7399_v40 = vpop.eup %7398  ;;  %v1015_v16 = vadd.f32 %v711_v30, %v455_v44  ;;  %7412 = vlog2.f32 %v712_v23  ;;  %v8376_v22 = vpop.f32.mrb[24].mxu0  ;;  %v716_v44 = vadd.f32 1.0, %v715_v31  ;;  %v733_v25 = vmul.f32 -0.5, %v8362_v4  ;;  %5137 = vmatprep.subr.bf16.mxu0 %v6658_v11 }
 0x1b2   :  { %v7401_v49 = vpop.eup %7400  ;;  %v1089_v54 = vmul.f32 %v7399_v40, %v8188_v41  ;;  %7414 = vlog2.f32 %v721_v15  ;;  %v8380_v28 = vpop.f32.mrb[25].mxu0  ;;  %v725_v57 = vadd.f32 1.0, %v724_v32  ;;  %v727_v41 = vand.u32 2147483647, %v8357_v10  ;;  %5139 = vmatpush1.bf16.msra.mxu0 %v6660_v9 }
 0x1b3   :  { %v1090_v1 = vmul.f32 %v7401_v49, %v8191_v43  ;;  %7416 = vtanh.f32 %v1015_v16  ;;  %v8384_v42 = vpop.eup %7402  ;;  %v736_v50 = vand.u32 2147483647, %v8362_v4  ;;  %v734_v16 = vadd.f32 1.0, %v733_v25  ;;  %v6662_v25 = vld [vmem:[#allocation7 + $0x1e4] ss:$16 sps:$4 sm:$0xff]  }
 0x1b4   :  { %v1129_v63 = vrot.slane %v1089_v54, 4  ;;  %7418 = vlog2.f32 %v730_v53  ;;  %v739_v43 = vadd.f32 1.0, %v8384_v42  ;;  %v742_v26 = vmul.f32 -0.5, %v8384_v42  ;;  %v6661_v53 = vld [vmem:[#allocation7 + $0x1c0] ss:$16 sps:$4 sm:$0xff]  }
 0x1b5   :  { %v7405_v23 = vpop.eup %7404  ;;  %v1136_v33 = vsel %vm1135_vm10, %v1090_v1, -inf  ;;  %v8391_v31 = vpop.f32.mrb[26].mxu0  ;;  %vm8398_vm12 = vcmp.lt.f32.partialorder %v718_v29, 0.0004427343  ;;  %v593_v1 = vmul.f32 1.442695, %v541_v19  ;;  %5091 = vmatpush1.bf16.msra.mxu1 %v6661_v53  ;;  %v726_v29 = vmul.f32 %v8357_v10, %v725_v57 }
 0x1b6   :  { %v7407_v15 = vpop.eup %7406  ;;  %v8393_v30 = vmax.f32 %v1089_v54, %v1129_v63  ;;  %v1137_v32 = vrot.slane %v1136_v33, 4  ;;  %v1091_v40 = vmul.f32 %v7405_v23, %v8196_v48  ;;  %v8396_v49 = vpop.f32.mrb[27].mxu0  ;;  %7420 = vlog2.f32 %v739_v43  ;;  %5093 = vmatprep.subr.bf16.mxu1 %v6662_v25  ;;  %v6666_v10 = vld [vmem:[#allocation7 + $0x1e8] ss:$16 sps:$4 sm:$0xff]  }
 0x1b7   :  { %v1092_v11 = vmul.f32 %v7407_v15, %v8199_v51  ;;  %v717_v54 = vmul.f32 %v8340_v21, %v716_v44  ;;  %vm8405_vm13 = vcmp.lt.f32.partialorder %v727_v41, 0.0004427343  ;;  %v743_v48 = vadd.f32 1.0, %v742_v26  ;;  %v6664_v51 = vld [vmem:[#allocation7 + $0x1ec] ss:$16 sps:$4 sm:$0xff]  }
 0x1b8   :  { %vm8410_vm14 = vcmp.lt.f32.partialorder %v736_v50, 0.0004427343  ;;  %7422 = vpow2.f32 %v591_v17  ;;  %v542_v19 = vsub.f32 0.0, %v502_v46  ;;  %v8417_v41 = vmax.f32 %v1136_v33, %v1137_v32  ;;  %5141 = vmatprep.subr.bf16.mxu0 %v6664_v51 }
 0x1b9   :  { %v7409_v9 = vpop.eup %7408  ;;  %v8414_v43 = vpop.f32.mrb[28].mxu0  ;;  %v1143_v26 = vrot.slane %v1091_v40, 4  ;;  %v735_v15 = vmul.f32 %v8362_v4, %v734_v16  ;;  %v745_v17 = vand.u32 2147483647, %v8384_v42  ;;  %7424 = vpow2.f32 %v593_v1  ;;  %5143 = vmatpush1.bf16.msra.mxu0 %v6666_v10  ;;  %5095 = vmatpush1.bf16.msra.mxu1 %v6667_v59 }
 0x1ba   :  { %v7411_v21 = vpop.eup %7410  ;;  %9565 = vst [vmem:[#allocation30_spill] sm:$0xff] %v8417_v41  ;;  %v8420_v53 = vpop.f32.mrb[29].mxu0  ;;  %v1093_v50 = vmul.f32 %v7409_v9, %v8204_v58  ;;  %v8426_v33 = vsel %vm1135_vm10, %v1092_v11, -inf  ;;  %v744_v4 = vmul.f32 %v8384_v42, %v743_v48  ;;  %v595_v16 = vmul.f32 1.442695, %v542_v19 }
 0x1bb   :  { %v7413_v57 = vpop.eup %7412  ;;  %v1094_v46 = vmul.f32 %v7411_v21, %v8207_v61  ;;  %v8432_v61 = vadd.f32 %v8261_v13, %v8182_v38  ;;  %v8441_v19 = vmax.f32 %v1091_v40, %v1143_v26  ;;  %v9569_v26 = vmax.f32 %v8233_v45, 0.0 }
 0x1bc   :  { %v7415_v2 = vpop.eup %7414  ;;  %v714_v32 = vmul.f32 0.6931472, %v7413_v57  ;;  %v1156_v44 = vrot.slane %v1093_v50, 4  ;;  %7426 = vpow2.f32 %v595_v16  ;;  %vm8462_vm15 = vcmp.lt.f32.partialorder %v745_v17, 0.0004427343 }
 0x1bd   :  { %v7417_v25 = vpop.eup %7416  ;;  %v1162_v58 = vsel %vm1135_vm10, %v1094_v46, -inf  ;;  %v723_v9 = vmul.f32 0.6931472, %v7415_v2  ;;  %v8434_v1 = vpop.f32.mrb[30].mxu0  ;;  %9566 = vst [vmem:[#allocation31_spill] sm:$0xff] %v8441_v19  ;;  %v8477_v17 = vadd.f32 %v8265_v24, %v8185_v39 }
 0x1be   :  { %v7419_v51 = vpop.eup %7418  ;;  %v1163_v11 = vrot.slane %v1162_v58, 4  ;;  %v1095_v21 = vmul.f32 %v7417_v25, %v8212_v5  ;;  %v720_v42 = vsel %vm8398_vm12, %v717_v54, %v714_v32  ;;  %v8439_v48 = vpop.f32.mrb[31].mxu0  ;;  %v8451_v32 = vmax.f32 %v1093_v50, %v1156_v44 }
 0x1bf   :  { %v1016_v2 = vadd.f32 %v720_v42, %v456_v52  ;;  %v729_v13 = vsel %vm8405_vm13, %v726_v29, %v723_v9  ;;  %v732_v10 = vmul.f32 0.6931472, %v7419_v51  ;;  %v503_v52 = vand.u32 2147483647, %v8432_v61  ;;  %v6668_v42 = vld [vmem:[#allocation7 + $0x204] ss:$16 sps:$4 sm:$0xff]  }
 0x1c0   :  { %v1169_v5 = vrot.slane %v1095_v21, 4  ;;  %v1017_v54 = vadd.f32 %v729_v13, %v9567_v55  ;;  %v7421_v46 = vpop.eup %7420  ;;  %v8458_v29 = vmax.f32 %v1162_v58, %v1163_v11  ;;  %v1158_v13 = vrot.slane %v8451_v32, 2  ;;  %5097 = vmatprep.subr.bf16.mxu1 %v6668_v42 }
 0x1c1   :  { %7428 = vtanh.f32 %v1016_v2  ;;  %v738_v40 = vsel %vm8410_vm14, %v735_v15, %v732_v10  ;;  %v8456_v63 = vpop.f32.mrb[32].mxu0  ;;  %v741_v9 = vmul.f32 0.6931472, %v7421_v46  ;;  %v543_v51 = vsub.f32 0.0, %v503_v52  ;;  %v6672_v52 = vld [vmem:[#allocation7 + $0x208] ss:$16 sps:$4 sm:$0xff]  }
 0x1c2   :  { %9568 = vst [vmem:[#allocation32_spill] sm:$0xff] %v8458_v29  ;;  %7430 = vtanh.f32 %v1017_v54  ;;  %v1018_v16 = vadd.f32 %v738_v40, %v9569_v26  ;;  %v8466_v44 = vpop.f32.mrb[33].mxu0  ;;  %v8468_v50 = vpop.eup %7422  ;;  %v8471_v15 = vmax.f32 %v1095_v21, %v1169_v5  ;;  %v6670_v40 = vld [vmem:[#allocation7 + $0x20c] ss:$16 sps:$4 sm:$0xff]   ;;  %v8506_v42 = vadd.f32 %v8285_v6, %v8182_v38  ;;  %v6674_v54 = vld [vmem:[#allocation7 + $0x224] ss:$16 sps:$4 sm:$0xff]  }
 0x1c3   :  { %v748_v58 = vadd.f32 1.0, %v8468_v50  ;;  %v8479_v2 = vpop.eup %7424  ;;  %v747_v21 = vsel %vm8462_vm15, %v744_v4, %v741_v9  ;;  %v754_v10 = vand.u32 2147483647, %v8468_v50  ;;  %v597_v5 = vmul.f32 1.442695, %v543_v51  ;;  %5145 = vmatprep.subr.bf16.mxu0 %v6670_v40 }
 0x1c4   :  { %7432 = vtanh.f32 %v1018_v16  ;;  %v1019_v46 = vadd.f32 %v747_v21, %v459_v7  ;;  %v751_v4 = vmul.f32 -0.5, %v8468_v50  ;;  %v757_v16 = vadd.f32 1.0, %v8479_v2  ;;  %v6673_v21 = vld [vmem:[#allocation7 + $0x200] ss:$16 sps:$4 sm:$0xff]   ;;  %5147 = vmatpush1.bf16.msra.mxu0 %v6672_v52 }
 0x1c5   :  { %v8485_v55 = vpop.f32.mrb[34].mxu0  ;;  %7434 = vlog2.f32 %v748_v58  ;;  %v760_v25 = vmul.f32 -0.5, %v8479_v2  ;;  %v9572_v51 = vrot.slane %v8393_v30, 2  ;;  %v504_v58 = vand.u32 2147483647, %v8477_v17  ;;  %5099 = vmatpush1.bf16.msra.mxu1 %v6673_v21  ;;  %5149 = vmatprep.subr.bf16.mxu0 %v6676_v37 }
 0x1c6   :  { %v8490_v24 = vpop.f32.mrb[35].mxu0  ;;  %v8496_v9 = vpop.eup %7426  ;;  %7436 = vtanh.f32 %v1019_v46  ;;  %v763_v59 = vand.u32 2147483647, %v8479_v2  ;;  %vm8513_vm0 = vcmp.lt.f32.partialorder %v754_v10, 0.0004427343  ;;  %5101 = vmatprep.subr.bf16.mxu1 %v6674_v54  ;;  %v8534_v54 = vadd.f32 %v8305_v60, %v8182_v38 }
 0x1c7   :  { %v8501_v7 = vmax.f32 %v8393_v30, %v9572_v51  ;;  %7438 = vlog2.f32 %v757_v16  ;;  %v766_v23 = vadd.f32 1.0, %v8496_v9  ;;  %v769_v6 = vmul.f32 -0.5, %v8496_v9  ;;  %v6679_v21 = vld [vmem:[#allocation7 + $0x220] ss:$16 sps:$4 sm:$0xff]   ;;  %v6680_v60 = vld [vmem:[#allocation7 + $0x244] ss:$16 sps:$4 sm:$0xff]  }
 0x1c8   :  { %7440 = vpow2.f32 %v597_v5  ;;  %v544_v46 = vsub.f32 0.0, %v504_v58  ;;  %v752_v51 = vadd.f32 1.0, %v751_v4  ;;  %v761_v57 = vadd.f32 1.0, %v760_v25  ;;  %v6678_v25 = vld [vmem:[#allocation7 + $0x228] ss:$16 sps:$4 sm:$0xff]  }
 0x1c9   :  { %9573 = vst [vmem:[#allocation33_spill] sm:$0xff] %v8501_v7  ;;  %v8511_v26 = vpop.f32.mrb[36].mxu0  ;;  %7442 = vlog2.f32 %v766_v23  ;;  %v505_v11 = vand.u32 2147483647, %v8506_v42  ;;  %v770_v35 = vadd.f32 1.0, %v769_v6  ;;  %v8530_v23 = vadd.f32 %v8287_v0, %v8185_v39  ;;  %5103 = vmatpush1.bf16.msra.mxu1 %v6679_v21  ;;  %5151 = vmatpush1.bf16.msra.mxu0 %v6678_v25 }
 0x1ca   :  { %v8518_v40 = vpop.f32.mrb[37].mxu0  ;;  %v772_v34 = vand.u32 2147483647, %v8496_v9  ;;  %v599_v29 = vmul.f32 1.442695, %v544_v46  ;;  %v753_v7 = vmul.f32 %v8468_v50, %v752_v51  ;;  %5105 = vmatprep.subr.bf16.mxu1 %v6680_v60 }
 0x1cb   :  { %v7429_v16 = vpop.eup %7428  ;;  %vm8524_vm1 = vcmp.lt.f32.partialorder %v763_v59, 0.0004427343  ;;  %v545_v4 = vsub.f32 0.0, %v505_v11  ;;  %v8544_v11 = vmax.f32 %v8451_v32, %v1158_v13  ;;  %v506_v13 = vand.u32 2147483647, %v8530_v23 }
 0x1cc   :  { %v7431_v52 = vpop.eup %7430  ;;  %v1096_v10 = vmul.f32 %v7429_v16, %v8215_v8  ;;  %7444 = vpow2.f32 %v599_v29  ;;  %v6682_v16 = vld [vmem:[#allocation7 + $0x24c] ss:$16 sps:$4 sm:$0xff]   ;;  %vm8551_vm2 = vcmp.lt.f32.partialorder %v772_v34, 0.0004427343  ;;  %v771_v50 = vmul.f32 %v8496_v9, %v770_v35  ;;  %v6686_v29 = vld [vmem:[#allocation7 + $0x264] ss:$16 sps:$4 sm:$0xff]  }
 0x1cd   :  { %v1097_v5 = vmul.f32 %v7431_v52, %v8219_v14  ;;  %v8536_v8 = vpop.f32.mrb[38].mxu0  ;;  %v9578_v14 = vrot.slane %v8426_v33, 4  ;;  %9579 = vst [vmem:[#allocation34_spill] sm:$0xff] %v8544_v11  ;;  %v601_v41 = vmul.f32 1.442695, %v545_v4  ;;  %5153 = vmatprep.subr.bf16.mxu0 %v6682_v16  ;;  %v546_v21 = vsub.f32 0.0, %v506_v13 }
 0x1ce   :  { %v7433_v6 = vpop.eup %7432  ;;  %v1175_v0 = vsel %vm1135_vm10, %v1096_v10, -inf  ;;  %v8547_v46 = vpop.f32.mrb[39].mxu0  ;;  %v507_v51 = vand.u32 2147483647, %v8534_v54  ;;  %v6685_v4 = vld [vmem:[#allocation7 + $0x240] ss:$16 sps:$4 sm:$0xff]  }
 0x1cf   :  { %v8541_v59 = vmax.f32 %v8426_v33, %v9578_v14  ;;  %v1182_v52 = vrot.slane %v1097_v5, 4  ;;  %v1098_v37 = vmul.f32 %v7433_v6, %v8233_v45  ;;  %v6684_v33 = vld [vmem:[#allocation7 + $0x248] ss:$16 sps:$4 sm:$0xff]   ;;  %v7435_v14 = vpop.eup %7434  ;;  %v1176_v19 = vrot.slane %v1175_v0, 4  ;;  %5107 = vmatpush1.bf16.msra.mxu1 %v6685_v4 }
 0x1d0   :  { %v750_v10 = vmul.f32 0.6931472, %v7435_v14  ;;  %v762_v45 = vmul.f32 %v8479_v2, %v761_v57  ;;  %v7437_v25 = vpop.eup %7436  ;;  %7446 = vpow2.f32 %v601_v41  ;;  %v8563_v6 = vadd.f32 %v8313_v18, %v8185_v39  ;;  %5155 = vmatpush1.bf16.msra.mxu0 %v6684_v33  ;;  %v6688_v2 = vld [vmem:[#allocation7 + $0x26c] ss:$16 sps:$4 sm:$0xff]   ;;  %v6690_v9 = vld [vmem:[#allocation7 + $0x268] ss:$16 sps:$4 sm:$0xff]   ;;  %5109 = vmatprep.subr.bf16.mxu1 %v6686_v29 }
 0x1d1   :  { %v1188_v34 = vsel %vm1135_vm10, %v1098_v37, -inf  ;;  %v7439_v60 = vpop.eup %7438  ;;  %v1183_v16 = vmax.f32 %v1097_v5, %v1182_v52  ;;  %v1099_v14 = vmul.f32 %v7437_v25, %v8277_v47  ;;  %v8571_v37 = vmax.f32 %v1175_v0, %v1176_v19  ;;  %v6691_v47 = vld [vmem:[#allocation7 + $0x260] ss:$16 sps:$4 sm:$0xff]   ;;  %5157 = vmatprep.subr.bf16.mxu0 %v6688_v2  ;;  %v6692_v33 = vld [vmem:[#allocation7 + $0x284] ss:$16 sps:$4 sm:$0xff]  }
 0x1d2   :  { %v756_v35 = vsel %vm8513_vm0, %v753_v7, %v750_v10  ;;  %v8569_v41 = vpop.eup %7440  ;;  %v9582_v18 = vmax.f32 %v8311_v56, 0.0  ;;  %v759_v11 = vmul.f32 0.6931472, %v7439_v60  ;;  %v603_v5 = vmul.f32 1.442695, %v546_v21 }
 0x1d3   :  { %v7443_v52 = vpop.eup %7442  ;;  %v1189_v30 = vrot.slane %v1188_v34, 4  ;;  %v1195_v7 = vrot.slane %v1099_v14, 4  ;;  %v775_v10 = vadd.f32 1.0, %v8569_v41  ;;  %v547_v4 = vsub.f32 0.0, %v507_v51  ;;  %5111 = vmatpush1.bf16.msra.mxu1 %v6691_v47  ;;  %v6696_v51 = vld [vmem:[#allocation7 + $0x288] ss:$16 sps:$4 sm:$0xff]  }
 0x1d4   :  { %v1020_v13 = vadd.f32 %v756_v35, %v9582_v18  ;;  %v765_v19 = vsel %vm8524_vm1, %v762_v45, %v759_v11  ;;  %v768_v0 = vmul.f32 0.6931472, %v7443_v52  ;;  %v778_v25 = vmul.f32 -0.5, %v8569_v41  ;;  %v6694_v35 = vld [vmem:[#allocation7 + $0x28c] ss:$16 sps:$4 sm:$0xff]   ;;  %5159 = vmatpush1.bf16.msra.mxu0 %v6690_v9  ;;  %5113 = vmatprep.subr.bf16.mxu1 %v6692_v33 }
 0x1d5   :  { %v1184_v60 = vrot.slane %v1183_v16, 2  ;;  %v9583_v29 = vmax.f32 %v8320_v36, 0.0  ;;  %v6697_v2 = vld [vmem:[#allocation7 + $0x280] ss:$16 sps:$4 sm:$0xff]   ;;  %v1196_v58 = vmax.f32 %v1099_v14, %v1195_v7  ;;  %5161 = vmatprep.subr.bf16.mxu0 %v6694_v35  ;;  %v6698_v45 = vld [vmem:[#allocation7 + $0x2a4] ss:$16 sps:$4 sm:$0xff]   ;;  %v8585_v52 = vmax.f32 %v1188_v34, %v1189_v30 }
 0x1d6   :  { %7448 = vtanh.f32 %v1020_v13  ;;  %v7445_v57 = vpop.eup %7444  ;;  %v774_v11 = vsel %vm8551_vm2, %v771_v50, %v768_v0  ;;  %v605_v9 = vmul.f32 1.442695, %v547_v4  ;;  %v781_v18 = vand.u32 2147483647, %v8569_v41  ;;  %v6702_v30 = vld [vmem:[#allocation7 + $0x2a8] ss:$16 sps:$4 sm:$0xff]  }
 0x1d7   :  { %v1021_v21 = vadd.f32 %v765_v19, %v9583_v29  ;;  %7450 = vlog2.f32 %v775_v10  ;;  %v9584_v10 = vmax.f32 %v8353_v3, 0.0  ;;  %v6700_v19 = vld [vmem:[#allocation7 + $0x2ac] ss:$16 sps:$4 sm:$0xff]   ;;  %v779_v29 = vadd.f32 1.0, %v778_v25  ;;  %5115 = vmatpush1.bf16.msra.mxu1 %v6697_v2  ;;  %v6703_v7 = vld [vmem:[#allocation7 + $0x2a0] ss:$16 sps:$4 sm:$0xff]  }
 0x1d8   :  { %7452 = vpow2.f32 %v603_v5  ;;  %v784_v13 = vadd.f32 1.0, %v7445_v57  ;;  %v787_v14 = vmul.f32 -0.5, %v7445_v57  ;;  %v9585_v32 = vrot.slane %v8471_v15, 2  ;;  %5163 = vmatpush1.bf16.msra.mxu0 %v6696_v51  ;;  %5117 = vmatprep.subr.bf16.mxu1 %v6698_v45 }
 0x1d9   :  { %7454 = vtanh.f32 %v1021_v21  ;;  %v1022_v47 = vadd.f32 %v774_v11, %v9584_v10  ;;  %v8595_v5 = vmax.f32 %v1183_v16, %v1184_v60  ;;  %v508_v34 = vand.u32 2147483647, %v8563_v6  ;;  %5165 = vmatprep.subr.bf16.mxu0 %v6700_v19  ;;  %v6706_v21 = vld [vmem:[#allocation7 + $0x2cc] ss:$16 sps:$4 sm:$0xff]  }
 0x1da   :  { %v8593_v50 = vmax.f32 %v8471_v15, %v9585_v32  ;;  %v8598_v4 = vpop.eup %7446  ;;  %v1197_v33 = vrot.slane %v1196_v58, 2  ;;  %v790_v0 = vand.u32 2147483647, %v7445_v57  ;;  %v8602_v25 = vadd.f32 %v8328_v27, %v8182_v38  ;;  %v6704_v15 = vld [vmem:[#allocation7 + $0x2c4] ss:$16 sps:$4 sm:$0xff]  }
 0x1db   :  { %7456 = vtanh.f32 %v1022_v47  ;;  %v788_v16 = vadd.f32 1.0, %v787_v14  ;;  %v793_v35 = vadd.f32 1.0, %v8598_v4  ;;  %v796_v60 = vmul.f32 -0.5, %v8598_v4  ;;  %5119 = vmatpush1.bf16.msra.mxu1 %v6703_v7  ;;  %v6708_v47 = vld [vmem:[#allocation7 + $0x2c8] ss:$16 sps:$4 sm:$0xff]  }
 0x1dc   :  { %7458 = vlog2.f32 %v784_v13  ;;  %vm8607_vm3 = vcmp.lt.f32.partialorder %v781_v18, 0.0004427343  ;;  %v548_v13 = vsub.f32 0.0, %v508_v34  ;;  %v509_v27 = vand.u32 2147483647, %v8602_v25  ;;  %5167 = vmatpush1.bf16.msra.mxu0 %v6702_v30  ;;  %5121 = vmatprep.subr.bf16.mxu1 %v6704_v15 }
 0x1dd   :  { %7460 = vpow2.f32 %v605_v9  ;;  %v780_v11 = vmul.f32 %v8569_v41, %v779_v29  ;;  %v799_v45 = vand.u32 2147483647, %v8598_v4  ;;  %v8616_v10 = vadd.f32 %v8333_v20, %v8185_v39  ;;  %v6709_v9 = vld [vmem:[#allocation7 + $0x2c0] ss:$16 sps:$4 sm:$0xff]   ;;  %5169 = vmatprep.subr.bf16.mxu0 %v6706_v21  ;;  %v6710_v34 = vld [vmem:[#allocation7 + $0x2e4] ss:$16 sps:$4 sm:$0xff]  }
 0x1de   :  { %7462 = vlog2.f32 %v793_v35  ;;  %v8618_v19 = vmax.f32 %v1196_v58, %v1197_v33  ;;  %vm8620_vm4 = vcmp.lt.f32.partialorder %v790_v0, 0.0004427343  ;;  %v607_v29 = vmul.f32 1.442695, %v548_v13  ;;  %v6712_v58 = vld [vmem:[#allocation7 + $0x2ec] ss:$16 sps:$4 sm:$0xff]  }
 0x1df   :  { %v549_v32 = vsub.f32 0.0, %v509_v27  ;;  %v789_v30 = vmul.f32 %v7445_v57, %v788_v16  ;;  %v797_v35 = vadd.f32 1.0, %v796_v60  ;;  %v8629_v41 = vadd.f32 %v8355_v12, %v8182_v38  ;;  %5123 = vmatpush1.bf16.msra.mxu1 %v6709_v9 }
 0x1e0   :  { %v7449_v18 = vpop.eup %7448  ;;  %9588 = vst [vmem:[#allocation35_spill] sm:$0xff] %v8618_v19  ;;  %7464 = vpow2.f32 %v607_v29  ;;  %vm8632_vm5 = vcmp.lt.f32.partialorder %v799_v45, 0.0004427343  ;;  %v510_v16 = vand.u32 2147483647, %v8616_v10  ;;  %5171 = vmatpush1.bf16.msra.mxu0 %v6708_v47  ;;  %v8642_v12 = vadd.f32 %v8367_v62, %v8185_v39  ;;  %5125 = vmatprep.subr.bf16.mxu1 %v6710_v34 }
 0x1e1   :  { %v7451_v20 = vpop.eup %7450  ;;  %v1100_v7 = vmul.f32 %v7449_v18, %v8311_v56  ;;  %v609_v19 = vmul.f32 1.442695, %v549_v32  ;;  %5173 = vmatprep.subr.bf16.mxu0 %v6712_v58  ;;  %v6714_v45 = vld [vmem:[#allocation7 + $0x2e8] ss:$16 sps:$4 sm:$0xff]   ;;  %v6715_v18 = vld [vmem:[#allocation7 + $0x2e0] ss:$16 sps:$4 sm:$0xff]   ;;  %v798_v47 = vmul.f32 %v8598_v4, %v797_v35 }
 0x1e2   :  { %v7453_v33 = vpop.eup %7452  ;;  %v777_v0 = vmul.f32 0.6931472, %v7451_v20  ;;  %v9593_v20 = vmax.f32 %v8432_v61, 0.0  ;;  %v511_v4 = vand.u32 2147483647, %v8629_v41 }
 0x1e3   :  { %v7455_v13 = vpop.eup %7454  ;;  %v1201_v15 = vsel %vm1135_vm10, %v1100_v7, -inf  ;;  %v802_v56 = vadd.f32 1.0, %v7453_v33  ;;  %v805_v57 = vmul.f32 -0.5, %v7453_v33  ;;  %7466 = vpow2.f32 %v609_v19  ;;  %5127 = vmatpush1.bf16.msra.mxu1 %v6715_v18 }
 0x1e4   :  { %v1101_v60 = vmul.f32 %v7455_v13, %v8320_v36  ;;  %v783_v27 = vsel %vm8607_vm3, %v780_v11, %v777_v0  ;;  %v1202_v32 = vrot.slane %v1201_v15, 4  ;;  %v808_v19 = vand.u32 2147483647, %v7453_v33  ;;  %5175 = vmatpush1.bf16.msra.mxu0 %v6714_v45 }
 0x1e5   :  { %v7457_v29 = vpop.eup %7456  ;;  %v1023_v9 = vadd.f32 %v783_v27, %v9593_v20  ;;  %7468 = vlog2.f32 %v802_v56  ;;  %v806_v58 = vadd.f32 1.0, %v805_v57  ;;  %v550_v0 = vsub.f32 0.0, %v510_v16 }
 0x1e6   :  { %v7459_v36 = vpop.eup %7458  ;;  %v1208_v2 = vrot.slane %v1101_v60, 4  ;;  %v1102_v11 = vmul.f32 %v7457_v29, %v8353_v3  ;;  %v8651_v56 = vmax.f32 %v1201_v15, %v1202_v32  ;;  %v9594_v57 = vmax.f32 %v8477_v17, 0.0 }
 0x1e7   :  { %v7461_v7 = vpop.eup %7460  ;;  %7470 = vtanh.f32 %v1023_v9  ;;  %v786_v34 = vmul.f32 0.6931472, %v7459_v36  ;;  %v807_v45 = vmul.f32 %v7453_v33, %v806_v58  ;;  %vm8658_vm6 = vcmp.lt.f32.partialorder %v808_v19, 0.0004427343 }
 0x1e8   :  { %v1209_v13 = vmax.f32 %v1101_v60, %v1208_v2  ;;  %v1214_v27 = vsel %vm1135_vm10, %v1102_v11, -inf  ;;  %v811_v20 = vadd.f32 1.0, %v7461_v7  ;;  %v7463_v35 = vpop.eup %7462  ;;  %v814_v60 = vmul.f32 -0.5, %v7461_v7 }
 0x1e9   :  { %v1215_v3 = vrot.slane %v1214_v27, 4  ;;  %v792_v29 = vsel %vm8620_vm4, %v789_v30, %v786_v34  ;;  %v795_v18 = vmul.f32 0.6931472, %v7463_v35  ;;  %v817_v2 = vand.u32 2147483647, %v7461_v7 }
 0x1ea   :  { %v1024_v16 = vadd.f32 %v792_v29, %v9594_v57  ;;  %7472 = vlog2.f32 %v811_v20  ;;  %v611_v15 = vmul.f32 1.442695, %v550_v0  ;;  %v7465_v32 = vpop.eup %7464  ;;  %v1210_v11 = vrot.slane %v1209_v13, 2 }
 0x1eb   :  { %v801_v14 = vsel %vm8632_vm5, %v798_v47, %v795_v18  ;;  %v551_v30 = vsub.f32 0.0, %v511_v4  ;;  %v8665_v29 = vmax.f32 %v1214_v27, %v1215_v3  ;;  %v9598_v20 = vmax.f32 %v8506_v42, 0.0 }
 0x1ec   :  { %7474 = vtanh.f32 %v1024_v16  ;;  %v820_v19 = vadd.f32 1.0, %v7465_v32  ;;  %v815_v35 = vadd.f32 1.0, %v814_v60  ;;  %v823_v57 = vmul.f32 -0.5, %v7465_v32 }
 0x1ed   :  { %9597 = vst [vmem:[#allocation36_spill] sm:$0xff] %v8665_v29  ;;  %v1025_v33 = vadd.f32 %v801_v14, %v9598_v20  ;;  %v7467_v58 = vpop.eup %7466  ;;  %7476 = vpow2.f32 %v611_v15  ;;  %v613_v0 = vmul.f32 1.442695, %v551_v30  ;;  %vm8669_vm7 = vcmp.lt.f32.partialorder %v817_v2, 0.0004427343 }
 0x1ee   :  { %v829_v21 = vadd.f32 1.0, %v7467_v58  ;;  %v832_v47 = vmul.f32 -0.5, %v7467_v58  ;;  %v8673_v4 = vmax.f32 %v1209_v13, %v1210_v11  ;;  %v826_v3 = vand.u32 2147483647, %v7465_v32  ;;  %v6719_v29 = vld [vmem:[#allocation7 + $0xc] ss:$16 sps:$4 sm:$0xff]  }
 0x1ef   :  { %v7469_v9 = vpop.eup %7468  ;;  %7478 = vtanh.f32 %v1025_v33  ;;  %v824_v60 = vadd.f32 1.0, %v823_v57  ;;  %v835_v15 = vand.u32 2147483647, %v7467_v58  ;;  %v9602_v33 = vmax.f32 %v8530_v23, 0.0  ;;  %5225 = vmatprep.subr.bf16.mxu0 %v6719_v29 }
 0x1f0   :  { %9601 = vst [vmem:[#allocation37_spill] sm:$0xff] %v8673_v4  ;;  %v804_v27 = vmul.f32 0.6931472, %v7469_v9  ;;  %7480 = vlog2.f32 %v820_v19  ;;  %v833_v20 = vadd.f32 1.0, %v832_v47  ;;  %v816_v11 = vmul.f32 %v7461_v7, %v815_v35 }
 0x1f1   :  { %v7471_v18 = vpop.eup %7470  ;;  %7482 = vlog2.f32 %v829_v21  ;;  %v512_v9 = vand.u32 2147483647, %v8642_v12  ;;  %v8684_v19 = vadd.f32 %v8376_v22, %v8182_v38  ;;  %vm8686_vm8 = vcmp.lt.f32.partialorder %v826_v3, 0.0004427343 }
 0x1f2   :  { %v1103_v30 = vmul.f32 %v7471_v18, %v8432_v61  ;;  %v810_v2 = vsel %vm8658_vm6, %v807_v45, %v804_v27  ;;  %7484 = vpow2.f32 %v613_v0  ;;  %v8693_v45 = vadd.f32 %v8380_v28, %v8185_v39  ;;  %v6716_v61 = vld [vmem:[#allocation7 + $0x4] ss:$16 sps:$4 sm:$0xff]  }
 0x1f3   :  { %v1026_v13 = vadd.f32 %v810_v2, %v9602_v33  ;;  %v825_v36 = vmul.f32 %v7465_v32, %v824_v60  ;;  %vm8695_vm9 = vcmp.lt.f32.partialorder %v835_v15, 0.0004427343  ;;  %v552_v22 = vsub.f32 0.0, %v512_v9  ;;  %5177 = vmatprep.subr.bf16.mxu1 %v6716_v61 }
 0x1f4   :  { %v7473_v57 = vpop.eup %7472  ;;  %v1221_v21 = vrot.slane %v1103_v30, 4  ;;  %v834_v27 = vmul.f32 %v7467_v58, %v833_v20  ;;  %v8701_v3 = vadd.f32 %v8391_v31, %v8182_v38  ;;  %v8705_v18 = vadd.f32 %v8396_v49, %v8185_v39 }
 0x1f5   :  { %7486 = vtanh.f32 %v1026_v13  ;;  %v813_v7 = vmul.f32 0.6931472, %v7473_v57  ;;  %v513_v15 = vand.u32 2147483647, %v8684_v19  ;;  %v9607_v58 = vmax.f32 %v8534_v54, 0.0 }
 0x1f6   :  { %v7475_v0 = vpop.eup %7474  ;;  %v1222_v47 = vmax.f32 %v1103_v30, %v1221_v21  ;;  %v615_v20 = vmul.f32 1.442695, %v552_v22  ;;  %v514_v33 = vand.u32 2147483647, %v8693_v45 }
 0x1f7   :  { %v1104_v28 = vmul.f32 %v7475_v0, %v8477_v17  ;;  %v819_v32 = vsel %vm8669_vm7, %v816_v11, %v813_v7  ;;  %v7477_v2 = vpop.eup %7476 }
 0x1f8   :  { %v1027_v30 = vadd.f32 %v819_v32, %v9607_v58  ;;  %v838_v17 = vadd.f32 1.0, %v7477_v2  ;;  %v841_v9 = vmul.f32 -0.5, %v7477_v2  ;;  %v1223_v57 = vrot.slane %v1222_v47, 2 }
 0x1f9   :  { %v7479_v49 = vpop.eup %7478  ;;  %v1227_v13 = vsel %vm1135_vm10, %v1104_v28, -inf  ;;  %v844_v22 = vand.u32 2147483647, %v7477_v2  ;;  %v553_v58 = vsub.f32 0.0, %v513_v15  ;;  %v554_v28 = vsub.f32 0.0, %v514_v33 }
 0x1fa   :  { %v7481_v11 = vpop.eup %7480  ;;  %v1228_v21 = vrot.slane %v1227_v13, 4  ;;  %v1105_v7 = vmul.f32 %v7479_v49, %v8506_v42  ;;  %7488 = vtanh.f32 %v1027_v30  ;;  %v842_v62 = vadd.f32 1.0, %v841_v9 }
 0x1fb   :  { %v7483_v0 = vpop.eup %7482  ;;  %v822_v32 = vmul.f32 0.6931472, %v7481_v11  ;;  %7490 = vlog2.f32 %v838_v17  ;;  %v9608_v49 = vmax.f32 %v8563_v6, 0.0  ;;  %v9609_v33 = vmax.f32 %v8602_v25, 0.0 }
 0x1fc   :  { %v7485_v34 = vpop.eup %7484  ;;  %v1234_v31 = vrot.slane %v1105_v7, 4  ;;  %v831_v60 = vmul.f32 0.6931472, %v7483_v0  ;;  %7492 = vpow2.f32 %v615_v20  ;;  %v8721_v42 = vmax.f32 %v1227_v13, %v1228_v21 }
 0x1fd   :  { %v828_v16 = vsel %vm8686_vm8, %v825_v36, %v822_v32  ;;  %v847_v51 = vadd.f32 1.0, %v7485_v34  ;;  %v850_v4 = vmul.f32 -0.5, %v7485_v34  ;;  %v853_v36 = vand.u32 2147483647, %v7485_v34 }
 0x1fe   :  { %v1235_v30 = vmax.f32 %v1105_v7, %v1234_v31  ;;  %v1028_v17 = vadd.f32 %v828_v16, %v9608_v49  ;;  %v837_v15 = vsel %vm8695_vm9, %v834_v27, %v831_v60  ;;  %v617_v31 = vmul.f32 1.442695, %v553_v58 }
 0x1ff   :  { %v7487_v20 = vpop.eup %7486  ;;  %v1029_v11 = vadd.f32 %v837_v15, %v9609_v33  ;;  %7494 = vlog2.f32 %v847_v51  ;;  %v851_v14 = vadd.f32 1.0, %v850_v4  ;;  %v8730_v21 = vmax.f32 %v1222_v47, %v1223_v57 }
 0x200   :  { %v1236_v9 = vrot.slane %v1235_v30, 2  ;;  %v1106_v13 = vmul.f32 %v7487_v20, %v8530_v23  ;;  %7496 = vtanh.f32 %v1028_v17  ;;  %vm8732_vm11 = vcmp.lt.f32.partialorder %v844_v22, 0.0004427343 }
 0x201   :  { %7498 = vtanh.f32 %v1029_v11  ;;  %v619_v61 = vmul.f32 1.442695, %v554_v28  ;;  %v843_v60 = vmul.f32 %v7477_v2, %v842_v62  ;;  %v515_v51 = vand.u32 2147483647, %v8701_v3 }
 0x202   :  { %v1240_v27 = vsel %vm1135_vm10, %v1106_v13, -inf  ;;  %7500 = vpow2.f32 %v617_v31  ;;  %v516_v23 = vand.u32 2147483647, %v8705_v18  ;;  %v8740_v16 = vmax.f32 %v1235_v30, %v1236_v9 }
 0x203   :  { %v1241_v4 = vrot.slane %v1240_v27, 4  ;;  %7502 = vpow2.f32 %v619_v61  ;;  %v852_v57 = vmul.f32 %v7485_v34, %v851_v14  ;;  %vm8742_vm12 = vcmp.lt.f32.partialorder %v853_v36, 0.0004427343 }
 0x204   :  { %v7489_v47 = vpop.eup %7488  ;;  %v555_v0 = vsub.f32 0.0, %v515_v51  ;;  %v556_v22 = vsub.f32 0.0, %v516_v23  ;;  %v8750_v58 = vadd.f32 %v8414_v43, %v8182_v38  ;;  %v8754_v34 = vadd.f32 %v8420_v53, %v8185_v39 }
 0x205   :  { %v7491_v32 = vpop.eup %7490  ;;  %v1107_v62 = vmul.f32 %v7489_v47, %v8534_v54  ;;  %v8758_v17 = vadd.f32 %v8434_v1, %v8182_v38  ;;  %v8760_v15 = vmax.f32 %v1240_v27, %v1241_v4  ;;  %v8764_v33 = vadd.f32 %v8439_v48, %v8185_v39 }
 0x206   :  { %v7493_v28 = vpop.eup %7492  ;;  %v840_v49 = vmul.f32 0.6931472, %v7491_v32  ;;  %v621_v30 = vmul.f32 1.442695, %v555_v0  ;;  %v623_v14 = vmul.f32 1.442695, %v556_v22 }
 0x207   :  { %v1247_v54 = vrot.slane %v1107_v62, 4  ;;  %v856_v20 = vadd.f32 1.0, %v7493_v28  ;;  %v859_v11 = vmul.f32 -0.5, %v7493_v28  ;;  %v9614_v9 = vmax.f32 %v8616_v10, 0.0 }
 0x208   :  { %v846_v43 = vsel %vm8732_vm11, %v843_v60, %v840_v49  ;;  %7504 = vpow2.f32 %v621_v30  ;;  %v517_v48 = vand.u32 2147483647, %v8750_v58  ;;  %v862_v4 = vand.u32 2147483647, %v7493_v28 }
 0x209   :  { %v7495_v53 = vpop.eup %7494  ;;  %v1248_v36 = vmax.f32 %v1107_v62, %v1247_v54  ;;  %v1030_v1 = vadd.f32 %v846_v43, %v9614_v9  ;;  %7506 = vlog2.f32 %v856_v20  ;;  %v860_v62 = vadd.f32 1.0, %v859_v11 }
 0x20a   :  { %v7497_v31 = vpop.eup %7496  ;;  %v849_v61 = vmul.f32 0.6931472, %v7495_v53  ;;  %7508 = vpow2.f32 %v623_v14  ;;  %v9615_v30 = vmax.f32 %v8629_v41, 0.0  ;;  %v557_v43 = vsub.f32 0.0, %v517_v48 }
 0x20b   :  { %v7499_v35 = vpop.eup %7498  ;;  %v1108_v51 = vmul.f32 %v7497_v31, %v8563_v6  ;;  %7510 = vtanh.f32 %v1030_v1  ;;  %v1249_v47 = vrot.slane %v1248_v36, 2  ;;  %vm8781_vm13 = vcmp.lt.f32.partialorder %v862_v4, 0.0004427343 }
 0x20c   :  { %v7501_v23 = vpop.eup %7500  ;;  %v1109_v0 = vmul.f32 %v7499_v35, %v8602_v25  ;;  %v855_v32 = vsel %vm8742_vm12, %v852_v57, %v849_v61  ;;  %v518_v7 = vand.u32 2147483647, %v8754_v34  ;;  %v861_v61 = vmul.f32 %v7493_v28, %v860_v62 }
 0x20d   :  { %v7503_v22 = vpop.eup %7502  ;;  %v1253_v49 = vsel %vm1135_vm10, %v1108_v51, -inf  ;;  %v1031_v54 = vadd.f32 %v855_v32, %v9615_v30  ;;  %v865_v20 = vadd.f32 1.0, %v7501_v23  ;;  %v868_v53 = vmul.f32 -0.5, %v7501_v23 }
 0x20e   :  { %v1254_v14 = vrot.slane %v1253_v49, 4  ;;  %v1260_v6 = vrot.slane %v1109_v0, 4  ;;  %v871_v9 = vand.u32 2147483647, %v7501_v23  ;;  %v874_v1 = vadd.f32 1.0, %v7503_v22 }
 0x20f   :  { %7512 = vtanh.f32 %v1031_v54  ;;  %v877_v31 = vmul.f32 -0.5, %v7503_v22  ;;  %v880_v25 = vand.u32 2147483647, %v7503_v22  ;;  %v8786_v11 = vmax.f32 %v1248_v36, %v1249_v47 }
 0x210   :  { %v1261_v35 = vmax.f32 %v1109_v0, %v1260_v6  ;;  %7514 = vlog2.f32 %v865_v20  ;;  %v869_v48 = vadd.f32 1.0, %v868_v53  ;;  %v8788_v32 = vmax.f32 %v1253_v49, %v1254_v14 }
 0x211   :  { %7516 = vlog2.f32 %v874_v1  ;;  %vm8790_vm14 = vcmp.lt.f32.partialorder %v871_v9, 0.0004427343  ;;  %v878_v0 = vadd.f32 1.0, %v877_v31  ;;  %v625_v4 = vmul.f32 1.442695, %v557_v43 }
 0x212   :  { %v7505_v51 = vpop.eup %7504  ;;  %v1262_v6 = vrot.slane %v1261_v35, 2  ;;  %vm8794_vm15 = vcmp.lt.f32.partialorder %v880_v25, 0.0004427343  ;;  %v558_v49 = vsub.f32 0.0, %v518_v7  ;;  %v870_v9 = vmul.f32 %v7501_v23, %v869_v48 }
 0x213   :  { %v7507_v54 = vpop.eup %7506  ;;  %v883_v36 = vadd.f32 1.0, %v7505_v51  ;;  %v886_v47 = vmul.f32 -0.5, %v7505_v51  ;;  %v889_v53 = vand.u32 2147483647, %v7505_v51  ;;  %7518 = vpow2.f32 %v625_v4 }
 0x214   :  { %v7509_v28 = vpop.eup %7508  ;;  %v858_v62 = vmul.f32 0.6931472, %v7507_v54  ;;  %v9622_v27 = vmax.f32 %v8642_v12, 0.0  ;;  %v879_v2 = vmul.f32 %v7503_v22, %v878_v0  ;;  %v627_v54 = vmul.f32 1.442695, %v558_v49 }
 0x215   :  { %v7511_v14 = vpop.eup %7510  ;;  %7520 = vlog2.f32 %v883_v36  ;;  %v887_v1 = vadd.f32 1.0, %v886_v47  ;;  %v892_v60 = vadd.f32 1.0, %v7509_v28  ;;  %v895_v25 = vmul.f32 -0.5, %v7509_v28 }
 0x216   :  { %v1110_v43 = vmul.f32 %v7511_v14, %v8616_v10  ;;  %v864_v31 = vsel %vm8781_vm13, %v861_v61, %v858_v62  ;;  %v898_v29 = vand.u32 2147483647, %v7509_v28  ;;  %v8803_v4 = vmax.f32 %v1261_v35, %v1262_v6 }
 0x217   :  { %v1032_v13 = vadd.f32 %v864_v31, %v9622_v27  ;;  %7522 = vlog2.f32 %v892_v60  ;;  %v888_v7 = vmul.f32 %v7505_v51, %v887_v1  ;;  %vm8806_vm0 = vcmp.lt.f32.partialorder %v889_v53, 0.0004427343 }
 0x218   :  { %v1266_v23 = vsel %vm1135_vm10, %v1110_v43, -inf  ;;  %v896_v61 = vadd.f32 1.0, %v895_v25  ;;  %v519_v36 = vand.u32 2147483647, %v8758_v17  ;;  %vm8812_vm1 = vcmp.lt.f32.partialorder %v898_v29, 0.0004427343 }
 0x219   :  { %v7513_v10 = vpop.eup %7512  ;;  %v1267_v57 = vrot.slane %v1266_v23, 4  ;;  %7524 = vtanh.f32 %v1032_v13  ;;  %v520_v22 = vand.u32 2147483647, %v8764_v33  ;;  %v479_v6 = vmax.f32 %v8758_v17, 0.0 }
 0x21a   :  { %v7515_v47 = vpop.eup %7514  ;;  %v1111_v27 = vmul.f32 %v7513_v10, %v8629_v41  ;;  %7526 = vpow2.f32 %v627_v54  ;;  %v559_v13 = vsub.f32 0.0, %v519_v36  ;;  %v8822_v41 = vadd.f32 %v8456_v63, %v8182_v38 }
 0x21b   :  { %v7517_v35 = vpop.eup %7516  ;;  %v8817_v51 = vmax.f32 %v1266_v23, %v1267_v57  ;;  %v867_v0 = vmul.f32 0.6931472, %v7515_v47  ;;  %v560_v49 = vsub.f32 0.0, %v520_v22  ;;  %v897_v14 = vmul.f32 %v7509_v28, %v896_v61 }
 0x21c   :  { %v1273_v62 = vrot.slane %v1111_v27, 4  ;;  %v876_v53 = vmul.f32 0.6931472, %v7517_v35  ;;  %v480_v1 = vmax.f32 %v8764_v33, 0.0  ;;  %v8829_v43 = vadd.f32 %v8466_v44, %v8185_v39 }
 0x21d   :  { %v873_v29 = vsel %vm8790_vm14, %v870_v9, %v867_v0  ;;  %v7519_v31 = vpop.eup %7518  ;;  %v9627_v23 = vmax.f32 %v8684_v19, 0.0  ;;  %v9628_v28 = vmax.f32 %v8693_v45, 0.0  ;;  %v629_v36 = vmul.f32 1.442695, %v559_v13 }
 0x21e   :  { %v8832_v54 = vmax.f32 %v1111_v27, %v1273_v62  ;;  %v882_v63 = vsel %vm8794_vm15, %v879_v2, %v876_v53  ;;  %v901_v57 = vadd.f32 1.0, %v7519_v31  ;;  %v904_v61 = vmul.f32 -0.5, %v7519_v31 }
 0x21f   :  { %v1033_v10 = vadd.f32 %v873_v29, %v9627_v23  ;;  %v7521_v30 = vpop.eup %7520  ;;  %v1034_v9 = vadd.f32 %v882_v63, %v9628_v28  ;;  %v631_v47 = vmul.f32 1.442695, %v560_v49  ;;  %v521_v22 = vand.u32 2147483647, %v8822_v41 }
 0x220   :  { %v885_v44 = vmul.f32 0.6931472, %v7521_v30  ;;  %v907_v0 = vand.u32 2147483647, %v7519_v31  ;;  %v481_v20 = vmax.f32 %v8822_v41, 0.0  ;;  %v9629_v13 = vmax.f32 %v8701_v3, 0.0 }
 0x221   :  { %7528 = vtanh.f32 %v1033_v10  ;;  %v7523_v27 = vpop.eup %7522  ;;  %v561_v53 = vsub.f32 0.0, %v521_v22  ;;  %v905_v49 = vadd.f32 1.0, %v904_v61  ;;  %v522_v10 = vand.u32 2147483647, %v8829_v43 }
 0x222   :  { %7530 = vtanh.f32 %v1034_v9  ;;  %v891_v2 = vsel %vm8806_vm0, %v888_v7, %v885_v44  ;;  %v894_v62 = vmul.f32 0.6931472, %v7523_v27  ;;  %v9630_v7 = vmax.f32 %v8705_v18, 0.0 }
 0x223   :  { %7532 = vlog2.f32 %v901_v57  ;;  %v7525_v29 = vpop.eup %7524  ;;  %v1035_v23 = vadd.f32 %v891_v2, %v9629_v13  ;;  %v633_v48 = vmul.f32 1.442695, %v561_v53  ;;  %vm8858_vm2 = vcmp.lt.f32.partialorder %v907_v0, 0.0004427343 }
 0x224   :  { %7534 = vpow2.f32 %v629_v36  ;;  %v7527_v63 = vpop.eup %7526  ;;  %v1112_v30 = vmul.f32 %v7525_v29, %v8642_v12  ;;  %v900_v28 = vsel %vm8812_vm1, %v897_v14, %v894_v62  ;;  %v562_v36 = vsub.f32 0.0, %v522_v10 }
 0x225   :  { %7536 = vpow2.f32 %v631_v47  ;;  %v1036_v9 = vadd.f32 %v900_v28, %v9630_v7  ;;  %v910_v57 = vadd.f32 1.0, %v7527_v63  ;;  %v913_v44 = vmul.f32 -0.5, %v7527_v63 }
 0x226   :  { %7538 = vtanh.f32 %v1035_v23  ;;  %v1279_v22 = vsel %vm1135_vm10, %v1112_v30, -inf  ;;  %v916_v61 = vand.u32 2147483647, %v7527_v63  ;;  %v8856_v12 = vadd.f32 %v8485_v55, %v8182_v38 }
 0x227   :  { %7540 = vpow2.f32 %v633_v48  ;;  %v1280_v27 = vrot.slane %v1279_v22, 4  ;;  %v914_v2 = vadd.f32 1.0, %v913_v44  ;;  %v635_v14 = vmul.f32 1.442695, %v562_v36 }
 0x228   :  { %7542 = vtanh.f32 %v1036_v9  ;;  %v8864_v47 = vadd.f32 %v8490_v24, %v8185_v39  ;;  %v906_v53 = vmul.f32 %v7519_v31, %v905_v49  ;;  %v523_v13 = vand.u32 2147483647, %v8856_v12 }
 0x229   :  { %7544 = vlog2.f32 %v910_v57  ;;  %v8866_v62 = vmax.f32 %v1279_v22, %v1280_v27  ;;  %v915_v55 = vmul.f32 %v7527_v63, %v914_v2  ;;  %vm8870_vm3 = vcmp.lt.f32.partialorder %v916_v61, 0.0004427343 }
 0x22a   :  { %v524_v30 = vand.u32 2147483647, %v8864_v47  ;;  %v8878_v24 = vadd.f32 %v8511_v26, %v8182_v38  ;;  %7546 = vpow2.f32 %v635_v14  ;;  %v563_v49 = vsub.f32 0.0, %v523_v13 }
 0x22b   :  { %v7529_v23 = vpop.eup %7528  ;;  %v8887_v57 = vadd.f32 %v8518_v40, %v8185_v39  ;;  %v8891_v26 = vadd.f32 %v8536_v8, %v8182_v38  ;;  %v9635_v25 = vmax.f32 %v8750_v58, 0.0  ;;  %vm1683_vm13 = vcmask 1041409  }
 0x22c   :  { %v7531_v28 = vpop.eup %7530  ;;  %v1113_v31 = vmul.f32 %v7529_v23, %v8684_v19  ;;  %v8883_v9 = vsub.f32 0.0, %v524_v30  ;;  %v525_v36 = vand.u32 2147483647, %v8878_v24  ;;  %v637_v10 = vmul.f32 1.442695, %v563_v49 }
 0x22d   :  { %v7533_v63 = vpop.eup %7532  ;;  %v1114_v7 = vmul.f32 %v7531_v28, %v8693_v45  ;;  %vm4722_vm1 = vcmask 261120  }
 0x22e   :  { %v7535_v44 = vpop.eup %7534  ;;  %v1286_v22 = vrot.slane %v1113_v31, 4  ;;  %v903_v19 = vmul.f32 0.6931472, %v7533_v63 }
 0x22f   :  { %v7537_v27 = vpop.eup %7536  ;;  %v1292_v45 = vsel %vm1135_vm10, %v1114_v7, -inf  ;;  %v919_v2 = vadd.f32 1.0, %v7535_v44  ;;  %v922_v14 = vmul.f32 -0.5, %v7535_v44  ;;  %v925_v13 = vand.u32 2147483647, %v7535_v44 }
 0x230   :  { %v7539_v23 = vpop.eup %7538  ;;  %v1287_v40 = vmax.f32 %v1113_v31, %v1286_v22  ;;  %v1293_v30 = vrot.slane %v1292_v45, 4  ;;  %v909_v38 = vsel %vm8858_vm2, %v906_v53, %v903_v19  ;;  %v928_v8 = vadd.f32 1.0, %v7537_v27 }
 0x231   :  { %v7541_v28 = vpop.eup %7540  ;;  %v1115_v63 = vmul.f32 %v7539_v23, %v8701_v3  ;;  %v1037_v61 = vadd.f32 %v909_v38, %v9635_v25  ;;  %7548 = vlog2.f32 %v919_v2  ;;  %v923_v35 = vadd.f32 1.0, %v922_v14 }
 0x232   :  { %v7543_v48 = vpop.eup %7542  ;;  %v1288_v7 = vrot.slane %v1287_v40, 2  ;;  %7550 = vlog2.f32 %v928_v8  ;;  %v8902_v22 = vmax.f32 %v1292_v45, %v1293_v30  ;;  %vm8905_vm4 = vcmp.lt.f32.partialorder %v925_v13, 0.0004427343 }
 0x233   :  { %v7545_v31 = vpop.eup %7544  ;;  %v1299_v60 = vrot.slane %v1115_v63, 4  ;;  %v1116_v53 = vmul.f32 %v7543_v48, %v8705_v18  ;;  %7552 = vtanh.f32 %v1037_v61  ;;  %v924_v3 = vmul.f32 %v7535_v44, %v923_v35 }
 0x234   :  { %v912_v19 = vmul.f32 0.6931472, %v7545_v31  ;;  %v931_v25 = vmul.f32 -0.5, %v7537_v27  ;;  %v934_v49 = vand.u32 2147483647, %v7537_v27  ;;  %v937_v38 = vadd.f32 1.0, %v7541_v28  ;;  %v7547_v8 = vpop.eup %7546 }
 0x235   :  { %v1300_v2 = vmax.f32 %v1115_v63, %v1299_v60  ;;  %v1305_v14 = vsel %vm1135_vm10, %v1116_v53, -inf  ;;  %v940_v18 = vmul.f32 -0.5, %v7541_v28  ;;  %v8912_v48 = vmax.f32 %v1287_v40, %v1288_v7 }
 0x236   :  { %v1306_v29 = vrot.slane %v1305_v14, 4  ;;  %v918_v45 = vsel %vm8870_vm3, %v915_v55, %v912_v19  ;;  %v932_v30 = vadd.f32 1.0, %v931_v25  ;;  %v9638_v44 = vmax.f32 %v8754_v34, 0.0 }
 0x237   :  { %v1301_v35 = vrot.slane %v1300_v2, 2  ;;  %7554 = vlog2.f32 %v937_v38  ;;  %v1295_v13 = vrot.slane %v8902_v22, 2  ;;  %v941_v31 = vadd.f32 1.0, %v940_v18 }
 0x238   :  { %v1038_v61 = vadd.f32 %v918_v45, %v9638_v44  ;;  %v8917_v63 = vmax.f32 %v1305_v14, %v1306_v29  ;;  %v943_v60 = vand.u32 2147483647, %v7541_v28  ;;  %vm8919_vm5 = vcmp.lt.f32.partialorder %v934_v49, 0.0004427343 }
 0x239   :  { %v946_v55 = vadd.f32 1.0, %v7547_v8  ;;  %v949_v0 = vmul.f32 -0.5, %v7547_v8  ;;  %v8923_v40 = vmax.f32 %v1300_v2, %v1301_v35  ;;  %v933_v19 = vmul.f32 %v7537_v27, %v932_v30 }
 0x23a   :  { %7556 = vtanh.f32 %v1038_v61  ;;  %v952_v25 = vand.u32 2147483647, %v7547_v8  ;;  %v942_v45 = vmul.f32 %v7541_v28, %v941_v31  ;;  %v639_v29 = vmul.f32 1.442695, %v8883_v9 }
 0x23b   :  { %v7549_v38 = vpop.eup %7548  ;;  %7558 = vlog2.f32 %v946_v55  ;;  %v565_v14 = vsub.f32 0.0, %v525_v36  ;;  %vm8927_vm6 = vcmp.lt.f32.partialorder %v943_v60, 0.0004427343  ;;  %v526_v2 = vand.u32 2147483647, %v8887_v57 }
 0x23c   :  { %v7551_v18 = vpop.eup %7550  ;;  %v921_v44 = vmul.f32 0.6931472, %v7549_v38  ;;  %7560 = vpow2.f32 %v637_v10  ;;  %v950_v7 = vadd.f32 1.0, %v949_v0  ;;  %vm8935_vm7 = vcmp.lt.f32.partialorder %v952_v25, 0.0004427343 }
 0x23d   :  { %v7553_v35 = vpop.eup %7552  ;;  %v930_v61 = vmul.f32 0.6931472, %v7551_v18  ;;  %7562 = vpow2.f32 %v639_v29  ;;  %v641_v27 = vmul.f32 1.442695, %v565_v14  ;;  %v566_v30 = vsub.f32 0.0, %v526_v2 }
 0x23e   :  { %v1117_v28 = vmul.f32 %v7553_v35, %v8750_v58  ;;  %v927_v9 = vsel %vm8905_vm4, %v924_v3, %v921_v44  ;;  %v527_v60 = vand.u32 2147483647, %v8891_v26  ;;  %v8948_v3 = vadd.f32 %v8547_v46, %v8185_v39 }
 0x23f   :  { %v1039_v10 = vadd.f32 %v927_v9, %v479_v6  ;;  %v936_v31 = vsel %vm8919_vm5, %v933_v19, %v930_v61  ;;  %7564 = vpow2.f32 %v641_v27  ;;  %v643_v23 = vmul.f32 1.442695, %v566_v30 }
 0x240   :  { %v1312_v55 = vrot.slane %v1117_v28, 4  ;;  %v1040_v58 = vadd.f32 %v936_v31, %v480_v1  ;;  %v567_v25 = vsub.f32 0.0, %v527_v60  ;;  %v1152_v6 = vrot.slane %v8541_v59, 2 }
 0x241   :  { %v7555_v0 = vpop.eup %7554  ;;  %7566 = vtanh.f32 %v1039_v10  ;;  %v1282_v53 = vrot.slane %v8866_v62, 2  ;;  %v951_v29 = vmul.f32 %v7547_v8, %v950_v7  ;;  %v528_v1 = vand.u32 2147483647, %v8948_v3 }
 0x242   :  { %v1313_v19 = vmax.f32 %v1117_v28, %v1312_v55  ;;  %7568 = vtanh.f32 %v1040_v58  ;;  %v939_v38 = vmul.f32 0.6931472, %v7555_v0  ;;  %v645_v18 = vmul.f32 1.442695, %v567_v25 }
 0x243   :  { %7570 = vpow2.f32 %v643_v23  ;;  %v8954_v44 = vmax.f32 %v8541_v59, %v1152_v6  ;;  %v487_v2 = vmax.f32 %v8891_v26, 0.0  ;;  %v488_v35 = vmax.f32 %v8948_v3, 0.0 }
 0x244   :  { %v7557_v14 = vpop.eup %7556  ;;  %v945_v46 = vsel %vm8927_vm6, %v942_v45, %v939_v38  ;;  %v1314_v27 = vrot.slane %v1313_v19, 2  ;;  %7572 = vpow2.f32 %v645_v18  ;;  %v8964_v7 = vmax.f32 %v8866_v62, %v1282_v53 }
 0x245   :  { %v1118_v39 = vmul.f32 %v7557_v14, %v8754_v34  ;;  %v7559_v61 = vpop.eup %7558  ;;  %v1041_v8 = vadd.f32 %v945_v46, %v481_v20  ;;  %v568_v9 = vsub.f32 0.0, %v528_v1  ;;  %v1154_v45 = vrot.slane %v8954_v44, 1 }
 0x246   :  { %v7561_v59 = vpop.eup %7560  ;;  %v948_v34 = vmul.f32 0.6931472, %v7559_v61  ;;  %v9645_v0 = vmax.f32 %v8829_v43, 0.0  ;;  %v8974_v53 = vmax.f32 %v1313_v19, %v1314_v27  ;;  %v1284_v14 = vrot.slane %v8964_v7, 1 }
 0x247   :  { %v1318_v28 = vsel %vm1135_vm10, %v1118_v39, -inf  ;;  %v7563_v49 = vpop.eup %7562  ;;  %7574 = vtanh.f32 %v1041_v8  ;;  %v955_v10 = vadd.f32 1.0, %v7561_v59  ;;  %v958_v31 = vmul.f32 -0.5, %v7561_v59 }
 0x248   :  { %v1319_v30 = vrot.slane %v1318_v28, 4  ;;  %v954_v60 = vsel %vm8935_vm7, %v951_v29, %v948_v34  ;;  %v961_v20 = vand.u32 2147483647, %v7561_v59  ;;  %v964_v55 = vadd.f32 1.0, %v7563_v49 }
 0x249   :  { %v967_v58 = vmul.f32 -0.5, %v7563_v49  ;;  %v7565_v62 = vpop.eup %7564  ;;  %v1042_v25 = vadd.f32 %v954_v60, %v9645_v0  ;;  %7576 = vlog2.f32 %v955_v10  ;;  %v959_v6 = vadd.f32 1.0, %v958_v31 }
 0x24a   :  { %v8970_v23 = vmax.f32 %v1318_v28, %v1319_v30  ;;  %7578 = vlog2.f32 %v964_v55  ;;  %vm8978_vm8 = vcmp.lt.f32.partialorder %v961_v20, 0.0004427343  ;;  %v970_v1 = vand.u32 2147483647, %v7563_v49 }
 0x24b   :  { %v968_v38 = vadd.f32 1.0, %v967_v58  ;;  %v7567_v18 = vpop.eup %7566  ;;  %7580 = vtanh.f32 %v1042_v25  ;;  %v973_v39 = vadd.f32 1.0, %v7565_v62  ;;  %v960_v8 = vmul.f32 %v7561_v59, %v959_v6 }
 0x24c   :  { %v7569_v46 = vpop.eup %7568  ;;  %v1119_v61 = vmul.f32 %v7567_v18, %v8758_v17  ;;  %v976_v27 = vmul.f32 -0.5, %v7565_v62  ;;  %v979_v30 = vand.u32 2147483647, %v7565_v62  ;;  %v647_v10 = vmul.f32 1.442695, %v568_v9 }
 0x24d   :  { %v969_v19 = vmul.f32 %v7563_v49, %v968_v38  ;;  %v7571_v28 = vpop.eup %7570  ;;  %v1120_v34 = vmul.f32 %v7569_v46, %v8764_v33  ;;  %7582 = vlog2.f32 %v973_v39  ;;  %vm8985_vm9 = vcmp.lt.f32.partialorder %v970_v1, 0.0004427343 }
 0x24e   :  { %v1325_v31 = vrot.slane %v1119_v61, 4  ;;  %v977_v60 = vadd.f32 1.0, %v976_v27  ;;  %v982_v20 = vadd.f32 1.0, %v7571_v28  ;;  %v985_v55 = vmul.f32 -0.5, %v7571_v28  ;;  %v7573_v58 = vpop.eup %7572 }
 0x24f   :  { %v1331_v0 = vsel %vm1135_vm10, %v1120_v34, -inf  ;;  %v988_v17 = vand.u32 2147483647, %v7571_v28  ;;  %7584 = vpow2.f32 %v647_v10  ;;  %vm8989_vm11 = vcmp.lt.f32.partialorder %v979_v30, 0.0004427343 }
 0x250   :  { %v1326_v59 = vmax.f32 %v1119_v61, %v1325_v31  ;;  %v1332_v49 = vrot.slane %v1331_v0, 4  ;;  %7586 = vlog2.f32 %v982_v20  ;;  %v978_v6 = vmul.f32 %v7565_v62, %v977_v60 }
 0x251   :  { %v7575_v9 = vpop.eup %7574  ;;  %v986_v38 = vadd.f32 1.0, %v985_v55  ;;  %v991_v18 = vadd.f32 1.0, %v7573_v58  ;;  %v994_v39 = vmul.f32 -0.5, %v7573_v58  ;;  %vm8996_vm12 = vcmp.lt.f32.partialorder %v988_v17, 0.0004427343 }
 0x252   :  { %v1327_v46 = vrot.slane %v1326_v59, 2  ;;  %v8993_v27 = vmax.f32 %v1331_v0, %v1332_v49  ;;  %v1121_v1 = vmul.f32 %v7575_v9, %v8822_v41  ;;  %v997_v31 = vand.u32 2147483647, %v7573_v58 }
 0x253   :  { %v7577_v61 = vpop.eup %7576  ;;  %v987_v30 = vmul.f32 %v7571_v28, %v986_v38  ;;  %7588 = vlog2.f32 %v991_v18  ;;  %v995_v10 = vadd.f32 1.0, %v994_v39  ;;  %v1155_v55 = vmax.f32 %v8954_v44, %v1154_v45 }
 0x254   :  { %v7579_v20 = vpop.eup %7578  ;;  %v9000_v36 = vmax.f32 %v1326_v59, %v1327_v46  ;;  %v1338_v62 = vrot.slane %v1121_v1, 4  ;;  %v957_v60 = vmul.f32 0.6931472, %v7577_v61  ;;  %v1334_v41 = vrot.slane %v8993_v27, 2  ;;  %v9655_v61 = vld [vmem:[#allocation31_spill] sm:$0xff] }
 0x255   :  { %v7581_v0 = vpop.eup %7580  ;;  %v966_v17 = vmul.f32 0.6931472, %v7579_v20  ;;  %v996_v49 = vmul.f32 %v7573_v58, %v995_v10  ;;  %v1285_v9 = vmax.f32 %v8964_v7, %v1284_v14  ;;  %v9654_v39 = vmax.f32 %v8856_v12, 0.0 }
 0x256   :  { %v1339_v28 = vmax.f32 %v1121_v1, %v1338_v62  ;;  %v1122_v38 = vmul.f32 %v7581_v0, %v8829_v43  ;;  %v963_v59 = vsel %vm8978_vm8, %v960_v8, %v957_v60  ;;  %v9656_v58 = vrot.slane %v9655_v61, 2 }
 0x257   :  { %v7583_v18 = vpop.eup %7582  ;;  %v1043_v46 = vadd.f32 %v963_v59, %v9654_v39  ;;  %v972_v44 = vsel %vm8985_vm9, %v969_v19, %v966_v17  ;;  %v1685_v45 = vsel %vm1683_vm13, %v1285_v9, %v1155_v55  ;;  %v9657_v29 = vmax.f32 %v8864_v47, 0.0 }
 0x258   :  { %v1146_v7 = vmax.f32 %v9655_v61, %v9656_v58  ;;  %v1340_v14 = vrot.slane %v1339_v28, 2  ;;  %v1344_v43 = vsel %vm1135_vm10, %v1122_v38, -inf  ;;  %v975_v1 = vmul.f32 0.6931472, %v7583_v18  ;;  %4952 = vmatprep.mubr.msk.f32.mxu1 %vm1135_vm10, %v1685_v45  ;;  %4953 = vmatprep.mubr.msk.f32.mxu0 %vm1135_vm10, %v1685_v45 }
 0x259   :  { %v1044_v8 = vadd.f32 %v972_v44, %v9657_v29  ;;  %v7585_v10 = vpop.eup %7584  ;;  %v1345_v25 = vrot.slane %v1344_v43, 4  ;;  %7590 = vtanh.f32 %v1043_v46  ;;  %v9658_v20 = vrot.slane %v8832_v54, 2 }
 0x25a   :  { %v1147_v19 = vrot.slane %v1146_v7, 1  ;;  %v7587_v60 = vpop.eup %7586  ;;  %v981_v55 = vsel %vm8989_vm11, %v978_v6, %v975_v1  ;;  %vm9028_vm14 = vcmp.lt.f32.partialorder %v997_v31, 0.0004427343  ;;  %v1000_v17 = vadd.f32 1.0, %v7585_v10  ;;  %v6718_v31 = vld [vmem:[#allocation7] ss:$16 sps:$4 sm:$0xff]  }
 0x25b   :  { %v1276_v62 = vmax.f32 %v8832_v54, %v9658_v20  ;;  %7592 = vtanh.f32 %v1044_v8  ;;  %v9032_v9 = vmax.f32 %v1339_v28, %v1340_v14  ;;  %v9661_v38 = vmax.f32 %v8878_v24, 0.0 }
 0x25c   :  { %v984_v18 = vmul.f32 0.6931472, %v7587_v60  ;;  %v1003_v39 = vmul.f32 -0.5, %v7585_v10  ;;  %v9036_v46 = vmax.f32 %v1344_v43, %v1345_v25  ;;  %7594 = vlog2.f32 %v1000_v17  ;;  %v6721_v43 = vld [vmem:[#allocation7 + $0x8] ss:$16 sps:$4 sm:$0xff]  }
 0x25d   :  { %v1045_v59 = vadd.f32 %v981_v55, %v9661_v38  ;;  %v1006_v54 = vand.u32 2147483647, %v7585_v10  ;;  %v1277_v44 = vrot.slane %v1276_v62, 1  ;;  %v7589_v45 = vpop.eup %7588  ;;  %v1148_v61 = vmax.f32 %v1146_v7, %v1147_v19  ;;  %v9665_v25 = vld [vmem:[#allocation30_spill] sm:$0xff]  ;;  %v6725_v60 = vld [vmem:[#allocation7 + $0x2c] ss:$16 sps:$4 sm:$0xff]  }
 0x25e   :  { %v990_v33 = vsel %vm8996_vm12, %v987_v30, %v984_v18  ;;  %v1004_v6 = vadd.f32 1.0, %v1003_v39  ;;  %v9662_v28 = vmax.f32 %v8887_v57, 0.0  ;;  %v993_v14 = vmul.f32 0.6931472, %v7589_v45  ;;  %v6722_v19 = vld [vmem:[#allocation7 + $0x24] ss:$16 sps:$4 sm:$0xff]  }
 0x25f   :  { %7596 = vtanh.f32 %v1045_v59  ;;  %vm9042_vm15 = vcmp.lt.f32.partialorder %v1006_v54, 0.0004427343  ;;  %v1278_v8 = vmax.f32 %v1276_v62, %v1277_v44  ;;  %v9666_v20 = vrot.slane %v9665_v25, 2  ;;  %v9668_v55 = vld [vmem:[#allocation33_spill] sm:$0xff]  ;;  %v9669_v44 = vld [vmem:[#allocation32_spill] sm:$0xff] }
 0x260   :  { %v1046_v58 = vadd.f32 %v990_v33, %v9662_v28  ;;  %v9046_v1 = vmul.f32 %v7585_v10, %v1004_v6  ;;  %v9667_v30 = vrot.slane %v8817_v51, 2  ;;  %v1133_v17 = vrot.slane %v9668_v55, 1  ;;  %v9671_v33 = vld [vmem:[#allocation34_spill] sm:$0xff] }
 0x261   :  { %v1140_v34 = vmax.f32 %v9665_v25, %v9666_v20  ;;  %v999_v38 = vsel %vm9028_vm14, %v996_v49, %v993_v14  ;;  %v1684_v62 = vsel %vm1683_vm13, %v1278_v8, %v1148_v61  ;;  %v1264_v10 = vrot.slane %v8803_v4, 1  ;;  %v6728_v8 = vld [vmem:[#allocation7 + $0x44] ss:$16 sps:$4 sm:$0xff]   ;;  %v6731_v25 = vld [vmem:[#allocation7 + $0x4c] ss:$16 sps:$4 sm:$0xff]  }
 0x262   :  { %v1270_v7 = vmax.f32 %v8817_v51, %v9667_v30  ;;  %7598 = vtanh.f32 %v1046_v58  ;;  %v1047_v59 = vadd.f32 %v999_v38, %v487_v2  ;;  %1754 = vmatmul.mubr.f32.vlgmr.msra.gmra.mrb[0].mxu1 %v1684_v62  ;;  %1825 = vmatmul.mubr.f32.vlgmr.msra.gmra.mrb[40].mxu0 %v1684_v62  ;;  %v1134_v51 = vmax.f32 %v9668_v55, %v1133_v17  ;;  %v6724_v58 = vld [vmem:[#allocation7 + $0x20] ss:$16 sps:$4 sm:$0xff]  }
 0x263   :  { %v1141_v18 = vrot.slane %v1140_v34, 1  ;;  %5179 = vmatpush1.bf16.msra.mxu1 %v6718_v31  ;;  %5227 = vmatpush1.bf16.msra.mxu0 %v6721_v43  ;;  %v1265_v54 = vmax.f32 %v8803_v4, %v1264_v10  ;;  %v9670_v0 = vrot.slane %v9669_v44, 2  ;;  %v1296_v45 = vmax.f32 %v8902_v22, %v1295_v13  ;;  %v7591_v6 = vpop.eup %7590  ;;  %v6727_v31 = vld [vmem:[#allocation7 + $0x28] ss:$16 sps:$4 sm:$0xff]  }
 0x264   :  { %v1271_v39 = vrot.slane %v1270_v7, 1  ;;  %v1160_v2 = vrot.slane %v9671_v33, 1  ;;  %7600 = vtanh.f32 %v1047_v59  ;;  %5181 = vmatprep.subr.bf16.mxu1 %v6722_v19  ;;  %5229 = vmatprep.subr.bf16.mxu0 %v6725_v60  ;;  %v1290_v4 = vrot.slane %v8912_v48, 1 }
 0x265   :  { %v1166_v49 = vmax.f32 %v9669_v44, %v9670_v0  ;;  %v1142_v61 = vmax.f32 %v1140_v34, %v1141_v18  ;;  %v7593_v14 = vpop.eup %7592  ;;  %v1123_v43 = vmul.f32 %v7591_v6, %v8856_v12  ;;  %v9073_v20 = vsel %vm1683_vm13, %v1265_v54, %v1134_v51  ;;  %v6730_v12 = vld [vmem:[#allocation7 + $0x40] ss:$16 sps:$4 sm:$0xff]  }
 0x266   :  { %v1272_v28 = vmax.f32 %v1270_v7, %v1271_v39  ;;  %v1297_v13 = vrot.slane %v1296_v45, 1  ;;  %v1124_v30 = vmul.f32 %v7593_v14, %v8864_v47  ;;  %v1161_v7 = vmax.f32 %v9671_v33, %v1160_v2  ;;  %v7595_v60 = vpop.eup %7594 }
 0x267   :  { %v1167_v22 = vrot.slane %v1166_v49, 1  ;;  %v1291_v19 = vmax.f32 %v8912_v48, %v1290_v4  ;;  %v1351_v55 = vrot.slane %v1123_v43, 4  ;;  %v9672_v62 = vrot.slane %v8571_v37, 2  ;;  %5183 = vmatpush1.bf16.msra.mxu1 %v6724_v58  ;;  %5231 = vmatpush1.bf16.msra.mxu0 %v6727_v31  ;;  %v6733_v48 = vld [vmem:[#allocation7 + $0x48] ss:$16 sps:$4 sm:$0xff]  }
 0x268   :  { %v1836_v34 = vsel %vm1683_vm13, %v1272_v28, %v1142_v61  ;;  %v1298_v38 = vmax.f32 %v1296_v45, %v1297_v13  ;;  %v1357_v59 = vsel %vm1135_vm10, %v1124_v30, -inf  ;;  %v1002_v18 = vmul.f32 0.6931472, %v7595_v60  ;;  %5185 = vmatprep.subr.bf16.mxu1 %v6728_v8  ;;  %5233 = vmatprep.subr.bf16.mxu0 %v6731_v25  ;;  %v6737_v45 = vld [vmem:[#allocation7 + $0x6c] ss:$16 sps:$4 sm:$0xff]  }
 0x269   :  { %4954 = vmatprep.mubr.msk.f32.mxu1 %vm1135_vm10, %v1836_v34  ;;  %4955 = vmatprep.mubr.msk.f32.mxu0 %vm1135_vm10, %v1836_v34  ;;  %v1168_v17 = vmax.f32 %v1166_v49, %v1167_v22  ;;  %v1179_v10 = vmax.f32 %v8571_v37, %v9672_v62  ;;  %v7597_v47 = vpop.eup %7596  ;;  %v9086_v39 = vsel %vm1683_vm13, %v1291_v19, %v1161_v7  ;;  %v9673_v51 = vrot.slane %v8917_v63, 2  ;;  %v6734_v37 = vld [vmem:[#allocation7 + $0x64] ss:$16 sps:$4 sm:$0xff]   ;;  %v6736_v8 = vld [vmem:[#allocation7 + $0x60] ss:$16 sps:$4 sm:$0xff]  }
 0x26a   :  { %v1352_v44 = vmax.f32 %v1123_v43, %v1351_v55  ;;  %v1358_v0 = vrot.slane %v1357_v59, 4  ;;  %v1125_v49 = vmul.f32 %v7597_v47, %v8878_v24  ;;  %v1347_v2 = vrot.slane %v9036_v46, 2  ;;  %v6739_v25 = vld [vmem:[#allocation7 + $0x68] ss:$16 sps:$4 sm:$0xff]   ;;  %v6743_v7 = vld [vmem:[#allocation7 + $0x8c] ss:$16 sps:$4 sm:$0xff]  }
 0x26b   :  { %v1309_v54 = vmax.f32 %v8917_v63, %v9673_v51  ;;  %v9093_v33 = vsel %vm1683_vm13, %v1298_v38, %v1168_v17  ;;  %v1008_v6 = vsel %vm9042_vm15, %v9046_v1, %v1002_v18  ;;  %v1180_v61 = vrot.slane %v1179_v10, 1  ;;  %5187 = vmatpush1.bf16.msra.mxu1 %v6730_v12  ;;  %5235 = vmatpush1.bf16.msra.mxu0 %v6733_v48  ;;  %v6745_v47 = vld [vmem:[#allocation7 + $0x88] ss:$16 sps:$4 sm:$0xff]  }
 0x26c   :  { %v7599_v63 = vpop.eup %7598  ;;  %v1353_v58 = vrot.slane %v1352_v44, 2  ;;  %v1364_v31 = vrot.slane %v1125_v49, 4  ;;  %v1048_v24 = vadd.f32 %v1008_v6, %v488_v35  ;;  %v9674_v4 = vrot.slane %v8585_v52, 2  ;;  %5189 = vmatprep.subr.bf16.mxu1 %v6734_v37  ;;  %5237 = vmatprep.subr.bf16.mxu0 %v6737_v45  ;;  %v6740_v35 = vld [vmem:[#allocation7 + $0x84] ss:$16 sps:$4 sm:$0xff]  }
 0x26d   :  { %v1310_v28 = vrot.slane %v1309_v54, 1  ;;  %v1126_v43 = vmul.f32 %v7599_v63, %v8887_v57  ;;  %v1181_v29 = vmax.f32 %v1179_v10, %v1180_v61  ;;  %v1173_v22 = vrot.slane %v8593_v50, 1  ;;  %v6742_v10 = vld [vmem:[#allocation7 + $0x80] ss:$16 sps:$4 sm:$0xff]   ;;  %v6749_v37 = vld [vmem:[#allocation7 + $0xac] ss:$16 sps:$4 sm:$0xff]  }
 0x26e   :  { %v1192_v14 = vmax.f32 %v8585_v52, %v9674_v4  ;;  %v9106_v13 = vmax.f32 %v1352_v44, %v1353_v58  ;;  %v1359_v30 = vmax.f32 %v1357_v59, %v1358_v0  ;;  %v1365_v34 = vmax.f32 %v1125_v49, %v1364_v31  ;;  %v7601_v52 = vpop.eup %7600  ;;  %v6746_v49 = vld [vmem:[#allocation7 + $0xa4] ss:$16 sps:$4 sm:$0xff]  }
 0x26f   :  { %v1311_v1 = vmax.f32 %v1309_v54, %v1310_v28  ;;  %7602 = vtanh.f32 %v1048_v24  ;;  %v1370_v57 = vsel %vm1135_vm10, %v1126_v43, -inf  ;;  %v1174_v60 = vmax.f32 %v8593_v50, %v1173_v22  ;;  %5191 = vmatpush1.bf16.msra.mxu1 %v6736_v8  ;;  %5239 = vmatpush1.bf16.msra.mxu0 %v6739_v25  ;;  %v6748_v28 = vld [vmem:[#allocation7 + $0xa0] ss:$16 sps:$4 sm:$0xff]   ;;  %v6751_v43 = vld [vmem:[#allocation7 + $0xa8] ss:$16 sps:$4 sm:$0xff]  }
 0x270   :  { %v1303_v55 = vrot.slane %v8923_v40, 1  ;;  %v1366_v12 = vrot.slane %v1365_v34, 2  ;;  %v1371_v17 = vrot.slane %v1370_v57, 4  ;;  %v1127_v38 = vmul.f32 %v7601_v52, %v8891_v26  ;;  %5193 = vmatprep.subr.bf16.mxu1 %v6740_v35  ;;  %5241 = vmatprep.subr.bf16.mxu0 %v6743_v7  ;;  %v6752_v8 = vld [vmem:[#allocation7 + $0xc4] ss:$16 sps:$4 sm:$0xff]  }
 0x271   :  { %v9110_v19 = vsel %vm1683_vm13, %v1311_v1, %v1181_v29  ;;  %v1193_v62 = vrot.slane %v1192_v14, 1  ;;  %v9675_v18 = vrot.slane %v8970_v23, 2  ;;  %v1186_v51 = vrot.slane %v8595_v5, 1 }
 0x272   :  { %v1304_v59 = vmax.f32 %v8923_v40, %v1303_v55  ;;  %v1316_v50 = vrot.slane %v8974_v53, 1  ;;  %v1360_v54 = vrot.slane %v1359_v30, 2  ;;  %v9121_v44 = vmax.f32 %v1365_v34, %v1366_v12 }
 0x273   :  { %v1322_v48 = vmax.f32 %v8970_v23, %v9675_v18  ;;  %v1372_v0 = vmax.f32 %v1370_v57, %v1371_v17  ;;  %v1377_v26 = vrot.slane %v1127_v38, 4  ;;  %v1187_v6 = vmax.f32 %v8595_v5, %v1186_v51  ;;  %5195 = vmatpush1.bf16.msra.mxu1 %v6742_v10  ;;  %5243 = vmatpush1.bf16.msra.mxu0 %v6745_v47  ;;  %v6754_v17 = vld [vmem:[#allocation7 + $0xc0] ss:$16 sps:$4 sm:$0xff]  }
 0x274   :  { %v9124_v45 = vsel %vm1683_vm13, %v1304_v59, %v1174_v60  ;;  %v1317_v23 = vmax.f32 %v8974_v53, %v1316_v50  ;;  %v1194_v63 = vmax.f32 %v1192_v14, %v1193_v62  ;;  %v9676_v58 = vrot.slane %v8651_v56, 2  ;;  %v9677_v53 = vld [vmem:[#allocation36_spill] sm:$0xff]  ;;  %5197 = vmatprep.subr.bf16.mxu1 %v6746_v49  ;;  %5245 = vmatprep.subr.bf16.mxu0 %v6749_v37 }
 0x275   :  { %v1323_v40 = vrot.slane %v1322_v48, 1  ;;  %v1378_v61 = vmax.f32 %v1127_v38, %v1377_v26  ;;  %v1335_v24 = vmax.f32 %v8993_v27, %v1334_v41  ;;  %v1373_v4 = vrot.slane %v1372_v0, 2  ;;  %v9679_v27 = vld [vmem:[#allocation35_spill] sm:$0xff]  ;;  %v6757_v59 = vld [vmem:[#allocation7 + $0xc8] ss:$16 sps:$4 sm:$0xff]  }
 0x276   :  { %v1205_v31 = vmax.f32 %v8651_v56, %v9676_v58  ;;  %v9135_v5 = vsel %vm1683_vm13, %v1317_v23, %v1187_v6  ;;  %v9678_v29 = vrot.slane %v9677_v53, 2  ;;  %v6755_v56 = vld [vmem:[#allocation7 + $0xcc] ss:$16 sps:$4 sm:$0xff]   ;;  %v1199_v41 = vrot.slane %v9679_v27, 1  ;;  %v6763_v58 = vld [vmem:[#allocation7 + $0xe8] ss:$16 sps:$4 sm:$0xff]  }
 0x277   :  { %v1324_v25 = vmax.f32 %v1322_v48, %v1323_v40  ;;  %v1379_v1 = vrot.slane %v1378_v61, 2  ;;  %v1336_v34 = vrot.slane %v1335_v24, 1  ;;  %v1348_v7 = vmax.f32 %v9036_v46, %v1347_v2  ;;  %5199 = vmatpush1.bf16.msra.mxu1 %v6748_v28  ;;  %5247 = vmatpush1.bf16.msra.mxu0 %v6751_v43  ;;  %v9682_v6 = vld [vmem:[#allocation37_spill] sm:$0xff]  ;;  %v6764_v43 = vld [vmem:[#allocation7 + $0x104] ss:$16 sps:$4 sm:$0xff]  }
 0x278   :  { %v1218_v14 = vmax.f32 %v9677_v53, %v9678_v29  ;;  %v1206_v22 = vrot.slane %v1205_v31, 1  ;;  %v9680_v52 = vrot.slane %v8721_v42, 2  ;;  %v1361_v60 = vmax.f32 %v1359_v30, %v1360_v54  ;;  %5201 = vmatprep.subr.bf16.mxu1 %v6752_v8  ;;  %5249 = vmatprep.subr.bf16.mxu0 %v6755_v56  ;;  %v6761_v30 = vld [vmem:[#allocation7 + $0xec] ss:$16 sps:$4 sm:$0xff]  }
 0x279   :  { %v9142_v35 = vsel %vm1683_vm13, %v1324_v25, %v1194_v63  ;;  %v7603_v55 = vpop.eup %7602  ;;  %v9150_v12 = vmax.f32 %v1378_v61, %v1379_v1  ;;  %v1337_v62 = vmax.f32 %v1335_v24, %v1336_v34  ;;  %v1200_v10 = vmax.f32 %v9679_v27, %v1199_v41  ;;  %v6760_v63 = vld [vmem:[#allocation7 + $0xe0] ss:$16 sps:$4 sm:$0xff]   ;;  %v6767_v8 = vld [vmem:[#allocation7 + $0x10c] ss:$16 sps:$4 sm:$0xff]  }
 0x27a   :  { %v1231_v57 = vmax.f32 %v8721_v42, %v9680_v52  ;;  %v1207_v38 = vmax.f32 %v1205_v31, %v1206_v22  ;;  %v1128_v47 = vmul.f32 %v7603_v55, %v8948_v3  ;;  %v1329_v46 = vrot.slane %v9000_v36, 1  ;;  %v6758_v42 = vld [vmem:[#allocation7 + $0xe4] ss:$16 sps:$4 sm:$0xff]   ;;  %v6769_v52 = vld [vmem:[#allocation7 + $0x108] ss:$16 sps:$4 sm:$0xff]  }
 0x27b   :  { %v1219_v2 = vrot.slane %v1218_v14, 1  ;;  %v1349_v18 = vrot.slane %v1348_v7, 1  ;;  %v9681_v51 = vrot.slane %v8760_v15, 2  ;;  %v1374_v54 = vmax.f32 %v1372_v0, %v1373_v4  ;;  %5203 = vmatpush1.bf16.msra.mxu1 %v6754_v17  ;;  %5251 = vmatpush1.bf16.msra.mxu0 %v6757_v59  ;;  %v6773_v17 = vld [vmem:[#allocation7 + $0x12c] ss:$16 sps:$4 sm:$0xff]  }
 0x27c   :  { %v9156_v48 = vsel %vm1683_vm13, %v1337_v62, %v1207_v38  ;;  %v1383_v3 = vsel %vm1135_vm10, %v1128_v47, -inf  ;;  %v1330_v26 = vmax.f32 %v9000_v36, %v1329_v46  ;;  %v1212_v23 = vrot.slane %v9682_v6, 1  ;;  %5205 = vmatprep.subr.bf16.mxu1 %v6758_v42  ;;  %5253 = vmatprep.subr.bf16.mxu0 %v6761_v30 }
 0x27d   :  { %v1244_v50 = vmax.f32 %v8760_v15, %v9681_v51  ;;  %v1220_v49 = vmax.f32 %v1218_v14, %v1219_v2  ;;  %v1350_v37 = vmax.f32 %v1348_v7, %v1349_v18  ;;  %v1384_v40 = vrot.slane %v1383_v3, 4  ;;  %v6766_v7 = vld [vmem:[#allocation7 + $0x100] ss:$16 sps:$4 sm:$0xff]  }
 0x27e   :  { %v1342_v61 = vrot.slane %v9032_v9, 1  ;;  %v1232_v28 = vrot.slane %v1231_v57, 1  ;;  %v9166_v31 = vsel %vm1683_vm13, %v1330_v26, %v1200_v10  ;;  %v1362_v0 = vrot.slane %v1361_v60, 1  ;;  %v6772_v51 = vld [vmem:[#allocation7 + $0x120] ss:$16 sps:$4 sm:$0xff]  }
 0x27f   :  { %v9169_v15 = vsel %vm1683_vm13, %v1350_v37, %v1220_v49  ;;  %v1225_v36 = vrot.slane %v8730_v21, 1  ;;  %v1256_v24 = vrot.slane %v8788_v32, 2  ;;  %v1385_v4 = vmax.f32 %v1383_v3, %v1384_v40  ;;  %5207 = vmatpush1.bf16.msra.mxu1 %v6760_v63  ;;  %5255 = vmatpush1.bf16.msra.mxu0 %v6763_v58  ;;  %v6785_v63 = vld [vmem:[#allocation7 + $0x16c] ss:$16 sps:$4 sm:$0xff]   ;;  %v6788_v58 = vld [vmem:[#allocation7 + $0x304] ss:$16 sps:$4 sm:$0xff]  }
 0x280   :  { %v1213_v25 = vmax.f32 %v9682_v6, %v1212_v23  ;;  %v1343_v53 = vmax.f32 %v9032_v9, %v1342_v61  ;;  %v1233_v29 = vmax.f32 %v1231_v57, %v1232_v28  ;;  %v1363_v14 = vmax.f32 %v1361_v60, %v1362_v0  ;;  %5209 = vmatprep.subr.bf16.mxu1 %v6764_v43  ;;  %v6770_v60 = vld [vmem:[#allocation7 + $0x124] ss:$16 sps:$4 sm:$0xff]   ;;  %v6778_v6 = vld [vmem:[#allocation7 + $0x140] ss:$16 sps:$4 sm:$0xff]   ;;  %v6781_v23 = vld [vmem:[#allocation7 + $0x148] ss:$16 sps:$4 sm:$0xff]  }
 0x281   :  { %v1226_v1 = vmax.f32 %v8730_v21, %v1225_v36  ;;  %v1355_v56 = vrot.slane %v9106_v13, 1  ;;  %v1386_v22 = vrot.slane %v1385_v4, 2  ;;  %v1245_v27 = vrot.slane %v1244_v50, 1  ;;  %5257 = vmatprep.subr.bf16.mxu0 %v6767_v8  ;;  %v6782_v28 = vld [vmem:[#allocation7 + $0x164] ss:$16 sps:$4 sm:$0xff]  }
 0x282   :  { %v9178_v34 = vsel %vm1683_vm13, %v1343_v53, %v1213_v25  ;;  %v1375_v41 = vrot.slane %v1374_v54, 1  ;;  %v9181_v55 = vsel %vm1683_vm13, %v1363_v14, %v1233_v29  ;;  %v1238_v57 = vrot.slane %v8740_v16, 1  ;;  %v6791_v0 = vld [vmem:[#allocation7 + $0x30c] ss:$16 sps:$4 sm:$0xff]   ;;  %v6790_v36 = vld [vmem:[#allocation7 + $0x300] ss:$16 sps:$4 sm:$0xff]  }
 0x283   :  { %v1356_v9 = vmax.f32 %v9106_v13, %v1355_v56  ;;  %v1368_v21 = vrot.slane %v9121_v44, 1  ;;  %v1246_v38 = vmax.f32 %v1244_v50, %v1245_v27  ;;  %v1257_v10 = vmax.f32 %v8788_v32, %v1256_v24  ;;  %5211 = vmatpush1.bf16.msra.mxu1 %v6766_v7  ;;  %5259 = vmatpush1.bf16.msra.mxu0 %v6769_v52  ;;  %v6775_v32 = vld [vmem:[#allocation7 + $0x128] ss:$16 sps:$4 sm:$0xff]   ;;  %v6797_v43 = vld [vmem:[#allocation7 + $0x32c] ss:$16 sps:$4 sm:$0xff]  }
 0x284   :  { %v1376_v62 = vmax.f32 %v1374_v54, %v1375_v41  ;;  %v1239_v59 = vmax.f32 %v8740_v16, %v1238_v57  ;;  %v1387_v13 = vmax.f32 %v1385_v4, %v1386_v22  ;;  %v1251_v42 = vrot.slane %v8786_v11, 1  ;;  %5213 = vmatprep.subr.bf16.mxu1 %v6770_v60  ;;  %5261 = vmatprep.subr.bf16.mxu0 %v6773_v17  ;;  %v6776_v16 = vld [vmem:[#allocation7 + $0x144] ss:$16 sps:$4 sm:$0xff]   ;;  %v6793_v24 = vld [vmem:[#allocation7 + $0x308] ss:$16 sps:$4 sm:$0xff]  }
 0x285   :  { %v9188_v47 = vsel %vm1683_vm13, %v1356_v9, %v1226_v1  ;;  %v1369_v46 = vmax.f32 %v9121_v44, %v1368_v21  ;;  %v1258_v18 = vrot.slane %v1257_v10, 1  ;;  %v1381_v30 = vrot.slane %v9150_v12, 1  ;;  %v6779_v44 = vld [vmem:[#allocation7 + $0x14c] ss:$16 sps:$4 sm:$0xff]   ;;  %v6794_v4 = vld [vmem:[#allocation7 + $0x324] ss:$16 sps:$4 sm:$0xff]  }
 0x286   :  { %v9193_v2 = vsel %vm1683_vm13, %v1376_v62, %v1246_v38  ;;  %v1388_v54 = vrot.slane %v1387_v13, 1  ;;  %v1252_v3 = vmax.f32 %v8786_v11, %v1251_v42  ;;  %v6784_v11 = vld [vmem:[#allocation7 + $0x160] ss:$16 sps:$4 sm:$0xff]   ;;  %v6799_v25 = vld [vmem:[#allocation7 + $0x328] ss:$16 sps:$4 sm:$0xff]   ;;  %vm4821_vm3 = vcmask 64512  }
 0x287   :  { %v9198_v50 = vsel %vm1683_vm13, %v1369_v46, %v1239_v59  ;;  %v1382_v26 = vmax.f32 %v9150_v12, %v1381_v30  ;;  %v1259_v49 = vmax.f32 %v1257_v10, %v1258_v18  ;;  %5215 = vmatpush1.bf16.msra.mxu1 %v6772_v51  ;;  %5263 = vmatpush1.bf16.msra.mxu0 %v6775_v32  ;;  %v6787_v12 = vld [vmem:[#allocation7 + $0x168] ss:$16 sps:$4 sm:$0xff]   ;;  %v6796_v8 = vld [vmem:[#allocation7 + $0x320] ss:$16 sps:$4 sm:$0xff]   ;;  %v6800_v53 = vld [vmem:[#allocation7 + $0x344] ss:$16 sps:$4 sm:$0xff]  }
 0x288   :  { %v1389_v37 = vmax.f32 %v1387_v13, %v1388_v54  ;;  %5217 = vmatprep.subr.bf16.mxu1 %v6776_v16  ;;  %5265 = vmatprep.subr.bf16.mxu0 %v6779_v44  ;;  %v6803_v29 = vld [vmem:[#allocation7 + $0x34c] ss:$16 sps:$4 sm:$0xff]   ;;  %v6802_v14 = vld [vmem:[#allocation7 + $0x340] ss:$16 sps:$4 sm:$0xff]   ;;  %v6805_v1 = vld [vmem:[#allocation7 + $0x348] ss:$16 sps:$4 sm:$0xff]  }
 0x289   :  { %v9203_v40 = vsel %vm1683_vm13, %v1382_v26, %v1252_v3  ;;  %v6809_v56 = vld [vmem:[#allocation7 + $0x36c] ss:$16 sps:$4 sm:$0xff]   ;;  %v6808_v22 = vld [vmem:[#allocation7 + $0x360] ss:$16 sps:$4 sm:$0xff]   ;;  %v6811_v27 = vld [vmem:[#allocation7 + $0x368] ss:$16 sps:$4 sm:$0xff]  }
 0x28a   :  { %v9206_v61 = vsel %vm1683_vm13, %v1389_v37, %v1259_v49  ;;  %v6812_v41 = vld [vmem:[#allocation7 + $0x384] ss:$16 sps:$4 sm:$0xff]   ;;  %v6814_v7 = vld [vmem:[#allocation7 + $0x380] ss:$16 sps:$4 sm:$0xff]   ;;  %v6817_v52 = vld [vmem:[#allocation7 + $0x388] ss:$16 sps:$4 sm:$0xff]  }
 0x28b   :  { %5219 = vmatpush1.bf16.msra.mxu1 %v6778_v6  ;;  %5267 = vmatpush1.bf16.msra.mxu0 %v6781_v23  ;;  %v6818_v9 = vld [vmem:[#allocation7 + $0x3a4] ss:$16 sps:$4 sm:$0xff]   ;;  %v6821_v57 = vld [vmem:[#allocation7 + $0x3ac] ss:$16 sps:$4 sm:$0xff]   ;;  %v6820_v21 = vld [vmem:[#allocation7 + $0x3a0] ss:$16 sps:$4 sm:$0xff]  }
 0x28c   :  { %5221 = vmatprep.subr.bf16.mxu1 %v6782_v28  ;;  %5269 = vmatprep.subr.bf16.mxu0 %v6785_v63  ;;  %v6823_v60 = vld [vmem:[#allocation7 + $0x3a8] ss:$16 sps:$4 sm:$0xff]   ;;  %v6824_v17 = vld [vmem:[#allocation7 + $0x3c4] ss:$16 sps:$4 sm:$0xff]   ;;  %v6827_v38 = vld [vmem:[#allocation7 + $0x3cc] ss:$16 sps:$4 sm:$0xff]  }
 0x28d   :  { %v6826_v62 = vld [vmem:[#allocation7 + $0x3c0] ss:$16 sps:$4 sm:$0xff]   ;;  %v6829_v10 = vld [vmem:[#allocation7 + $0x3c8] ss:$16 sps:$4 sm:$0xff]   ;;  %v6830_v59 = vld [vmem:[#allocation7 + $0x3e4] ss:$16 sps:$4 sm:$0xff]  }
 0x28e   :  { %v6833_v46 = vld [vmem:[#allocation7 + $0x3ec] ss:$16 sps:$4 sm:$0xff]   ;;  %v6832_v13 = vld [vmem:[#allocation7 + $0x3e0] ss:$16 sps:$4 sm:$0xff]   ;;  %v6835_v18 = vld [vmem:[#allocation7 + $0x3e8] ss:$16 sps:$4 sm:$0xff]  }
 0x28f   :  { %5223 = vmatpush1.bf16.msra.mxu1 %v6784_v11  ;;  %5271 = vmatpush1.bf16.msra.mxu0 %v6787_v12  ;;  %v6836_v42 = vld [vmem:[#allocation7 + $0x404] ss:$16 sps:$4 sm:$0xff]   ;;  %v6839_v30 = vld [vmem:[#allocation7 + $0x40c] ss:$16 sps:$4 sm:$0xff]   ;;  %v6838_v51 = vld [vmem:[#allocation7 + $0x400] ss:$16 sps:$4 sm:$0xff]  }
 0x290   :  { %5273 = vmatprep.subr.bf16.mxu1 %v6788_v58  ;;  %5321 = vmatprep.subr.bf16.mxu0 %v6791_v0  ;;  %v6841_v32 = vld [vmem:[#allocation7 + $0x408] ss:$16 sps:$4 sm:$0xff]   ;;  %v6842_v54 = vld [vmem:[#allocation7 + $0x424] ss:$16 sps:$4 sm:$0xff]   ;;  %v6845_v16 = vld [vmem:[#allocation7 + $0x42c] ss:$16 sps:$4 sm:$0xff]  }
 0x291   :  { %v6844_v44 = vld [vmem:[#allocation7 + $0x420] ss:$16 sps:$4 sm:$0xff]   ;;  %v6847_v3 = vld [vmem:[#allocation7 + $0x428] ss:$16 sps:$4 sm:$0xff]   ;;  %v6848_v26 = vld [vmem:[#allocation7 + $0x444] ss:$16 sps:$4 sm:$0xff]  }
 0x292   :  { %1905 = vmatmul.mubr.f32.vlgmr.msra.gmra.mrb[0].mxu1 %v9073_v20  ;;  %1976 = vmatmul.mubr.f32.vlgmr.msra.gmra.mrb[40].mxu0 %v9073_v20  ;;  %v6806_v20 = vld [vmem:[#allocation7 + $0x364] ss:$16 sps:$4 sm:$0xff]   ;;  %v6851_v49 = vld [vmem:[#allocation7 + $0x44c] ss:$16 sps:$4 sm:$0xff]   ;;  %v6850_v37 = vld [vmem:[#allocation7 + $0x440] ss:$16 sps:$4 sm:$0xff]  }
 0x293   :  { %5275 = vmatpush1.bf16.msra.mxu1 %v6790_v36  ;;  %4956 = vmatprep.mubr.msk.f32.mxu1 %vm1135_vm10, %v9093_v33  ;;  %v6853_v6 = vld [vmem:[#allocation7 + $0x448] ss:$16 sps:$4 sm:$0xff]   ;;  %v6854_v23 = vld [vmem:[#allocation7 + $0x464] ss:$16 sps:$4 sm:$0xff]   ;;  %v6857_v28 = vld [vmem:[#allocation7 + $0x46c] ss:$16 sps:$4 sm:$0xff]  }
 0x294   :  { %5323 = vmatpush1.bf16.msra.mxu0 %v6793_v24  ;;  %4957 = vmatprep.mubr.msk.f32.mxu0 %vm1135_vm10, %v9093_v33  ;;  %v6815_v33 = vld [vmem:[#allocation7 + $0x38c] ss:$16 sps:$4 sm:$0xff]   ;;  %v6856_v63 = vld [vmem:[#allocation7 + $0x460] ss:$16 sps:$4 sm:$0xff]   ;;  %v6859_v11 = vld [vmem:[#allocation7 + $0x468] ss:$16 sps:$4 sm:$0xff]  }
 0x295   :  { %5277 = vmatprep.subr.bf16.mxu1 %v6794_v4  ;;  %5325 = vmatprep.subr.bf16.mxu0 %v6797_v43  ;;  %v6860_v12 = vld [vmem:[#allocation7 + $0x484] ss:$16 sps:$4 sm:$0xff]   ;;  %v6863_v58 = vld [vmem:[#allocation7 + $0x48c] ss:$16 sps:$4 sm:$0xff]   ;;  %v6862_v0 = vld [vmem:[#allocation7 + $0x480] ss:$16 sps:$4 sm:$0xff]  }
 0x296   :  { %v6865_v36 = vld [vmem:[#allocation7 + $0x488] ss:$16 sps:$4 sm:$0xff]   ;;  %v6866_v24 = vld [vmem:[#allocation7 + $0x4a4] ss:$16 sps:$4 sm:$0xff]   ;;  %v6869_v4 = vld [vmem:[#allocation7 + $0x4ac] ss:$16 sps:$4 sm:$0xff]  }
 0x297   :  { %5279 = vmatpush1.bf16.msra.mxu1 %v6796_v8  ;;  %v6868_v43 = vld [vmem:[#allocation7 + $0x4a0] ss:$16 sps:$4 sm:$0xff]   ;;  %v6871_v8 = vld [vmem:[#allocation7 + $0x4a8] ss:$16 sps:$4 sm:$0xff]  }
 0x298   :  { %5327 = vmatpush1.bf16.msra.mxu0 %v6799_v25  ;;  %5281 = vmatprep.subr.bf16.mxu1 %v6800_v53  ;;  %v6872_v25 = vld [vmem:[#allocation7 + $0x4c4] ss:$16 sps:$4 sm:$0xff]   ;;  %v6875_v53 = vld [vmem:[#allocation7 + $0x4cc] ss:$16 sps:$4 sm:$0xff]  }
 0x299   :  { %5329 = vmatprep.subr.bf16.mxu0 %v6803_v29  ;;  %v6874_v29 = vld [vmem:[#allocation7 + $0x4c0] ss:$16 sps:$4 sm:$0xff]  }
 0x29b   :  { %5283 = vmatpush1.bf16.msra.mxu1 %v6802_v14  ;;  %v6877_v14 = vld [vmem:[#allocation7 + $0x4c8] ss:$16 sps:$4 sm:$0xff]  }
 0x29c   :  { %5331 = vmatpush1.bf16.msra.mxu0 %v6805_v1  ;;  %5285 = vmatprep.subr.bf16.mxu1 %v6806_v20  ;;  %v6881_v1 = vld [vmem:[#allocation7 + $0x4ec] ss:$16 sps:$4 sm:$0xff]   ;;  %v6880_v20 = vld [vmem:[#allocation7 + $0x4e0] ss:$16 sps:$4 sm:$0xff]  }
 0x29d   :  { %5333 = vmatprep.subr.bf16.mxu0 %v6809_v56  ;;  %v6883_v56 = vld [vmem:[#allocation7 + $0x4e8] ss:$16 sps:$4 sm:$0xff]  }
 0x29f   :  { %5287 = vmatpush1.bf16.msra.mxu1 %v6808_v22  ;;  %v6884_v22 = vld [vmem:[#allocation7 + $0x504] ss:$16 sps:$4 sm:$0xff]  }
 0x2a0   :  { %5335 = vmatpush1.bf16.msra.mxu0 %v6811_v27  ;;  %5289 = vmatprep.subr.bf16.mxu1 %v6812_v41  ;;  %v6887_v27 = vld [vmem:[#allocation7 + $0x50c] ss:$16 sps:$4 sm:$0xff]   ;;  %v6889_v41 = vld [vmem:[#allocation7 + $0x508] ss:$16 sps:$4 sm:$0xff]  }
 0x2a1   :  { %5337 = vmatprep.subr.bf16.mxu0 %v6815_v33  ;;  %v6890_v33 = vld [vmem:[#allocation7 + $0x524] ss:$16 sps:$4 sm:$0xff]  }
 0x2a3   :  { %5291 = vmatpush1.bf16.msra.mxu1 %v6814_v7  ;;  %v6893_v7 = vld [vmem:[#allocation7 + $0x52c] ss:$16 sps:$4 sm:$0xff]  }
 0x2a4   :  { %5339 = vmatpush1.bf16.msra.mxu0 %v6817_v52  ;;  %5293 = vmatprep.subr.bf16.mxu1 %v6818_v9  ;;  %v6892_v52 = vld [vmem:[#allocation7 + $0x520] ss:$16 sps:$4 sm:$0xff]   ;;  %v6895_v9 = vld [vmem:[#allocation7 + $0x528] ss:$16 sps:$4 sm:$0xff]  }
 0x2a5   :  { %5341 = vmatprep.subr.bf16.mxu0 %v6821_v57  ;;  %v6896_v57 = vld [vmem:[#allocation7 + $0x544] ss:$16 sps:$4 sm:$0xff]  }
 0x2a7   :  { %5295 = vmatpush1.bf16.msra.mxu1 %v6820_v21  ;;  %v6899_v21 = vld [vmem:[#allocation7 + $0x54c] ss:$16 sps:$4 sm:$0xff]  }
 0x2a8   :  { %5343 = vmatpush1.bf16.msra.mxu0 %v6823_v60  ;;  %5297 = vmatprep.subr.bf16.mxu1 %v6824_v17  ;;  %v6898_v60 = vld [vmem:[#allocation7 + $0x540] ss:$16 sps:$4 sm:$0xff]   ;;  %v6901_v17 = vld [vmem:[#allocation7 + $0x548] ss:$16 sps:$4 sm:$0xff]  }
 0x2a9   :  { %5345 = vmatprep.subr.bf16.mxu0 %v6827_v38  ;;  %v6902_v38 = vld [vmem:[#allocation7 + $0x564] ss:$16 sps:$4 sm:$0xff]  }
 0x2ab   :  { %5299 = vmatpush1.bf16.msra.mxu1 %v6826_v62  ;;  %v6905_v62 = vld [vmem:[#allocation7 + $0x56c] ss:$16 sps:$4 sm:$0xff]  }
 0x2ac   :  { %5347 = vmatpush1.bf16.msra.mxu0 %v6829_v10  ;;  %5301 = vmatprep.subr.bf16.mxu1 %v6830_v59  ;;  %v6904_v10 = vld [vmem:[#allocation7 + $0x560] ss:$16 sps:$4 sm:$0xff]   ;;  %v6907_v59 = vld [vmem:[#allocation7 + $0x568] ss:$16 sps:$4 sm:$0xff]  }
 0x2ad   :  { %5349 = vmatprep.subr.bf16.mxu0 %v6833_v46  ;;  %v6908_v46 = vld [vmem:[#allocation7 + $0x584] ss:$16 sps:$4 sm:$0xff]  }
 0x2af   :  { %5303 = vmatpush1.bf16.msra.mxu1 %v6832_v13  ;;  %v6911_v13 = vld [vmem:[#allocation7 + $0x58c] ss:$16 sps:$4 sm:$0xff]  }
 0x2b0   :  { %5351 = vmatpush1.bf16.msra.mxu0 %v6835_v18  ;;  %5305 = vmatprep.subr.bf16.mxu1 %v6836_v42  ;;  %v6910_v18 = vld [vmem:[#allocation7 + $0x580] ss:$16 sps:$4 sm:$0xff]   ;;  %v6913_v42 = vld [vmem:[#allocation7 + $0x588] ss:$16 sps:$4 sm:$0xff]  }
 0x2b1   :  { %5353 = vmatprep.subr.bf16.mxu0 %v6839_v30  ;;  %v6914_v30 = vld [vmem:[#allocation7 + $0x5a4] ss:$16 sps:$4 sm:$0xff]  }
 0x2b3   :  { %5307 = vmatpush1.bf16.msra.mxu1 %v6838_v51  ;;  %v6917_v51 = vld [vmem:[#allocation7 + $0x5ac] ss:$16 sps:$4 sm:$0xff]  }
 0x2b4   :  { %5355 = vmatpush1.bf16.msra.mxu0 %v6841_v32  ;;  %5309 = vmatprep.subr.bf16.mxu1 %v6842_v54  ;;  %v6916_v32 = vld [vmem:[#allocation7 + $0x5a0] ss:$16 sps:$4 sm:$0xff]   ;;  %v6919_v54 = vld [vmem:[#allocation7 + $0x5a8] ss:$16 sps:$4 sm:$0xff]  }
 0x2b5   :  { %5357 = vmatprep.subr.bf16.mxu0 %v6845_v16  ;;  %v6920_v16 = vld [vmem:[#allocation7 + $0x5c4] ss:$16 sps:$4 sm:$0xff]  }
 0x2b7   :  { %5311 = vmatpush1.bf16.msra.mxu1 %v6844_v44  ;;  %v6923_v44 = vld [vmem:[#allocation7 + $0x5cc] ss:$16 sps:$4 sm:$0xff]  }
 0x2b8   :  { %5359 = vmatpush1.bf16.msra.mxu0 %v6847_v3  ;;  %5313 = vmatprep.subr.bf16.mxu1 %v6848_v26  ;;  %v6922_v3 = vld [vmem:[#allocation7 + $0x5c0] ss:$16 sps:$4 sm:$0xff]   ;;  %v6925_v26 = vld [vmem:[#allocation7 + $0x5c8] ss:$16 sps:$4 sm:$0xff]  }
 0x2b9   :  { %5361 = vmatprep.subr.bf16.mxu0 %v6851_v49  ;;  %v6926_v49 = vld [vmem:[#allocation7 + $0x5e4] ss:$16 sps:$4 sm:$0xff]  }
 0x2bb   :  { %5315 = vmatpush1.bf16.msra.mxu1 %v6850_v37  ;;  %v6929_v37 = vld [vmem:[#allocation7 + $0x5ec] ss:$16 sps:$4 sm:$0xff]  }
 0x2bc   :  { %5363 = vmatpush1.bf16.msra.mxu0 %v6853_v6  ;;  %5317 = vmatprep.subr.bf16.mxu1 %v6854_v23  ;;  %v6928_v6 = vld [vmem:[#allocation7 + $0x5e0] ss:$16 sps:$4 sm:$0xff]   ;;  %v6931_v23 = vld [vmem:[#allocation7 + $0x5e8] ss:$16 sps:$4 sm:$0xff]  }
 0x2bd   :  { %5365 = vmatprep.subr.bf16.mxu0 %v6857_v28  ;;  %v6932_v28 = vld [vmem:[#allocation7 + $0x604] ss:$16 sps:$4 sm:$0xff]  }
 0x2bf   :  { %5319 = vmatpush1.bf16.msra.mxu1 %v6856_v63  ;;  %v6935_v63 = vld [vmem:[#allocation7 + $0x60c] ss:$16 sps:$4 sm:$0xff]  }
 0x2c0   :  { %5367 = vmatpush1.bf16.msra.mxu0 %v6859_v11  ;;  %5369 = vmatprep.subr.bf16.mxu1 %v6860_v12  ;;  %v6934_v11 = vld [vmem:[#allocation7 + $0x600] ss:$16 sps:$4 sm:$0xff]   ;;  %v6937_v12 = vld [vmem:[#allocation7 + $0x608] ss:$16 sps:$4 sm:$0xff]  }
 0x2c1   :  { %5417 = vmatprep.subr.bf16.mxu0 %v6863_v58  ;;  %v6938_v58 = vld [vmem:[#allocation7 + $0x624] ss:$16 sps:$4 sm:$0xff]  }
 0x2c2   :  { %2201 = vmatmul.mubr.f32.vlgmr.msra.gmra.mrb[0].mxu1 %v9086_v39 }
 0x2c3   :  { %2272 = vmatmul.mubr.f32.vlgmr.msra.gmra.mrb[40].mxu0 %v9086_v39  ;;  %5371 = vmatpush1.bf16.msra.mxu1 %v6862_v0  ;;  %v6878_v39 = vld [vmem:[#allocation7 + $0x4e4] ss:$16 sps:$4 sm:$0xff]   ;;  %v6941_v0 = vld [vmem:[#allocation7 + $0x62c] ss:$16 sps:$4 sm:$0xff]  }
 0x2c4   :  { %4958 = vmatprep.mubr.msk.f32.mxu1 %vm1135_vm10, %v9110_v19  ;;  %5419 = vmatpush1.bf16.msra.mxu0 %v6865_v36  ;;  %v6940_v36 = vld [vmem:[#allocation7 + $0x620] ss:$16 sps:$4 sm:$0xff]  }
 0x2c5   :  { %4959 = vmatprep.mubr.msk.f32.mxu0 %vm1135_vm10, %v9110_v19  ;;  %5373 = vmatprep.subr.bf16.mxu1 %v6866_v24  ;;  %v6886_v19 = vld [vmem:[#allocation7 + $0x500] ss:$16 sps:$4 sm:$0xff]   ;;  %v6943_v24 = vld [vmem:[#allocation7 + $0x628] ss:$16 sps:$4 sm:$0xff]  }
 0x2c6   :  { %5421 = vmatprep.subr.bf16.mxu0 %v6869_v4  ;;  %v6944_v4 = vld [vmem:[#allocation7 + $0x644] ss:$16 sps:$4 sm:$0xff]  }
 0x2c7   :  { %5375 = vmatpush1.bf16.msra.mxu1 %v6868_v43  ;;  %v6947_v43 = vld [vmem:[#allocation7 + $0x64c] ss:$16 sps:$4 sm:$0xff]  }
 0x2c8   :  { %5423 = vmatpush1.bf16.msra.mxu0 %v6871_v8  ;;  %5377 = vmatprep.subr.bf16.mxu1 %v6872_v25  ;;  %v6946_v8 = vld [vmem:[#allocation7 + $0x640] ss:$16 sps:$4 sm:$0xff]   ;;  %v6949_v25 = vld [vmem:[#allocation7 + $0x648] ss:$16 sps:$4 sm:$0xff]  }
 0x2c9   :  { %5425 = vmatprep.subr.bf16.mxu0 %v6875_v53  ;;  %v6953_v53 = vld [vmem:[#allocation7 + $0x66c] ss:$16 sps:$4 sm:$0xff]  }
 0x2cb   :  { %5379 = vmatpush1.bf16.msra.mxu1 %v6874_v29  ;;  %v6952_v29 = vld [vmem:[#allocation7 + $0x660] ss:$16 sps:$4 sm:$0xff]  }
 0x2cc   :  { %5427 = vmatpush1.bf16.msra.mxu0 %v6877_v14  ;;  %5381 = vmatprep.subr.bf16.mxu1 %v6878_v39  ;;  %v6955_v14 = vld [vmem:[#allocation7 + $0x668] ss:$16 sps:$4 sm:$0xff]   ;;  %v6956_v39 = vld [vmem:[#allocation7 + $0x684] ss:$16 sps:$4 sm:$0xff]  }
 0x2cd   :  { %5429 = vmatprep.subr.bf16.mxu0 %v6881_v1  ;;  %v6959_v1 = vld [vmem:[#allocation7 + $0x68c] ss:$16 sps:$4 sm:$0xff]  }
 0x2cf   :  { %5383 = vmatpush1.bf16.msra.mxu1 %v6880_v20  ;;  %v6961_v20 = vld [vmem:[#allocation7 + $0x688] ss:$16 sps:$4 sm:$0xff]  }
 0x2d0   :  { %5431 = vmatpush1.bf16.msra.mxu0 %v6883_v56  ;;  %5385 = vmatprep.subr.bf16.mxu1 %v6884_v22  ;;  %v6962_v56 = vld [vmem:[#allocation7 + $0x6a4] ss:$16 sps:$4 sm:$0xff]   ;;  %v6965_v22 = vld [vmem:[#allocation7 + $0x6ac] ss:$16 sps:$4 sm:$0xff]  }
 0x2d1   :  { %5433 = vmatprep.subr.bf16.mxu0 %v6887_v27  ;;  %v6964_v27 = vld [vmem:[#allocation7 + $0x6a0] ss:$16 sps:$4 sm:$0xff]  }
 0x2d3   :  { %5387 = vmatpush1.bf16.msra.mxu1 %v6886_v19  ;;  %v6967_v19 = vld [vmem:[#allocation7 + $0x6a8] ss:$16 sps:$4 sm:$0xff]  }
 0x2d4   :  { %5435 = vmatpush1.bf16.msra.mxu0 %v6889_v41  ;;  %5389 = vmatprep.subr.bf16.mxu1 %v6890_v33  ;;  %v6968_v41 = vld [vmem:[#allocation7 + $0x6c4] ss:$16 sps:$4 sm:$0xff]   ;;  %v6971_v33 = vld [vmem:[#allocation7 + $0x6cc] ss:$16 sps:$4 sm:$0xff]  }
 0x2d5   :  { %5437 = vmatprep.subr.bf16.mxu0 %v6893_v7  ;;  %v6970_v7 = vld [vmem:[#allocation7 + $0x6c0] ss:$16 sps:$4 sm:$0xff]  }
 0x2d7   :  { %5391 = vmatpush1.bf16.msra.mxu1 %v6892_v52  ;;  %v6973_v52 = vld [vmem:[#allocation7 + $0x6c8] ss:$16 sps:$4 sm:$0xff]  }
 0x2d8   :  { %5439 = vmatpush1.bf16.msra.mxu0 %v6895_v9  ;;  %5393 = vmatprep.subr.bf16.mxu1 %v6896_v57  ;;  %v6974_v9 = vld [vmem:[#allocation7 + $0x6e4] ss:$16 sps:$4 sm:$0xff]   ;;  %v6977_v57 = vld [vmem:[#allocation7 + $0x6ec] ss:$16 sps:$4 sm:$0xff]  }
 0x2d9   :  { %5441 = vmatprep.subr.bf16.mxu0 %v6899_v21  ;;  %v6976_v21 = vld [vmem:[#allocation7 + $0x6e0] ss:$16 sps:$4 sm:$0xff]  }
 0x2db   :  { %5395 = vmatpush1.bf16.msra.mxu1 %v6898_v60  ;;  %v6979_v60 = vld [vmem:[#allocation7 + $0x6e8] ss:$16 sps:$4 sm:$0xff]  }
 0x2dc   :  { %5443 = vmatpush1.bf16.msra.mxu0 %v6901_v17  ;;  %5397 = vmatprep.subr.bf16.mxu1 %v6902_v38  ;;  %v6980_v17 = vld [vmem:[#allocation7 + $0x704] ss:$16 sps:$4 sm:$0xff]   ;;  %v6983_v38 = vld [vmem:[#allocation7 + $0x70c] ss:$16 sps:$4 sm:$0xff]  }
 0x2dd   :  { %5445 = vmatprep.subr.bf16.mxu0 %v6905_v62  ;;  %v6982_v62 = vld [vmem:[#allocation7 + $0x700] ss:$16 sps:$4 sm:$0xff]  }
 0x2df   :  { %5399 = vmatpush1.bf16.msra.mxu1 %v6904_v10  ;;  %v6985_v10 = vld [vmem:[#allocation7 + $0x708] ss:$16 sps:$4 sm:$0xff]  }
 0x2e0   :  { %5447 = vmatpush1.bf16.msra.mxu0 %v6907_v59  ;;  %5401 = vmatprep.subr.bf16.mxu1 %v6908_v46  ;;  %v6986_v59 = vld [vmem:[#allocation7 + $0x724] ss:$16 sps:$4 sm:$0xff]   ;;  %v6989_v46 = vld [vmem:[#allocation7 + $0x72c] ss:$16 sps:$4 sm:$0xff]  }
 0x2e1   :  { %5449 = vmatprep.subr.bf16.mxu0 %v6911_v13  ;;  %v6988_v13 = vld [vmem:[#allocation7 + $0x720] ss:$16 sps:$4 sm:$0xff]  }
 0x2e3   :  { %5403 = vmatpush1.bf16.msra.mxu1 %v6910_v18  ;;  %v6991_v18 = vld [vmem:[#allocation7 + $0x728] ss:$16 sps:$4 sm:$0xff]  }
 0x2e4   :  { %5451 = vmatpush1.bf16.msra.mxu0 %v6913_v42  ;;  %5405 = vmatprep.subr.bf16.mxu1 %v6914_v30  ;;  %v6992_v42 = vld [vmem:[#allocation7 + $0x744] ss:$16 sps:$4 sm:$0xff]   ;;  %v6995_v30 = vld [vmem:[#allocation7 + $0x74c] ss:$16 sps:$4 sm:$0xff]  }
 0x2e5   :  { %5453 = vmatprep.subr.bf16.mxu0 %v6917_v51  ;;  %v6994_v51 = vld [vmem:[#allocation7 + $0x740] ss:$16 sps:$4 sm:$0xff]  }
 0x2e7   :  { %5407 = vmatpush1.bf16.msra.mxu1 %v6916_v32  ;;  %v6997_v32 = vld [vmem:[#allocation7 + $0x748] ss:$16 sps:$4 sm:$0xff]  }
 0x2e8   :  { %5455 = vmatpush1.bf16.msra.mxu0 %v6919_v54  ;;  %5409 = vmatprep.subr.bf16.mxu1 %v6920_v16  ;;  %v6998_v54 = vld [vmem:[#allocation7 + $0x764] ss:$16 sps:$4 sm:$0xff]   ;;  %v7001_v16 = vld [vmem:[#allocation7 + $0x76c] ss:$16 sps:$4 sm:$0xff]  }
 0x2e9   :  { %5457 = vmatprep.subr.bf16.mxu0 %v6923_v44  ;;  %v7000_v44 = vld [vmem:[#allocation7 + $0x760] ss:$16 sps:$4 sm:$0xff]  }
 0x2eb   :  { %5411 = vmatpush1.bf16.msra.mxu1 %v6922_v3  ;;  %v7003_v3 = vld [vmem:[#allocation7 + $0x768] ss:$16 sps:$4 sm:$0xff]  }
 0x2ec   :  { %5459 = vmatpush1.bf16.msra.mxu0 %v6925_v26  ;;  %5413 = vmatprep.subr.bf16.mxu1 %v6926_v49  ;;  %v7004_v26 = vld [vmem:[#allocation7 + $0x784] ss:$16 sps:$4 sm:$0xff]   ;;  %v7007_v49 = vld [vmem:[#allocation7 + $0x78c] ss:$16 sps:$4 sm:$0xff]  }
 0x2ed   :  { %5461 = vmatprep.subr.bf16.mxu0 %v6929_v37  ;;  %v7006_v37 = vld [vmem:[#allocation7 + $0x780] ss:$16 sps:$4 sm:$0xff]  }
 0x2ef   :  { %5415 = vmatpush1.bf16.msra.mxu1 %v6928_v6  ;;  %v7009_v6 = vld [vmem:[#allocation7 + $0x788] ss:$16 sps:$4 sm:$0xff]  }
 0x2f0   :  { %5463 = vmatpush1.bf16.msra.mxu0 %v6931_v23  ;;  %5465 = vmatprep.subr.bf16.mxu1 %v6932_v28  ;;  %v7010_v23 = vld [vmem:[#allocation7 + $0x7a4] ss:$16 sps:$4 sm:$0xff]   ;;  %v7013_v28 = vld [vmem:[#allocation7 + $0x7ac] ss:$16 sps:$4 sm:$0xff]  }
 0x2f1   :  { %5513 = vmatprep.subr.bf16.mxu0 %v6935_v63  ;;  %v7012_v63 = vld [vmem:[#allocation7 + $0x7a0] ss:$16 sps:$4 sm:$0xff]  }
 0x2f2   :  { %2501 = vmatmul.mubr.f32.vlgmr.msra.gmra.mrb[0].mxu1 %v9124_v45 }
 0x2f3   :  { %2572 = vmatmul.mubr.f32.vlgmr.msra.gmra.mrb[40].mxu0 %v9124_v45  ;;  %5467 = vmatpush1.bf16.msra.mxu1 %v6934_v11  ;;  %v6950_v45 = vld [vmem:[#allocation7 + $0x664] ss:$16 sps:$4 sm:$0xff]   ;;  %v7015_v11 = vld [vmem:[#allocation7 + $0x7a8] ss:$16 sps:$4 sm:$0xff]  }
 0x2f4   :  { %4960 = vmatprep.mubr.msk.f32.mxu1 %vm1135_vm10, %v9142_v35  ;;  %5515 = vmatpush1.bf16.msra.mxu0 %v6937_v12  ;;  %v7016_v12 = vld [vmem:[#allocation7 + $0x7c4] ss:$16 sps:$4 sm:$0xff]  }
 0x2f5   :  { %4961 = vmatprep.mubr.msk.f32.mxu0 %vm1135_vm10, %v9142_v35  ;;  %5469 = vmatprep.subr.bf16.mxu1 %v6938_v58  ;;  %v6958_v35 = vld [vmem:[#allocation7 + $0x680] ss:$16 sps:$4 sm:$0xff]   ;;  %v7019_v58 = vld [vmem:[#allocation7 + $0x7cc] ss:$16 sps:$4 sm:$0xff]  }
 0x2f6   :  { %5517 = vmatprep.subr.bf16.mxu0 %v6941_v0  ;;  %v7018_v0 = vld [vmem:[#allocation7 + $0x7c0] ss:$16 sps:$4 sm:$0xff]  }
 0x2f7   :  { %5471 = vmatpush1.bf16.msra.mxu1 %v6940_v36  ;;  %v7021_v36 = vld [vmem:[#allocation7 + $0x7c8] ss:$16 sps:$4 sm:$0xff]  }
 0x2f8   :  { %5519 = vmatpush1.bf16.msra.mxu0 %v6943_v24  ;;  %5473 = vmatprep.subr.bf16.mxu1 %v6944_v4  ;;  %v7025_v24 = vld [vmem:[#allocation7 + $0x7ec] ss:$16 sps:$4 sm:$0xff]   ;;  %v7024_v4 = vld [vmem:[#allocation7 + $0x7e0] ss:$16 sps:$4 sm:$0xff]  }
 0x2f9   :  { %5521 = vmatprep.subr.bf16.mxu0 %v6947_v43  ;;  %v7027_v43 = vld [vmem:[#allocation7 + $0x7e8] ss:$16 sps:$4 sm:$0xff]  }
 0x2fb   :  { %5475 = vmatpush1.bf16.msra.mxu1 %v6946_v8  ;;  %v7028_v8 = vld [vmem:[#allocation7 + $0x804] ss:$16 sps:$4 sm:$0xff]  }
 0x2fc   :  { %5523 = vmatpush1.bf16.msra.mxu0 %v6949_v25  ;;  %5477 = vmatprep.subr.bf16.mxu1 %v6950_v45  ;;  %v7031_v25 = vld [vmem:[#allocation7 + $0x80c] ss:$16 sps:$4 sm:$0xff]   ;;  %v7033_v45 = vld [vmem:[#allocation7 + $0x808] ss:$16 sps:$4 sm:$0xff]  }
 0x2fd   :  { %5525 = vmatprep.subr.bf16.mxu0 %v6953_v53  ;;  %v7034_v53 = vld [vmem:[#allocation7 + $0x824] ss:$16 sps:$4 sm:$0xff]  }
 0x2ff   :  { %5479 = vmatpush1.bf16.msra.mxu1 %v6952_v29  ;;  %v7037_v29 = vld [vmem:[#allocation7 + $0x82c] ss:$16 sps:$4 sm:$0xff]  }
 0x300   :  { %5527 = vmatpush1.bf16.msra.mxu0 %v6955_v14  ;;  %5481 = vmatprep.subr.bf16.mxu1 %v6956_v39  ;;  %v7036_v14 = vld [vmem:[#allocation7 + $0x820] ss:$16 sps:$4 sm:$0xff]   ;;  %v7039_v39 = vld [vmem:[#allocation7 + $0x828] ss:$16 sps:$4 sm:$0xff]  }
 0x301   :  { %5529 = vmatprep.subr.bf16.mxu0 %v6959_v1  ;;  %v7040_v1 = vld [vmem:[#allocation7 + $0x844] ss:$16 sps:$4 sm:$0xff]  }
 0x303   :  { %5483 = vmatpush1.bf16.msra.mxu1 %v6958_v35  ;;  %v7043_v35 = vld [vmem:[#allocation7 + $0x84c] ss:$16 sps:$4 sm:$0xff]  }
 0x304   :  { %5531 = vmatpush1.bf16.msra.mxu0 %v6961_v20  ;;  %5485 = vmatprep.subr.bf16.mxu1 %v6962_v56  ;;  %v7042_v20 = vld [vmem:[#allocation7 + $0x840] ss:$16 sps:$4 sm:$0xff]   ;;  %v7045_v56 = vld [vmem:[#allocation7 + $0x848] ss:$16 sps:$4 sm:$0xff]  }
 0x305   :  { %5533 = vmatprep.subr.bf16.mxu0 %v6965_v22  ;;  %v7046_v22 = vld [vmem:[#allocation7 + $0x864] ss:$16 sps:$4 sm:$0xff]  }
 0x307   :  { %5487 = vmatpush1.bf16.msra.mxu1 %v6964_v27  ;;  %v7049_v27 = vld [vmem:[#allocation7 + $0x86c] ss:$16 sps:$4 sm:$0xff]  }
 0x308   :  { %5535 = vmatpush1.bf16.msra.mxu0 %v6967_v19  ;;  %5489 = vmatprep.subr.bf16.mxu1 %v6968_v41  ;;  %v7048_v19 = vld [vmem:[#allocation7 + $0x860] ss:$16 sps:$4 sm:$0xff]   ;;  %v7051_v41 = vld [vmem:[#allocation7 + $0x868] ss:$16 sps:$4 sm:$0xff]  }
 0x309   :  { %5537 = vmatprep.subr.bf16.mxu0 %v6971_v33  ;;  %v7052_v33 = vld [vmem:[#allocation7 + $0x884] ss:$16 sps:$4 sm:$0xff]  }
 0x30b   :  { %5491 = vmatpush1.bf16.msra.mxu1 %v6970_v7  ;;  %v7055_v7 = vld [vmem:[#allocation7 + $0x88c] ss:$16 sps:$4 sm:$0xff]  }
 0x30c   :  { %5539 = vmatpush1.bf16.msra.mxu0 %v6973_v52  ;;  %5493 = vmatprep.subr.bf16.mxu1 %v6974_v9  ;;  %v7054_v52 = vld [vmem:[#allocation7 + $0x880] ss:$16 sps:$4 sm:$0xff]   ;;  %v7057_v9 = vld [vmem:[#allocation7 + $0x888] ss:$16 sps:$4 sm:$0xff]  }
 0x30d   :  { %5541 = vmatprep.subr.bf16.mxu0 %v6977_v57  ;;  %v7058_v57 = vld [vmem:[#allocation7 + $0x8a4] ss:$16 sps:$4 sm:$0xff]  }
 0x30f   :  { %5495 = vmatpush1.bf16.msra.mxu1 %v6976_v21  ;;  %v7061_v21 = vld [vmem:[#allocation7 + $0x8ac] ss:$16 sps:$4 sm:$0xff]  }
 0x310   :  { %5543 = vmatpush1.bf16.msra.mxu0 %v6979_v60  ;;  %5497 = vmatprep.subr.bf16.mxu1 %v6980_v17  ;;  %v7060_v60 = vld [vmem:[#allocation7 + $0x8a0] ss:$16 sps:$4 sm:$0xff]   ;;  %v7063_v17 = vld [vmem:[#allocation7 + $0x8a8] ss:$16 sps:$4 sm:$0xff]  }
 0x311   :  { %5545 = vmatprep.subr.bf16.mxu0 %v6983_v38  ;;  %v7064_v38 = vld [vmem:[#allocation7 + $0x8c4] ss:$16 sps:$4 sm:$0xff]  }
 0x313   :  { %5499 = vmatpush1.bf16.msra.mxu1 %v6982_v62  ;;  %v7067_v62 = vld [vmem:[#allocation7 + $0x8cc] ss:$16 sps:$4 sm:$0xff]  }
 0x314   :  { %5547 = vmatpush1.bf16.msra.mxu0 %v6985_v10  ;;  %5501 = vmatprep.subr.bf16.mxu1 %v6986_v59  ;;  %v7066_v10 = vld [vmem:[#allocation7 + $0x8c0] ss:$16 sps:$4 sm:$0xff]   ;;  %v7069_v59 = vld [vmem:[#allocation7 + $0x8c8] ss:$16 sps:$4 sm:$0xff]  }
 0x315   :  { %5549 = vmatprep.subr.bf16.mxu0 %v6989_v46  ;;  %v7070_v46 = vld [vmem:[#allocation7 + $0x8e4] ss:$16 sps:$4 sm:$0xff]  }
 0x317   :  { %5503 = vmatpush1.bf16.msra.mxu1 %v6988_v13  ;;  %v7073_v13 = vld [vmem:[#allocation7 + $0x8ec] ss:$16 sps:$4 sm:$0xff]  }
 0x318   :  { %5551 = vmatpush1.bf16.msra.mxu0 %v6991_v18  ;;  %5505 = vmatprep.subr.bf16.mxu1 %v6992_v42  ;;  %v7072_v18 = vld [vmem:[#allocation7 + $0x8e0] ss:$16 sps:$4 sm:$0xff]   ;;  %v7075_v42 = vld [vmem:[#allocation7 + $0x8e8] ss:$16 sps:$4 sm:$0xff]  }
 0x319   :  { %5553 = vmatprep.subr.bf16.mxu0 %v6995_v30  ;;  %v7076_v30 = vld [vmem:[#allocation7 + $0x904] ss:$16 sps:$4 sm:$0xff]  }
 0x31b   :  { %5507 = vmatpush1.bf16.msra.mxu1 %v6994_v51  ;;  %v7079_v51 = vld [vmem:[#allocation7 + $0x90c] ss:$16 sps:$4 sm:$0xff]  }
 0x31c   :  { %5555 = vmatpush1.bf16.msra.mxu0 %v6997_v32  ;;  %5509 = vmatprep.subr.bf16.mxu1 %v6998_v54  ;;  %v7078_v32 = vld [vmem:[#allocation7 + $0x900] ss:$16 sps:$4 sm:$0xff]   ;;  %v7081_v54 = vld [vmem:[#allocation7 + $0x908] ss:$16 sps:$4 sm:$0xff]  }
 0x31d   :  { %5557 = vmatprep.subr.bf16.mxu0 %v7001_v16  ;;  %v7082_v16 = vld [vmem:[#allocation7 + $0x924] ss:$16 sps:$4 sm:$0xff]  }
 0x31f   :  { %5511 = vmatpush1.bf16.msra.mxu1 %v7000_v44  ;;  %v7085_v44 = vld [vmem:[#allocation7 + $0x92c] ss:$16 sps:$4 sm:$0xff]  }
 0x320   :  { %5559 = vmatpush1.bf16.msra.mxu0 %v7003_v3  ;;  %5561 = vmatprep.subr.bf16.mxu1 %v7004_v26  ;;  %v7084_v3 = vld [vmem:[#allocation7 + $0x920] ss:$16 sps:$4 sm:$0xff]   ;;  %v7087_v26 = vld [vmem:[#allocation7 + $0x928] ss:$16 sps:$4 sm:$0xff]  }
 0x321   :  { %5609 = vmatprep.subr.bf16.mxu0 %v7007_v49  ;;  %v7088_v49 = vld [vmem:[#allocation7 + $0x944] ss:$16 sps:$4 sm:$0xff]  }
 0x322   :  { %2801 = vmatmul.mubr.f32.vlgmr.msra.gmra.mrb[0].mxu1 %v9135_v5 }
 0x323   :  { %2872 = vmatmul.mubr.f32.vlgmr.msra.gmra.mrb[40].mxu0 %v9135_v5  ;;  %5563 = vmatpush1.bf16.msra.mxu1 %v7006_v37  ;;  %v7022_v5 = vld [vmem:[#allocation7 + $0x7e4] ss:$16 sps:$4 sm:$0xff]   ;;  %v7091_v37 = vld [vmem:[#allocation7 + $0x94c] ss:$16 sps:$4 sm:$0xff]  }
 0x324   :  { %4962 = vmatprep.mubr.msk.f32.mxu1 %vm1135_vm10, %v9156_v48  ;;  %5611 = vmatpush1.bf16.msra.mxu0 %v7009_v6  ;;  %v7090_v6 = vld [vmem:[#allocation7 + $0x940] ss:$16 sps:$4 sm:$0xff]  }
 0x325   :  { %4963 = vmatprep.mubr.msk.f32.mxu0 %vm1135_vm10, %v9156_v48  ;;  %5565 = vmatprep.subr.bf16.mxu1 %v7010_v23  ;;  %v7030_v48 = vld [vmem:[#allocation7 + $0x800] ss:$16 sps:$4 sm:$0xff]   ;;  %v7093_v23 = vld [vmem:[#allocation7 + $0x948] ss:$16 sps:$4 sm:$0xff]  }
 0x326   :  { %5613 = vmatprep.subr.bf16.mxu0 %v7013_v28  ;;  %v7097_v28 = vld [vmem:[#allocation7 + $0x96c] ss:$16 sps:$4 sm:$0xff]  }
 0x327   :  { %5567 = vmatpush1.bf16.msra.mxu1 %v7012_v63  ;;  %v7096_v63 = vld [vmem:[#allocation7 + $0x960] ss:$16 sps:$4 sm:$0xff]  }
 0x328   :  { %5615 = vmatpush1.bf16.msra.mxu0 %v7015_v11  ;;  %5569 = vmatprep.subr.bf16.mxu1 %v7016_v12  ;;  %v7099_v11 = vld [vmem:[#allocation7 + $0x968] ss:$16 sps:$4 sm:$0xff]   ;;  %v7100_v12 = vld [vmem:[#allocation7 + $0x984] ss:$16 sps:$4 sm:$0xff]  }
 0x329   :  { %5617 = vmatprep.subr.bf16.mxu0 %v7019_v58  ;;  %v7103_v58 = vld [vmem:[#allocation7 + $0x98c] ss:$16 sps:$4 sm:$0xff]  }
 0x32b   :  { %5571 = vmatpush1.bf16.msra.mxu1 %v7018_v0  ;;  %v7105_v0 = vld [vmem:[#allocation7 + $0x988] ss:$16 sps:$4 sm:$0xff]  }
 0x32c   :  { %5619 = vmatpush1.bf16.msra.mxu0 %v7021_v36  ;;  %5573 = vmatprep.subr.bf16.mxu1 %v7022_v5  ;;  %v7106_v36 = vld [vmem:[#allocation7 + $0x9a4] ss:$16 sps:$4 sm:$0xff]   ;;  %v7109_v5 = vld [vmem:[#allocation7 + $0x9ac] ss:$16 sps:$4 sm:$0xff]  }
 0x32d   :  { %5621 = vmatprep.subr.bf16.mxu0 %v7025_v24  ;;  %v7108_v24 = vld [vmem:[#allocation7 + $0x9a0] ss:$16 sps:$4 sm:$0xff]  }
 0x32f   :  { %5575 = vmatpush1.bf16.msra.mxu1 %v7024_v4  ;;  %v7111_v4 = vld [vmem:[#allocation7 + $0x9a8] ss:$16 sps:$4 sm:$0xff]  }
 0x330   :  { %5623 = vmatpush1.bf16.msra.mxu0 %v7027_v43  ;;  %5577 = vmatprep.subr.bf16.mxu1 %v7028_v8  ;;  %v7112_v43 = vld [vmem:[#allocation7 + $0x9c4] ss:$16 sps:$4 sm:$0xff]   ;;  %v7115_v8 = vld [vmem:[#allocation7 + $0x9cc] ss:$16 sps:$4 sm:$0xff]  }
 0x331   :  { %5625 = vmatprep.subr.bf16.mxu0 %v7031_v25  ;;  %v7114_v25 = vld [vmem:[#allocation7 + $0x9c0] ss:$16 sps:$4 sm:$0xff]  }
 0x333   :  { %5579 = vmatpush1.bf16.msra.mxu1 %v7030_v48  ;;  %v7117_v48 = vld [vmem:[#allocation7 + $0x9c8] ss:$16 sps:$4 sm:$0xff]  }
 0x334   :  { %5627 = vmatpush1.bf16.msra.mxu0 %v7033_v45  ;;  %5581 = vmatprep.subr.bf16.mxu1 %v7034_v53  ;;  %v7118_v45 = vld [vmem:[#allocation7 + $0x9e4] ss:$16 sps:$4 sm:$0xff]   ;;  %v7121_v53 = vld [vmem:[#allocation7 + $0x9ec] ss:$16 sps:$4 sm:$0xff]  }
 0x335   :  { %5629 = vmatprep.subr.bf16.mxu0 %v7037_v29  ;;  %v7120_v29 = vld [vmem:[#allocation7 + $0x9e0] ss:$16 sps:$4 sm:$0xff]  }
 0x337   :  { %5583 = vmatpush1.bf16.msra.mxu1 %v7036_v14  ;;  %v7123_v14 = vld [vmem:[#allocation7 + $0x9e8] ss:$16 sps:$4 sm:$0xff]  }
 0x338   :  { %5631 = vmatpush1.bf16.msra.mxu0 %v7039_v39  ;;  %5585 = vmatprep.subr.bf16.mxu1 %v7040_v1  ;;  %v7124_v39 = vld [vmem:[#allocation7 + $0xa04] ss:$16 sps:$4 sm:$0xff]   ;;  %v7127_v1 = vld [vmem:[#allocation7 + $0xa0c] ss:$16 sps:$4 sm:$0xff]  }
 0x339   :  { %5633 = vmatprep.subr.bf16.mxu0 %v7043_v35  ;;  %v7126_v35 = vld [vmem:[#allocation7 + $0xa00] ss:$16 sps:$4 sm:$0xff]  }
 0x33b   :  { %5587 = vmatpush1.bf16.msra.mxu1 %v7042_v20  ;;  %v7129_v20 = vld [vmem:[#allocation7 + $0xa08] ss:$16 sps:$4 sm:$0xff]  }
 0x33c   :  { %5635 = vmatpush1.bf16.msra.mxu0 %v7045_v56  ;;  %5589 = vmatprep.subr.bf16.mxu1 %v7046_v22  ;;  %v7130_v56 = vld [vmem:[#allocation7 + $0xa24] ss:$16 sps:$4 sm:$0xff]   ;;  %v7133_v22 = vld [vmem:[#allocation7 + $0xa2c] ss:$16 sps:$4 sm:$0xff]  }
 0x33d   :  { %5637 = vmatprep.subr.bf16.mxu0 %v7049_v27  ;;  %v7132_v27 = vld [vmem:[#allocation7 + $0xa20] ss:$16 sps:$4 sm:$0xff]  }
 0x33f   :  { %5591 = vmatpush1.bf16.msra.mxu1 %v7048_v19  ;;  %v7135_v19 = vld [vmem:[#allocation7 + $0xa28] ss:$16 sps:$4 sm:$0xff]  }
 0x340   :  { %5639 = vmatpush1.bf16.msra.mxu0 %v7051_v41  ;;  %5593 = vmatprep.subr.bf16.mxu1 %v7052_v33  ;;  %v7136_v41 = vld [vmem:[#allocation7 + $0xa44] ss:$16 sps:$4 sm:$0xff]   ;;  %v7139_v33 = vld [vmem:[#allocation7 + $0xa4c] ss:$16 sps:$4 sm:$0xff]  }
 0x341   :  { %5641 = vmatprep.subr.bf16.mxu0 %v7055_v7  ;;  %v7138_v7 = vld [vmem:[#allocation7 + $0xa40] ss:$16 sps:$4 sm:$0xff]  }
 0x343   :  { %5595 = vmatpush1.bf16.msra.mxu1 %v7054_v52  ;;  %v7141_v52 = vld [vmem:[#allocation7 + $0xa48] ss:$16 sps:$4 sm:$0xff]  }
 0x344   :  { %5643 = vmatpush1.bf16.msra.mxu0 %v7057_v9  ;;  %5597 = vmatprep.subr.bf16.mxu1 %v7058_v57  ;;  %v7142_v9 = vld [vmem:[#allocation7 + $0xa64] ss:$16 sps:$4 sm:$0xff]   ;;  %v7145_v57 = vld [vmem:[#allocation7 + $0xa6c] ss:$16 sps:$4 sm:$0xff]  }
 0x345   :  { %5645 = vmatprep.subr.bf16.mxu0 %v7061_v21  ;;  %v7144_v21 = vld [vmem:[#allocation7 + $0xa60] ss:$16 sps:$4 sm:$0xff]  }
 0x347   :  { %5599 = vmatpush1.bf16.msra.mxu1 %v7060_v60  ;;  %v7147_v60 = vld [vmem:[#allocation7 + $0xa68] ss:$16 sps:$4 sm:$0xff]  }
 0x348   :  { %5647 = vmatpush1.bf16.msra.mxu0 %v7063_v17  ;;  %5601 = vmatprep.subr.bf16.mxu1 %v7064_v38  ;;  %v7148_v17 = vld [vmem:[#allocation7 + $0xa84] ss:$16 sps:$4 sm:$0xff]   ;;  %v7151_v38 = vld [vmem:[#allocation7 + $0xa8c] ss:$16 sps:$4 sm:$0xff]  }
 0x349   :  { %5649 = vmatprep.subr.bf16.mxu0 %v7067_v62  ;;  %v7150_v62 = vld [vmem:[#allocation7 + $0xa80] ss:$16 sps:$4 sm:$0xff]  }
 0x34b   :  { %5603 = vmatpush1.bf16.msra.mxu1 %v7066_v10  ;;  %v7153_v10 = vld [vmem:[#allocation7 + $0xa88] ss:$16 sps:$4 sm:$0xff]  }
 0x34c   :  { %5651 = vmatpush1.bf16.msra.mxu0 %v7069_v59  ;;  %5605 = vmatprep.subr.bf16.mxu1 %v7070_v46  ;;  %v7154_v59 = vld [vmem:[#allocation7 + $0xaa4] ss:$16 sps:$4 sm:$0xff]   ;;  %v7157_v46 = vld [vmem:[#allocation7 + $0xaac] ss:$16 sps:$4 sm:$0xff]  }
 0x34d   :  { %5653 = vmatprep.subr.bf16.mxu0 %v7073_v13  ;;  %v7156_v13 = vld [vmem:[#allocation7 + $0xaa0] ss:$16 sps:$4 sm:$0xff]  }
 0x34f   :  { %5607 = vmatpush1.bf16.msra.mxu1 %v7072_v18  ;;  %v7159_v18 = vld [vmem:[#allocation7 + $0xaa8] ss:$16 sps:$4 sm:$0xff]  }
 0x350   :  { %5655 = vmatpush1.bf16.msra.mxu0 %v7075_v42  ;;  %5657 = vmatprep.subr.bf16.mxu1 %v7076_v30  ;;  %v7160_v42 = vld [vmem:[#allocation7 + $0xac4] ss:$16 sps:$4 sm:$0xff]   ;;  %v7163_v30 = vld [vmem:[#allocation7 + $0xacc] ss:$16 sps:$4 sm:$0xff]  }
 0x351   :  { %5705 = vmatprep.subr.bf16.mxu0 %v7079_v51  ;;  %v7162_v51 = vld [vmem:[#allocation7 + $0xac0] ss:$16 sps:$4 sm:$0xff]  }
 0x352   :  { %3101 = vmatmul.mubr.f32.vlgmr.msra.gmra.mrb[0].mxu1 %v9166_v31 }
 0x353   :  { %3172 = vmatmul.mubr.f32.vlgmr.msra.gmra.mrb[40].mxu0 %v9166_v31  ;;  %5659 = vmatpush1.bf16.msra.mxu1 %v7078_v32  ;;  %v7094_v31 = vld [vmem:[#allocation7 + $0x964] ss:$16 sps:$4 sm:$0xff]   ;;  %v7165_v32 = vld [vmem:[#allocation7 + $0xac8] ss:$16 sps:$4 sm:$0xff]  }
 0x354   :  { %4964 = vmatprep.mubr.msk.f32.mxu1 %vm1135_vm10, %v9169_v15  ;;  %5707 = vmatpush1.bf16.msra.mxu0 %v7081_v54  ;;  %v7169_v54 = vld [vmem:[#allocation7 + $0xaec] ss:$16 sps:$4 sm:$0xff]  }
 0x355   :  { %4965 = vmatprep.mubr.msk.f32.mxu0 %vm1135_vm10, %v9169_v15  ;;  %5661 = vmatprep.subr.bf16.mxu1 %v7082_v16  ;;  %v7102_v15 = vld [vmem:[#allocation7 + $0x980] ss:$16 sps:$4 sm:$0xff]  }
 0x356   :  { %5709 = vmatprep.subr.bf16.mxu0 %v7085_v44  ;;  %v7168_v16 = vld [vmem:[#allocation7 + $0xae0] ss:$16 sps:$4 sm:$0xff]   ;;  %v7171_v44 = vld [vmem:[#allocation7 + $0xae8] ss:$16 sps:$4 sm:$0xff]  }
 0x357   :  { %5663 = vmatpush1.bf16.msra.mxu1 %v7084_v3  ;;  %v7172_v3 = vld [vmem:[#allocation7 + $0xb04] ss:$16 sps:$4 sm:$0xff]  }
 0x358   :  { %5711 = vmatpush1.bf16.msra.mxu0 %v7087_v26  ;;  %5665 = vmatprep.subr.bf16.mxu1 %v7088_v49  ;;  %v7175_v26 = vld [vmem:[#allocation7 + $0xb0c] ss:$16 sps:$4 sm:$0xff]   ;;  %v7177_v49 = vld [vmem:[#allocation7 + $0xb08] ss:$16 sps:$4 sm:$0xff]  }
 0x359   :  { %5713 = vmatprep.subr.bf16.mxu0 %v7091_v37  ;;  %v7178_v37 = vld [vmem:[#allocation7 + $0xb24] ss:$16 sps:$4 sm:$0xff]  }
 0x35b   :  { %5667 = vmatpush1.bf16.msra.mxu1 %v7090_v6  ;;  %v7181_v6 = vld [vmem:[#allocation7 + $0xb2c] ss:$16 sps:$4 sm:$0xff]  }
 0x35c   :  { %5715 = vmatpush1.bf16.msra.mxu0 %v7093_v23  ;;  %5669 = vmatprep.subr.bf16.mxu1 %v7094_v31  ;;  %v7180_v23 = vld [vmem:[#allocation7 + $0xb20] ss:$16 sps:$4 sm:$0xff]   ;;  %v7183_v31 = vld [vmem:[#allocation7 + $0xb28] ss:$16 sps:$4 sm:$0xff]  }
 0x35d   :  { %5717 = vmatprep.subr.bf16.mxu0 %v7097_v28  ;;  %v7184_v28 = vld [vmem:[#allocation7 + $0xb44] ss:$16 sps:$4 sm:$0xff]  }
 0x35f   :  { %5671 = vmatpush1.bf16.msra.mxu1 %v7096_v63  ;;  %v7187_v63 = vld [vmem:[#allocation7 + $0xb4c] ss:$16 sps:$4 sm:$0xff]  }
 0x360   :  { %5719 = vmatpush1.bf16.msra.mxu0 %v7099_v11  ;;  %5673 = vmatprep.subr.bf16.mxu1 %v7100_v12  ;;  %v7186_v11 = vld [vmem:[#allocation7 + $0xb40] ss:$16 sps:$4 sm:$0xff]   ;;  %v7189_v12 = vld [vmem:[#allocation7 + $0xb48] ss:$16 sps:$4 sm:$0xff]  }
 0x361   :  { %5721 = vmatprep.subr.bf16.mxu0 %v7103_v58  ;;  %v7190_v58 = vld [vmem:[#allocation7 + $0xb64] ss:$16 sps:$4 sm:$0xff]  }
 0x363   :  { %5675 = vmatpush1.bf16.msra.mxu1 %v7102_v15  ;;  %v7193_v15 = vld [vmem:[#allocation7 + $0xb6c] ss:$16 sps:$4 sm:$0xff]  }
 0x364   :  { %5723 = vmatpush1.bf16.msra.mxu0 %v7105_v0  ;;  %5677 = vmatprep.subr.bf16.mxu1 %v7106_v36  ;;  %v7192_v0 = vld [vmem:[#allocation7 + $0xb60] ss:$16 sps:$4 sm:$0xff]   ;;  %v7195_v36 = vld [vmem:[#allocation7 + $0xb68] ss:$16 sps:$4 sm:$0xff]  }
 0x365   :  { %5725 = vmatprep.subr.bf16.mxu0 %v7109_v5  ;;  %v7196_v5 = vld [vmem:[#allocation7 + $0xb84] ss:$16 sps:$4 sm:$0xff]  }
 0x367   :  { %5679 = vmatpush1.bf16.msra.mxu1 %v7108_v24  ;;  %v7199_v24 = vld [vmem:[#allocation7 + $0xb8c] ss:$16 sps:$4 sm:$0xff]  }
 0x368   :  { %5727 = vmatpush1.bf16.msra.mxu0 %v7111_v4  ;;  %5681 = vmatprep.subr.bf16.mxu1 %v7112_v43  ;;  %v7198_v4 = vld [vmem:[#allocation7 + $0xb80] ss:$16 sps:$4 sm:$0xff]   ;;  %v7201_v43 = vld [vmem:[#allocation7 + $0xb88] ss:$16 sps:$4 sm:$0xff]  }
 0x369   :  { %5729 = vmatprep.subr.bf16.mxu0 %v7115_v8  ;;  %v7202_v8 = vld [vmem:[#allocation7 + $0xba4] ss:$16 sps:$4 sm:$0xff]  }
 0x36b   :  { %5683 = vmatpush1.bf16.msra.mxu1 %v7114_v25  ;;  %v7205_v25 = vld [vmem:[#allocation7 + $0xbac] ss:$16 sps:$4 sm:$0xff]  }
 0x36c   :  { %5731 = vmatpush1.bf16.msra.mxu0 %v7117_v48  ;;  %5685 = vmatprep.subr.bf16.mxu1 %v7118_v45  ;;  %v7204_v48 = vld [vmem:[#allocation7 + $0xba0] ss:$16 sps:$4 sm:$0xff]   ;;  %v7207_v45 = vld [vmem:[#allocation7 + $0xba8] ss:$16 sps:$4 sm:$0xff]  }
 0x36d   :  { %5733 = vmatprep.subr.bf16.mxu0 %v7121_v53  ;;  %v7208_v53 = vld [vmem:[#allocation7 + $0xbc4] ss:$16 sps:$4 sm:$0xff]  }
 0x36f   :  { %5687 = vmatpush1.bf16.msra.mxu1 %v7120_v29  ;;  %v7211_v29 = vld [vmem:[#allocation7 + $0xbcc] ss:$16 sps:$4 sm:$0xff]  }
 0x370   :  { %5735 = vmatpush1.bf16.msra.mxu0 %v7123_v14  ;;  %5689 = vmatprep.subr.bf16.mxu1 %v7124_v39  ;;  %v7210_v14 = vld [vmem:[#allocation7 + $0xbc0] ss:$16 sps:$4 sm:$0xff]   ;;  %v7213_v39 = vld [vmem:[#allocation7 + $0xbc8] ss:$16 sps:$4 sm:$0xff]  }
 0x371   :  { %5737 = vmatprep.subr.bf16.mxu0 %v7127_v1  ;;  %v7214_v1 = vld [vmem:[#allocation7 + $0xbe4] ss:$16 sps:$4 sm:$0xff]  }
 0x373   :  { %5691 = vmatpush1.bf16.msra.mxu1 %v7126_v35  ;;  %v7217_v35 = vld [vmem:[#allocation7 + $0xbec] ss:$16 sps:$4 sm:$0xff]  }
 0x374   :  { %5739 = vmatpush1.bf16.msra.mxu0 %v7129_v20  ;;  %5693 = vmatprep.subr.bf16.mxu1 %v7130_v56  ;;  %v7216_v20 = vld [vmem:[#allocation7 + $0xbe0] ss:$16 sps:$4 sm:$0xff]   ;;  %v7219_v56 = vld [vmem:[#allocation7 + $0xbe8] ss:$16 sps:$4 sm:$0xff]  }
 0x375   :  { %5741 = vmatprep.subr.bf16.mxu0 %v7133_v22  ;;  %v7220_v22 = vld [vmem:[#allocation7 + $0xc04] ss:$16 sps:$4 sm:$0xff]  }
 0x377   :  { %5695 = vmatpush1.bf16.msra.mxu1 %v7132_v27  ;;  %v7223_v27 = vld [vmem:[#allocation7 + $0xc0c] ss:$16 sps:$4 sm:$0xff]  }
 0x378   :  { %5743 = vmatpush1.bf16.msra.mxu0 %v7135_v19  ;;  %5697 = vmatprep.subr.bf16.mxu1 %v7136_v41  ;;  %v7222_v19 = vld [vmem:[#allocation7 + $0xc00] ss:$16 sps:$4 sm:$0xff]   ;;  %v7225_v41 = vld [vmem:[#allocation7 + $0xc08] ss:$16 sps:$4 sm:$0xff]  }
 0x379   :  { %5745 = vmatprep.subr.bf16.mxu0 %v7139_v33  ;;  %v7226_v33 = vld [vmem:[#allocation7 + $0xc24] ss:$16 sps:$4 sm:$0xff]  }
 0x37b   :  { %5699 = vmatpush1.bf16.msra.mxu1 %v7138_v7  ;;  %v7229_v7 = vld [vmem:[#allocation7 + $0xc2c] ss:$16 sps:$4 sm:$0xff]  }
 0x37c   :  { %5747 = vmatpush1.bf16.msra.mxu0 %v7141_v52  ;;  %5701 = vmatprep.subr.bf16.mxu1 %v7142_v9  ;;  %v7228_v52 = vld [vmem:[#allocation7 + $0xc20] ss:$16 sps:$4 sm:$0xff]   ;;  %v7231_v9 = vld [vmem:[#allocation7 + $0xc28] ss:$16 sps:$4 sm:$0xff]  }
 0x37d   :  { %5749 = vmatprep.subr.bf16.mxu0 %v7145_v57  ;;  %v7232_v57 = vld [vmem:[#allocation7 + $0xc44] ss:$16 sps:$4 sm:$0xff]  }
 0x37f   :  { %5703 = vmatpush1.bf16.msra.mxu1 %v7144_v21  ;;  %v7235_v21 = vld [vmem:[#allocation7 + $0xc4c] ss:$16 sps:$4 sm:$0xff]  }
 0x380   :  { %5751 = vmatpush1.bf16.msra.mxu0 %v7147_v60  ;;  %5753 = vmatprep.subr.bf16.mxu1 %v7148_v17  ;;  %v7234_v60 = vld [vmem:[#allocation7 + $0xc40] ss:$16 sps:$4 sm:$0xff]   ;;  %v7237_v17 = vld [vmem:[#allocation7 + $0xc48] ss:$16 sps:$4 sm:$0xff]  }
 0x381   :  { %5801 = vmatprep.subr.bf16.mxu0 %v7151_v38  ;;  %v7241_v38 = vld [vmem:[#allocation7 + $0xc6c] ss:$16 sps:$4 sm:$0xff]  }
 0x382   :  { %3401 = vmatmul.mubr.f32.vlgmr.msra.gmra.mrb[0].mxu1 %v9178_v34 }
 0x383   :  { %3472 = vmatmul.mubr.f32.vlgmr.msra.gmra.mrb[40].mxu0 %v9178_v34  ;;  %5755 = vmatpush1.bf16.msra.mxu1 %v7150_v62  ;;  %v7166_v34 = vld [vmem:[#allocation7 + $0xae4] ss:$16 sps:$4 sm:$0xff]   ;;  %v7240_v62 = vld [vmem:[#allocation7 + $0xc60] ss:$16 sps:$4 sm:$0xff]  }
 0x384   :  { %4966 = vmatprep.mubr.msk.f32.mxu1 %vm1135_vm10, %v9181_v55  ;;  %5803 = vmatpush1.bf16.msra.mxu0 %v7153_v10  ;;  %v7243_v10 = vld [vmem:[#allocation7 + $0xc68] ss:$16 sps:$4 sm:$0xff]  }
 0x385   :  { %4967 = vmatprep.mubr.msk.f32.mxu0 %vm1135_vm10, %v9181_v55  ;;  %5757 = vmatprep.subr.bf16.mxu1 %v7154_v59  ;;  %v7174_v55 = vld [vmem:[#allocation7 + $0xb00] ss:$16 sps:$4 sm:$0xff]   ;;  %v7244_v59 = vld [vmem:[#allocation7 + $0xc84] ss:$16 sps:$4 sm:$0xff]  }
 0x386   :  { %5805 = vmatprep.subr.bf16.mxu0 %v7157_v46  ;;  %v7247_v46 = vld [vmem:[#allocation7 + $0xc8c] ss:$16 sps:$4 sm:$0xff]  }
 0x387   :  { %5759 = vmatpush1.bf16.msra.mxu1 %v7156_v13  ;;  %v7249_v13 = vld [vmem:[#allocation7 + $0xc88] ss:$16 sps:$4 sm:$0xff]  }
 0x388   :  { %5807 = vmatpush1.bf16.msra.mxu0 %v7159_v18  ;;  %5761 = vmatprep.subr.bf16.mxu1 %v7160_v42  ;;  %v7250_v18 = vld [vmem:[#allocation7 + $0xca4] ss:$16 sps:$4 sm:$0xff]   ;;  %v7253_v42 = vld [vmem:[#allocation7 + $0xcac] ss:$16 sps:$4 sm:$0xff]  }
 0x389   :  { %5809 = vmatprep.subr.bf16.mxu0 %v7163_v30  ;;  %v7252_v30 = vld [vmem:[#allocation7 + $0xca0] ss:$16 sps:$4 sm:$0xff]  }
 0x38b   :  { %5763 = vmatpush1.bf16.msra.mxu1 %v7162_v51  ;;  %v7255_v51 = vld [vmem:[#allocation7 + $0xca8] ss:$16 sps:$4 sm:$0xff]  }
 0x38c   :  { %5811 = vmatpush1.bf16.msra.mxu0 %v7165_v32  ;;  %5765 = vmatprep.subr.bf16.mxu1 %v7166_v34  ;;  %v7256_v32 = vld [vmem:[#allocation7 + $0xcc4] ss:$16 sps:$4 sm:$0xff]   ;;  %v7259_v34 = vld [vmem:[#allocation7 + $0xccc] ss:$16 sps:$4 sm:$0xff]  }
 0x38d   :  { %5813 = vmatprep.subr.bf16.mxu0 %v7169_v54  ;;  %v7258_v54 = vld [vmem:[#allocation7 + $0xcc0] ss:$16 sps:$4 sm:$0xff]  }
 0x38f   :  { %5767 = vmatpush1.bf16.msra.mxu1 %v7168_v16  ;;  %v7261_v16 = vld [vmem:[#allocation7 + $0xcc8] ss:$16 sps:$4 sm:$0xff]  }
 0x390   :  { %5815 = vmatpush1.bf16.msra.mxu0 %v7171_v44  ;;  %5769 = vmatprep.subr.bf16.mxu1 %v7172_v3  ;;  %v7262_v44 = vld [vmem:[#allocation7 + $0xce4] ss:$16 sps:$4 sm:$0xff]   ;;  %v7265_v3 = vld [vmem:[#allocation7 + $0xcec] ss:$16 sps:$4 sm:$0xff]  }
 0x391   :  { %5817 = vmatprep.subr.bf16.mxu0 %v7175_v26  ;;  %v7264_v26 = vld [vmem:[#allocation7 + $0xce0] ss:$16 sps:$4 sm:$0xff]  }
 0x393   :  { %5771 = vmatpush1.bf16.msra.mxu1 %v7174_v55  ;;  %v7267_v55 = vld [vmem:[#allocation7 + $0xce8] ss:$16 sps:$4 sm:$0xff]  }
 0x394   :  { %5819 = vmatpush1.bf16.msra.mxu0 %v7177_v49  ;;  %5773 = vmatprep.subr.bf16.mxu1 %v7178_v37  ;;  %v7268_v49 = vld [vmem:[#allocation7 + $0xd04] ss:$16 sps:$4 sm:$0xff]   ;;  %v7271_v37 = vld [vmem:[#allocation7 + $0xd0c] ss:$16 sps:$4 sm:$0xff]  }
 0x395   :  { %5821 = vmatprep.subr.bf16.mxu0 %v7181_v6  ;;  %v7270_v6 = vld [vmem:[#allocation7 + $0xd00] ss:$16 sps:$4 sm:$0xff]  }
 0x397   :  { %5775 = vmatpush1.bf16.msra.mxu1 %v7180_v23  ;;  %v7273_v23 = vld [vmem:[#allocation7 + $0xd08] ss:$16 sps:$4 sm:$0xff]  }
 0x398   :  { %5823 = vmatpush1.bf16.msra.mxu0 %v7183_v31  ;;  %5777 = vmatprep.subr.bf16.mxu1 %v7184_v28  ;;  %v7274_v31 = vld [vmem:[#allocation7 + $0xd24] ss:$16 sps:$4 sm:$0xff]   ;;  %v7277_v28 = vld [vmem:[#allocation7 + $0xd2c] ss:$16 sps:$4 sm:$0xff]  }
 0x399   :  { %5825 = vmatprep.subr.bf16.mxu0 %v7187_v63  ;;  %v7276_v63 = vld [vmem:[#allocation7 + $0xd20] ss:$16 sps:$4 sm:$0xff]  }
 0x39b   :  { %5779 = vmatpush1.bf16.msra.mxu1 %v7186_v11  ;;  %v7279_v11 = vld [vmem:[#allocation7 + $0xd28] ss:$16 sps:$4 sm:$0xff]  }
 0x39c   :  { %5827 = vmatpush1.bf16.msra.mxu0 %v7189_v12  ;;  %5781 = vmatprep.subr.bf16.mxu1 %v7190_v58  ;;  %v7280_v12 = vld [vmem:[#allocation7 + $0xd44] ss:$16 sps:$4 sm:$0xff]   ;;  %v7283_v58 = vld [vmem:[#allocation7 + $0xd4c] ss:$16 sps:$4 sm:$0xff]  }
 0x39d   :  { %5829 = vmatprep.subr.bf16.mxu0 %v7193_v15  ;;  %v7282_v15 = vld [vmem:[#allocation7 + $0xd40] ss:$16 sps:$4 sm:$0xff]  }
 0x39f   :  { %5783 = vmatpush1.bf16.msra.mxu1 %v7192_v0  ;;  %v7285_v0 = vld [vmem:[#allocation7 + $0xd48] ss:$16 sps:$4 sm:$0xff]  }
 0x3a0   :  { %5831 = vmatpush1.bf16.msra.mxu0 %v7195_v36  ;;  %5785 = vmatprep.subr.bf16.mxu1 %v7196_v5  ;;  %v7286_v36 = vld [vmem:[#allocation7 + $0xd64] ss:$16 sps:$4 sm:$0xff]   ;;  %v7289_v5 = vld [vmem:[#allocation7 + $0xd6c] ss:$16 sps:$4 sm:$0xff]  }
 0x3a1   :  { %5833 = vmatprep.subr.bf16.mxu0 %v7199_v24  ;;  %v7288_v24 = vld [vmem:[#allocation7 + $0xd60] ss:$16 sps:$4 sm:$0xff]  }
 0x3a3   :  { %5787 = vmatpush1.bf16.msra.mxu1 %v7198_v4  ;;  %v7291_v4 = vld [vmem:[#allocation7 + $0xd68] ss:$16 sps:$4 sm:$0xff]  }
 0x3a4   :  { %5835 = vmatpush1.bf16.msra.mxu0 %v7201_v43  ;;  %5789 = vmatprep.subr.bf16.mxu1 %v7202_v8  ;;  %v7292_v43 = vld [vmem:[#allocation7 + $0xd84] ss:$16 sps:$4 sm:$0xff]   ;;  %v7295_v8 = vld [vmem:[#allocation7 + $0xd8c] ss:$16 sps:$4 sm:$0xff]  }
 0x3a5   :  { %5837 = vmatprep.subr.bf16.mxu0 %v7205_v25  ;;  %v7294_v25 = vld [vmem:[#allocation7 + $0xd80] ss:$16 sps:$4 sm:$0xff]  }
 0x3a7   :  { %5791 = vmatpush1.bf16.msra.mxu1 %v7204_v48  ;;  %v7297_v48 = vld [vmem:[#allocation7 + $0xd88] ss:$16 sps:$4 sm:$0xff]  }
 0x3a8   :  { %5839 = vmatpush1.bf16.msra.mxu0 %v7207_v45  ;;  %5793 = vmatprep.subr.bf16.mxu1 %v7208_v53  ;;  %v7298_v45 = vld [vmem:[#allocation7 + $0xda4] ss:$16 sps:$4 sm:$0xff]   ;;  %v7301_v53 = vld [vmem:[#allocation7 + $0xdac] ss:$16 sps:$4 sm:$0xff]  }
 0x3a9   :  { %5841 = vmatprep.subr.bf16.mxu0 %v7211_v29  ;;  %v7300_v29 = vld [vmem:[#allocation7 + $0xda0] ss:$16 sps:$4 sm:$0xff]  }
 0x3ab   :  { %5795 = vmatpush1.bf16.msra.mxu1 %v7210_v14  ;;  %v7303_v14 = vld [vmem:[#allocation7 + $0xda8] ss:$16 sps:$4 sm:$0xff]  }
 0x3ac   :  { %5843 = vmatpush1.bf16.msra.mxu0 %v7213_v39  ;;  %5797 = vmatprep.subr.bf16.mxu1 %v7214_v1  ;;  %v7304_v39 = vld [vmem:[#allocation7 + $0xdc4] ss:$16 sps:$4 sm:$0xff]   ;;  %v7307_v1 = vld [vmem:[#allocation7 + $0xdcc] ss:$16 sps:$4 sm:$0xff]  }
 0x3ad   :  { %5845 = vmatprep.subr.bf16.mxu0 %v7217_v35  ;;  %v7306_v35 = vld [vmem:[#allocation7 + $0xdc0] ss:$16 sps:$4 sm:$0xff]  }
 0x3af   :  { %5799 = vmatpush1.bf16.msra.mxu1 %v7216_v20  ;;  %v7309_v20 = vld [vmem:[#allocation7 + $0xdc8] ss:$16 sps:$4 sm:$0xff]  }
 0x3b0   :  { %5847 = vmatpush1.bf16.msra.mxu0 %v7219_v56  ;;  %5849 = vmatprep.subr.bf16.mxu1 %v7220_v22  ;;  %v7313_v56 = vld [vmem:[#allocation7 + $0xdec] ss:$16 sps:$4 sm:$0xff]   ;;  %v7312_v22 = vld [vmem:[#allocation7 + $0xde0] ss:$16 sps:$4 sm:$0xff]  }
 0x3b1   :  { %5897 = vmatprep.subr.bf16.mxu0 %v7223_v27  ;;  %v7315_v27 = vld [vmem:[#allocation7 + $0xde8] ss:$16 sps:$4 sm:$0xff]  }
 0x3b2   :  { %3701 = vmatmul.mubr.f32.vlgmr.msra.gmra.mrb[0].mxu1 %v9188_v47 }
 0x3b3   :  { %3772 = vmatmul.mubr.f32.vlgmr.msra.gmra.mrb[40].mxu0 %v9188_v47  ;;  %5851 = vmatpush1.bf16.msra.mxu1 %v7222_v19  ;;  %v7238_v47 = vld [vmem:[#allocation7 + $0xc64] ss:$16 sps:$4 sm:$0xff]  }
 0x3b4   :  { %4968 = vmatprep.mubr.msk.f32.mxu1 %vm1135_vm10, %v9193_v2  ;;  %5899 = vmatpush1.bf16.msra.mxu0 %v7225_v41  ;;  %v7316_v19 = vld [vmem:[#allocation7 + $0xe04] ss:$16 sps:$4 sm:$0xff]   ;;  %v7319_v41 = vld [vmem:[#allocation7 + $0xe0c] ss:$16 sps:$4 sm:$0xff]  }
 0x3b5   :  { %4969 = vmatprep.mubr.msk.f32.mxu0 %vm1135_vm10, %v9193_v2  ;;  %5853 = vmatprep.subr.bf16.mxu1 %v7226_v33  ;;  %v7246_v2 = vld [vmem:[#allocation7 + $0xc80] ss:$16 sps:$4 sm:$0xff]   ;;  %v7321_v33 = vld [vmem:[#allocation7 + $0xe08] ss:$16 sps:$4 sm:$0xff]  }
 0x3b6   :  { %5901 = vmatprep.subr.bf16.mxu0 %v7229_v7  ;;  %v7322_v7 = vld [vmem:[#allocation7 + $0xe24] ss:$16 sps:$4 sm:$0xff]  }
 0x3b7   :  { %5855 = vmatpush1.bf16.msra.mxu1 %v7228_v52  ;;  %v7325_v52 = vld [vmem:[#allocation7 + $0xe2c] ss:$16 sps:$4 sm:$0xff]  }
 0x3b8   :  { %5903 = vmatpush1.bf16.msra.mxu0 %v7231_v9  ;;  %5857 = vmatprep.subr.bf16.mxu1 %v7232_v57  ;;  %v7324_v9 = vld [vmem:[#allocation7 + $0xe20] ss:$16 sps:$4 sm:$0xff]   ;;  %v7327_v57 = vld [vmem:[#allocation7 + $0xe28] ss:$16 sps:$4 sm:$0xff]  }
 0x3b9   :  { %5905 = vmatprep.subr.bf16.mxu0 %v7235_v21  ;;  %v7328_v21 = vld [vmem:[#allocation7 + $0xe44] ss:$16 sps:$4 sm:$0xff]  }
 0x3bb   :  { %5859 = vmatpush1.bf16.msra.mxu1 %v7234_v60  ;;  %v7331_v60 = vld [vmem:[#allocation7 + $0xe4c] ss:$16 sps:$4 sm:$0xff]  }
 0x3bc   :  { %5907 = vmatpush1.bf16.msra.mxu0 %v7237_v17  ;;  %5861 = vmatprep.subr.bf16.mxu1 %v7238_v47  ;;  %v7330_v17 = vld [vmem:[#allocation7 + $0xe40] ss:$16 sps:$4 sm:$0xff]   ;;  %v7333_v47 = vld [vmem:[#allocation7 + $0xe48] ss:$16 sps:$4 sm:$0xff]  }
 0x3bd   :  { %5909 = vmatprep.subr.bf16.mxu0 %v7241_v38  ;;  %v7334_v38 = vld [vmem:[#allocation7 + $0xe64] ss:$16 sps:$4 sm:$0xff]  }
 0x3bf   :  { %5863 = vmatpush1.bf16.msra.mxu1 %v7240_v62  ;;  %v7337_v62 = vld [vmem:[#allocation7 + $0xe6c] ss:$16 sps:$4 sm:$0xff]  }
 0x3c0   :  { %5911 = vmatpush1.bf16.msra.mxu0 %v7243_v10  ;;  %5865 = vmatprep.subr.bf16.mxu1 %v7244_v59  ;;  %v7336_v10 = vld [vmem:[#allocation7 + $0xe60] ss:$16 sps:$4 sm:$0xff]   ;;  %v7339_v59 = vld [vmem:[#allocation7 + $0xe68] ss:$16 sps:$4 sm:$0xff]  }
 0x3c1   :  { %5913 = vmatprep.subr.bf16.mxu0 %v7247_v46  ;;  %v7340_v46 = vld [vmem:[#allocation7 + $0xe84] ss:$16 sps:$4 sm:$0xff]  }
 0x3c3   :  { %5867 = vmatpush1.bf16.msra.mxu1 %v7246_v2  ;;  %v7343_v2 = vld [vmem:[#allocation7 + $0xe8c] ss:$16 sps:$4 sm:$0xff]  }
 0x3c4   :  { %5915 = vmatpush1.bf16.msra.mxu0 %v7249_v13  ;;  %5869 = vmatprep.subr.bf16.mxu1 %v7250_v18  ;;  %v7342_v13 = vld [vmem:[#allocation7 + $0xe80] ss:$16 sps:$4 sm:$0xff]   ;;  %v7345_v18 = vld [vmem:[#allocation7 + $0xe88] ss:$16 sps:$4 sm:$0xff]  }
 0x3c5   :  { %5917 = vmatprep.subr.bf16.mxu0 %v7253_v42  ;;  %v7346_v42 = vld [vmem:[#allocation7 + $0xea4] ss:$16 sps:$4 sm:$0xff]  }
 0x3c7   :  { %5871 = vmatpush1.bf16.msra.mxu1 %v7252_v30  ;;  %v7349_v30 = vld [vmem:[#allocation7 + $0xeac] ss:$16 sps:$4 sm:$0xff]  }
 0x3c8   :  { %5919 = vmatpush1.bf16.msra.mxu0 %v7255_v51  ;;  %5873 = vmatprep.subr.bf16.mxu1 %v7256_v32  ;;  %v7348_v51 = vld [vmem:[#allocation7 + $0xea0] ss:$16 sps:$4 sm:$0xff]   ;;  %v7351_v32 = vld [vmem:[#allocation7 + $0xea8] ss:$16 sps:$4 sm:$0xff]  }
 0x3c9   :  { %5921 = vmatprep.subr.bf16.mxu0 %v7259_v34  ;;  %v7352_v34 = vld [vmem:[#allocation7 + $0xec4] ss:$16 sps:$4 sm:$0xff]  }
 0x3cb   :  { %5875 = vmatpush1.bf16.msra.mxu1 %v7258_v54  ;;  %v7355_v54 = vld [vmem:[#allocation7 + $0xecc] ss:$16 sps:$4 sm:$0xff]  }
 0x3cc   :  { %5923 = vmatpush1.bf16.msra.mxu0 %v7261_v16  ;;  %5877 = vmatprep.subr.bf16.mxu1 %v7262_v44  ;;  %v7354_v16 = vld [vmem:[#allocation7 + $0xec0] ss:$16 sps:$4 sm:$0xff]   ;;  %v7357_v44 = vld [vmem:[#allocation7 + $0xec8] ss:$16 sps:$4 sm:$0xff]  }
 0x3cd   :  { %5925 = vmatprep.subr.bf16.mxu0 %v7265_v3  ;;  %v7358_v3 = vld [vmem:[#allocation7 + $0xee4] ss:$16 sps:$4 sm:$0xff]  }
 0x3cf   :  { %5879 = vmatpush1.bf16.msra.mxu1 %v7264_v26  ;;  %v7361_v26 = vld [vmem:[#allocation7 + $0xeec] ss:$16 sps:$4 sm:$0xff]  }
 0x3d0   :  { %5927 = vmatpush1.bf16.msra.mxu0 %v7267_v55  ;;  %5881 = vmatprep.subr.bf16.mxu1 %v7268_v49  ;;  %v4499_v55 = vld [vmem:[%s9514_s7 + $0x80] sm:$0xff]  ;;  %v4500_v49 = vld [vmem:[%s9514_s7 + $0x88] sm:$0xff] }
 0x3d1   :  { %5929 = vmatprep.subr.bf16.mxu0 %v7271_v37  ;;  %v7360_v37 = vld [vmem:[#allocation7 + $0xee0] ss:$16 sps:$4 sm:$0xff]  }
 0x3d3   :  { %5883 = vmatpush1.bf16.msra.mxu1 %v7270_v6  ;;  %v7363_v6 = vld [vmem:[#allocation7 + $0xee8] ss:$16 sps:$4 sm:$0xff]  }
 0x3d4   :  { %5931 = vmatpush1.bf16.msra.mxu0 %v7273_v23  ;;  %5885 = vmatprep.subr.bf16.mxu1 %v7274_v31  ;;  %v6040_v23 = vpack.c.bf16 %v4500_v49, %v4499_v55  ;;  %v4483_v31 = vld [vmem:[%s9514_s7] sm:$0xff]  ;;  %v7885_v55 = vmov 1983009808  }
 0x3d5   :  { %5933 = vmatprep.subr.bf16.mxu0 %v7277_v28  ;;  %v4484_v28 = vld [vmem:[%s9514_s7 + $0x8] sm:$0xff]  ;;  %v4467_v49 = vunpack.c.l.s4 %v7885_v55  ;;  %v4525_v55 = vld [vmem:[%s9514_s7 + $0x150] sm:$0xff] }
 0x3d7   :  { %5887 = vmatpush1.bf16.msra.mxu1 %v7276_v63  ;;  %v4501_v63 = vld [vmem:[%s9514_s7 + $0x90] sm:$0xff] }
 0x3d8   :  { %5935 = vmatpush1.bf16.msra.mxu0 %v7279_v11  ;;  %5889 = vmatprep.subr.bf16.mxu1 %v7280_v12  ;;  %v4502_v11 = vld [vmem:[%s9514_s7 + $0x98] sm:$0xff]  ;;  %v6042_v12 = vpack.c.bf16 %v4484_v28, %v4483_v31 }
 0x3d9   :  { %5937 = vmatprep.subr.bf16.mxu0 %v7283_v58  ;;  %v6044_v58 = vpack.c.bf16 %v4502_v11, %v4501_v63 }
 0x3db   :  { %5891 = vmatpush1.bf16.msra.mxu1 %v7282_v15  ;;  %v4485_v15 = vld [vmem:[%s9514_s7 + $0x10] sm:$0xff] }
 0x3dc   :  { %5939 = vmatpush1.bf16.msra.mxu0 %v7285_v0  ;;  %5893 = vmatprep.subr.bf16.mxu1 %v7286_v36  ;;  %v4486_v0 = vld [vmem:[%s9514_s7 + $0x18] sm:$0xff]  ;;  %v4503_v36 = vld [vmem:[%s9514_s7 + $0xa0] sm:$0xff] }
 0x3dd   :  { %5941 = vmatprep.subr.bf16.mxu0 %v7289_v5  ;;  %v4504_v5 = vld [vmem:[%s9514_s7 + $0xa8] sm:$0xff] }
 0x3df   :  { %5895 = vmatpush1.bf16.msra.mxu1 %v7288_v24  ;;  %v6046_v24 = vpack.c.bf16 %v4486_v0, %v4485_v15 }
 0x3e0   :  { %5943 = vmatpush1.bf16.msra.mxu0 %v7291_v4  ;;  %5945 = vmatprep.subr.bf16.mxu1 %v7292_v43  ;;  %v6048_v4 = vpack.c.bf16 %v4504_v5, %v4503_v36  ;;  %v4487_v43 = vld [vmem:[%s9514_s7 + $0x20] sm:$0xff] }
 0x3e1   :  { %5993 = vmatprep.subr.bf16.mxu0 %v7295_v8  ;;  %v4488_v8 = vld [vmem:[%s9514_s7 + $0x28] sm:$0xff] }
 0x3e2   :  { %4001 = vmatmul.mubr.f32.vlgmr.msra.gmra.mrb[0].mxu1 %v9198_v50 }
 0x3e3   :  { %4072 = vmatmul.mubr.f32.vlgmr.msra.gmra.mrb[40].mxu0 %v9198_v50  ;;  %5947 = vmatpush1.bf16.msra.mxu1 %v7294_v25  ;;  %v7310_v50 = vld [vmem:[#allocation7 + $0xde4] ss:$16 sps:$4 sm:$0xff]  }
 0x3e4   :  { %4970 = vmatprep.mubr.msk.f32.mxu1 %vm1135_vm10, %v9206_v61  ;;  %5995 = vmatpush1.bf16.msra.mxu0 %v7297_v48  ;;  %v4505_v25 = vld [vmem:[%s9514_s7 + $0xb0] sm:$0xff]  ;;  %v6050_v48 = vpack.c.bf16 %v4488_v8, %v4487_v43  ;;  %v4468_v43 = vunpack.c.0.s8 %v4467_v49  ;;  %v4526_v49 = vld [vmem:[%s9514_s7 + $0x158] sm:$0xff] }
 0x3e5   :  { %4971 = vmatprep.mubr.msk.f32.mxu0 %vm1135_vm10, %v9206_v61  ;;  %5949 = vmatprep.subr.bf16.mxu1 %v7298_v45  ;;  %v7318_v61 = vld [vmem:[#allocation7 + $0xe00] ss:$16 sps:$4 sm:$0xff]   ;;  %vm7887_vm10 = vmmov 0  }
 0x3e6   :  { %5997 = vmatprep.subr.bf16.mxu0 %v7301_v53  ;;  %v4489_v53 = vld [vmem:[%s9514_s7 + $0x30] sm:$0xff] }
 0x3e7   :  { %5951 = vmatpush1.bf16.msra.mxu1 %v7300_v29  ;;  %v4490_v29 = vld [vmem:[%s9514_s7 + $0x38] sm:$0xff] }
 0x3e8   :  { %5999 = vmatpush1.bf16.msra.mxu0 %v7303_v14  ;;  %5953 = vmatprep.subr.bf16.mxu1 %v7304_v39  ;;  %v4507_v14 = vld [vmem:[%s9514_s7 + $0xc0] sm:$0xff]  ;;  %v4508_v39 = vld [vmem:[%s9514_s7 + $0xc8] sm:$0xff] }
 0x3e9   :  { %6001 = vmatprep.subr.bf16.mxu0 %v7307_v1  ;;  %v6054_v1 = vpack.c.bf16 %v4490_v29, %v4489_v53 }
 0x3eb   :  { %5955 = vmatpush1.bf16.msra.mxu1 %v7306_v35  ;;  %v6056_v35 = vpack.c.bf16 %v4508_v39, %v4507_v14  ;;  %v4533_v14 = vld [vmem:[%s9514_s7 + $0x190] sm:$0xff]  ;;  %v4534_v39 = vld [vmem:[%s9514_s7 + $0x198] sm:$0xff] }
 0x3ec   :  { %6003 = vmatpush1.bf16.msra.mxu0 %v7309_v20  ;;  %5957 = vmatprep.subr.bf16.mxu1 %v7310_v50  ;;  %v4491_v20 = vld [vmem:[%s9514_s7 + $0x40] sm:$0xff]  ;;  %v4492_v50 = vld [vmem:[%s9514_s7 + $0x48] sm:$0xff] }
 0x3ed   :  { %6005 = vmatprep.subr.bf16.mxu0 %v7313_v56  ;;  %v4509_v56 = vld [vmem:[%s9514_s7 + $0xd0] sm:$0xff] }
 0x3ef   :  { %5959 = vmatpush1.bf16.msra.mxu1 %v7312_v22  ;;  %v4510_v22 = vld [vmem:[%s9514_s7 + $0xd8] sm:$0xff] }
 0x3f0   :  { %6007 = vmatpush1.bf16.msra.mxu0 %v7315_v27  ;;  %5961 = vmatprep.subr.bf16.mxu1 %v7316_v19  ;;  %v6058_v27 = vpack.c.bf16 %v4492_v50, %v4491_v20  ;;  %v6060_v19 = vpack.c.bf16 %v4510_v22, %v4509_v56 }
 0x3f1   :  { %6009 = vmatprep.subr.bf16.mxu0 %v7319_v41  ;;  %v4493_v41 = vld [vmem:[%s9514_s7 + $0x50] sm:$0xff] }
 0x3f3   :  { %5963 = vmatpush1.bf16.msra.mxu1 %v7318_v61  ;;  %v4494_v61 = vld [vmem:[%s9514_s7 + $0x58] sm:$0xff] }
 0x3f4   :  { %6011 = vmatpush1.bf16.msra.mxu0 %v7321_v33  ;;  %5965 = vmatprep.subr.bf16.mxu1 %v7322_v7  ;;  %v6062_v33 = vpack.c.bf16 %v4494_v61, %v4493_v41  ;;  %v4511_v7 = vld [vmem:[%s9514_s7 + $0xe0] sm:$0xff]  ;;  %v4517_v41 = vld [vmem:[%s9514_s7 + $0x110] sm:$0xff]  ;;  %v4518_v61 = vld [vmem:[%s9514_s7 + $0x118] sm:$0xff] }
 0x3f5   :  { %6013 = vmatprep.subr.bf16.mxu0 %v7325_v52  ;;  %v4512_v52 = vld [vmem:[%s9514_s7 + $0xe8] sm:$0xff] }
 0x3f7   :  { %5967 = vmatpush1.bf16.msra.mxu1 %v7324_v9  ;;  %v4495_v9 = vld [vmem:[%s9514_s7 + $0x60] sm:$0xff] }
 0x3f8   :  { %6015 = vmatpush1.bf16.msra.mxu0 %v7327_v57  ;;  %5969 = vmatprep.subr.bf16.mxu1 %v7328_v21  ;;  %v6064_v57 = vpack.c.bf16 %v4512_v52, %v4511_v7  ;;  %v4496_v21 = vld [vmem:[%s9514_s7 + $0x68] sm:$0xff]  ;;  %v4535_v7 = vld [vmem:[%s9514_s7 + $0x1a0] sm:$0xff] }
 0x3f9   :  { %6017 = vmatprep.subr.bf16.mxu0 %v7331_v60  ;;  %v4513_v60 = vld [vmem:[%s9514_s7 + $0xf0] sm:$0xff]  ;;  %v4536_v52 = vld [vmem:[%s9514_s7 + $0x1a8] sm:$0xff] }
 0x3fb   :  { %5971 = vmatpush1.bf16.msra.mxu1 %v7330_v17  ;;  %v4514_v17 = vld [vmem:[%s9514_s7 + $0xf8] sm:$0xff] }
 0x3fc   :  { %6019 = vmatpush1.bf16.msra.mxu0 %v7333_v47  ;;  %5973 = vmatprep.subr.bf16.mxu1 %v7334_v38  ;;  %v6066_v47 = vpack.c.bf16 %v4496_v21, %v4495_v9  ;;  %v6068_v38 = vpack.c.bf16 %v4514_v17, %v4513_v60  ;;  %v6080_v60 = vpack.c.bf16 %v4536_v52, %v4535_v7  ;;  %v4519_v17 = vld [vmem:[%s9514_s7 + $0x120] sm:$0xff] }
 0x3fd   :  { %6021 = vmatprep.subr.bf16.mxu0 %v7337_v62  ;;  %v4497_v62 = vld [vmem:[%s9514_s7 + $0x70] sm:$0xff] }
 0x3ff   :  { %5975 = vmatpush1.bf16.msra.mxu1 %v7336_v10  ;;  %v4498_v10 = vld [vmem:[%s9514_s7 + $0x78] sm:$0xff] }
 0x400   :  { %6023 = vmatpush1.bf16.msra.mxu0 %v7339_v59  ;;  %5977 = vmatprep.subr.bf16.mxu1 %v7340_v46  ;;  %v4531_v59 = vld [vmem:[%s9514_s7 + $0x180] sm:$0xff]  ;;  %v4532_v46 = vld [vmem:[%s9514_s7 + $0x188] sm:$0xff] }
 0x401   :  { %6025 = vmatprep.subr.bf16.mxu0 %v7343_v2  ;;  %v6070_v2 = vpack.c.bf16 %v4498_v10, %v4497_v62  ;;  %v4537_v62 = vld [vmem:[%s9514_s7 + $0x1b0] sm:$0xff]  ;;  %v4538_v10 = vld [vmem:[%s9514_s7 + $0x1b8] sm:$0xff] }
 0x403   :  { %5979 = vmatpush1.bf16.msra.mxu1 %v7342_v13  ;;  %v6072_v13 = vpack.c.bf16 %v4532_v46, %v4531_v59 }
 0x404   :  { %6027 = vmatpush1.bf16.msra.mxu0 %v7345_v18  ;;  %5981 = vmatprep.subr.bf16.mxu1 %v7346_v42  ;;  %v4382_v18 = vld [vmem:[#allocation8] sm:$0xf] }
 0x405   :  { %6029 = vmatprep.subr.bf16.mxu0 %v7349_v30  ;;  %v9683_v42 = vld [vmem:[#allocation27_spill] sm:$0xff] }
 0x406   :  { %v4394_v30 = vsub.s32 2, %v9683_v42  ;;  %v4471_v22 = vsub.s32 %v4468_v43, %v9683_v42  ;;  %v4713_v43 = vld [vmem:[%s9516_s9 + $0x10] sm:$0xff] }
 0x407   :  { %5983 = vmatpush1.bf16.msra.mxu1 %v7348_v51  ;;  %v4398_v51 = vsub.s32 3, %v9683_v42  ;;  %v4539_v42 = vld [vmem:[%s9514_s7 + $0x1c0] sm:$0xff] }
 0x408   :  { %6031 = vmatpush1.bf16.msra.mxu0 %v7351_v32  ;;  %5985 = vmatprep.subr.bf16.mxu1 %v7352_v34  ;;  %v4408_v32 = vld [vmem:[#allocation10] sm:$0xf] }
 0x409   :  { %6033 = vmatprep.subr.bf16.mxu0 %v7355_v54  ;;  %v9684_v34 = vld [vmem:[#allocation28_spill] sm:$0xff]  ;;  %v4421_v31 = vrot.slane %v4408_v32, %v4394_v30  ;;  %v4425_v15 = vrot.slane %v4408_v32, %v4398_v51 }
 0x40a   :  { %v4387_v54 = vrot.slane %v4382_v18, %v9684_v34 }
 0x40b   :  { %5987 = vmatpush1.bf16.msra.mxu1 %v7354_v16  ;;  %v4434_v16 = vld [vmem:[#allocation11] sm:$0xf] }
 0x40c   :  { %6035 = vmatpush1.bf16.msra.mxu0 %v7357_v44  ;;  %5989 = vmatprep.subr.bf16.mxu1 %v7358_v3  ;;  %v4395_v44 = vrot.slane %v4382_v18, %v4394_v30  ;;  %v9685_v3 = vld [vmem:[#allocation29_spill] sm:$0xff]  ;;  %v4439_v11 = vrot.slane %v4434_v16, %v9684_v34  ;;  %v4447_v5 = vrot.slane %v4434_v16, %v4394_v30 }
 0x40d   :  { %6037 = vmatprep.subr.bf16.mxu0 %v7361_v26  ;;  %v4391_v26 = vrot.slane %v4382_v18, %v9685_v3  ;;  %v4417_v28 = vrot.slane %v4408_v32, %v9685_v3  ;;  %v4443_v0 = vrot.slane %v4434_v16, %v9685_v3  ;;  %v4540_v30 = vld [vmem:[%s9514_s7 + $0x1c8] sm:$0xff] }
 0x40f   :  { %5991 = vmatpush1.bf16.msra.mxu1 %v7360_v37  ;;  %v4413_v37 = vrot.slane %v4408_v32, %v9684_v34  ;;  %v6088_v32 = vpack.c.bf16 %v4540_v30, %v4539_v42  ;;  %v4523_v34 = vld [vmem:[%s9514_s7 + $0x140] sm:$0xff] }
 0x410   :  { %6039 = vmatpush1.bf16.msra.mxu0 %v7363_v6  ;;  %6041 = vmatprep.subr.bf16.mxu1 %v6040_v23  ;;  %v4399_v6 = vrot.slane %v4382_v18, %v4398_v51  ;;  %v4522_v18 = vld [vmem:[%s9514_s7 + $0x138] sm:$0xff] }
 0x412   :  { %4301 = vmatmul.mubr.f32.vlgmr.msra.gmra.mrb[0].mxu1 %v9203_v40 }
 0x413   :  { %4372 = vmatmul.mubr.f32.vlgmr.msra.gmra.mrb[40].mxu0 %v9203_v40  ;;  %6043 = vmatpush3.bf16.msra.mxu1 %v6042_v12  ;;  %v4506_v40 = vld [vmem:[%s9514_s7 + $0xb8] sm:$0xff] }
 0x414   :  { %6045 = vmatprep.subr.bf16.mxu1 %v6044_v58  ;;  %v6052_v45 = vpack.c.bf16 %v4506_v40, %v4505_v25  ;;  %v4515_v40 = vld [vmem:[%s9514_s7 + $0x100] sm:$0xff] }
 0x417   :  { %6047 = vmatpush3.bf16.msra.mxu1 %v6046_v24 }
 0x418   :  { %6049 = vmatprep.subr.bf16.mxu1 %v6048_v4 }
 0x41b   :  { %6051 = vmatpush3.bf16.msra.mxu1 %v6050_v48  ;;  %v4516_v48 = vld [vmem:[%s9514_s7 + $0x108] sm:$0xff] }
 0x41c   :  { %6053 = vmatprep.subr.bf16.mxu1 %v6052_v45  ;;  %v4451_v45 = vrot.slane %v4434_v16, %v4398_v51  ;;  %v6074_v56 = vpack.c.bf16 %v4516_v48, %v4515_v40  ;;  %v4541_v16 = vld [vmem:[%s9514_s7 + $0x1d0] sm:$0xff]  ;;  %v4714_v40 = vld [vmem:[%s9516_s9 + $0x18] sm:$0xff]  ;;  %v9686_v48 = vmov 0.0  }
 0x41d   :  { %5062 = vmatprep.mubr.msk.f32.mxu0 %vm7887_vm10, %v9686_v48 }
 0x41f   :  { %6055 = vmatpush3.bf16.msra.mxu1 %v6054_v1 }
 0x420   :  { %6057 = vmatprep.subr.bf16.mxu1 %v6056_v35 }
 0x423   :  { %6059 = vmatpush3.bf16.msra.mxu1 %v6058_v27 }
 0x424   :  { %6061 = vmatprep.subr.bf16.mxu1 %v6060_v19  ;;  %v6076_v19 = vpack.c.bf16 %v4534_v39, %v4533_v14  ;;  %v4972_v39 = vld [vmem:[#allocation13] ss:$0 sm:$0xff] }
 0x427   :  { %6063 = vmatpush3.bf16.msra.mxu1 %v6062_v33 }
 0x428   :  { %6065 = vmatprep.subr.bf16.mxu1 %v6064_v57  ;;  %v6078_v57 = vpack.c.bf16 %v4518_v61, %v4517_v41 }
 0x42b   :  { %6067 = vmatpush3.bf16.msra.mxu1 %v6066_v47  ;;  %v4520_v47 = vld [vmem:[%s9514_s7 + $0x128] sm:$0xff] }
 0x42c   :  { %6069 = vmatprep.subr.bf16.mxu1 %v6068_v38  ;;  %v6082_v46 = vpack.c.bf16 %v4520_v47, %v4519_v17 }
 0x42f   :  { %6071 = vmatpush3.bf16.msra.mxu1 %v6070_v2  ;;  %v6084_v2 = vpack.c.bf16 %v4538_v10, %v4537_v62  ;;  %v4813_v10 = vld [vmem:[%s9518_s11] sm:$0xff]  ;;  %s7888_s11 = smov [#allocation18]  }
 0x430   :  { %6073 = vmatprep.subr.bf16.mxu1 %v6072_v13  ;;  %v4521_v13 = vld [vmem:[%s9514_s7 + $0x130] sm:$0xff]  ;;  %s4913_s3 = sshll.u32 %s7888_s11, 4  ;;  %s4914_s3 = int_to_ptr.vmem [resolvable:$true] %s4913_s3 }
 0x431   :  { %v6086_v51 = vpack.c.bf16 %v4522_v18, %v4521_v13  ;;  %s7814_s10 = scalar_lea.vmem %s4914_s3, 128  ;;  %p7819_p3 = scmp.lt.s32.totalorder %s4914_s3, %s4914_s3 }
 0x432   :  { %p7815_p2 = scmp.ne.s32.totalorder %s4914_s3, %s7814_s10  ;;  %p7820_p4 = scmp.lt.s32.totalorder %s7814_s10, %s7814_s10 }
 0x434   :  { %p7821_p5 = por %p7820_p4, %p7819_p3 }
 0x436   :  { %p7822_p6 = pnand %p7821_p5, %p7815_p2 }
 0x4e5   :  { %v4302_v23 = vpop.f32.mrb[0].mxu1 }
 0x4e6   :  { %v4404_v63 = vadd.f32 %v4387_v54, %v4302_v23  ;;  %v4373_v12 = vpop.f32.mrb[40].mxu0  ;;  %v4304_v58 = vpop.f32.mrb[1].mxu1  ;;  %v4524_v54 = vld [vmem:[%s9514_s7 + $0x148] sm:$0xff]  ;;  %v6094_v23 = vpack.c.bf16 %v4526_v49, %v4525_v55 }
 0x4e7   :  { %v4406_v36 = vadd.f32 %v4395_v44, %v4373_v12  ;;  %v4405_v24 = vadd.f32 %v4391_v26, %v4304_v58  ;;  %v4375_v4 = vpop.f32.mrb[41].mxu0  ;;  %v4542_v44 = vld [vmem:[%s9514_s7 + $0x1d8] sm:$0xff]  ;;  %v6090_v3 = vpack.c.bf16 %v4524_v54, %v4523_v34 }
 0x4e8   :  { %v4430_v8 = vmul.f32 %v4413_v37, %v4404_v63  ;;  %v4407_v25 = vadd.f32 %v4399_v6, %v4375_v4  ;;  %v6092_v26 = vpack.c.bf16 %v4542_v44, %v4541_v16  ;;  %v4543_v37 = vld [vmem:[%s9514_s7 + $0x1e0] sm:$0xff]  ;;  %v4544_v6 = vld [vmem:[%s9514_s7 + $0x1e8] sm:$0xff]  ;;  %v4546_v12 = vld [vmem:[%s9514_s7 + $0x1f8] sm:$0xff] }
 0x4e9   :  { %v4432_v53 = vmul.f32 %v4421_v31, %v4406_v36  ;;  %v4431_v29 = vmul.f32 %v4417_v28, %v4405_v24  ;;  %v6096_v31 = vpack.c.bf16 %v4544_v6, %v4543_v37  ;;  %v4527_v28 = vld [vmem:[%s9514_s7 + $0x160] sm:$0xff]  ;;  %v4528_v63 = vld [vmem:[%s9514_s7 + $0x168] sm:$0xff]  ;;  %v4530_v36 = vld [vmem:[%s9514_s7 + $0x178] sm:$0xff] }
 0x4ea   :  { %v4456_v1 = vadd.f32 %v4439_v11, %v4430_v8  ;;  %v4433_v35 = vmul.f32 %v4425_v15, %v4407_v25  ;;  %v4545_v11 = vld [vmem:[%s9514_s7 + $0x1f0] sm:$0xff]  ;;  %v6098_v58 = vpack.c.bf16 %v4528_v63, %v4527_v28  ;;  %v4711_v24 = vld [vmem:[%s9516_s9] sm:$0xff]  ;;  %v4712_v4 = vld [vmem:[%s9516_s9 + $0x8] sm:$0xff]  ;;  %v7886_v8 = vmov 0.0|0.0  }
 0x4eb   :  { %v9380_v20 = vadd.f32 %v4447_v5, %v4432_v53  ;;  %v4457_v50 = vadd.f32 %v4443_v0, %v4431_v29  ;;  %v6100_v15 = vpack.c.bf16 %v4546_v12, %v4545_v11  ;;  %v4529_v0 = vld [vmem:[%s9514_s7 + $0x170] sm:$0xff]  ;;  %6104 = vmatprep.subr.bf16.mxu0 %v7886_v8  ;;  %v6105_v25 = vpack.c.bf16 %v4712_v4, %v4711_v24 }
 0x4ec   :  { %v4459_v27 = vadd.f32 %v4451_v45, %v4433_v35  ;;  %v6102_v5 = vpack.c.bf16 %v4530_v36, %v4529_v0  ;;  %v6108_v45 = vpack.c.bf16 %v4714_v40, %v4713_v43 }
 0x4ed   :  { %v4464_v33 = vcombine.low %v4456_v1, %v4457_v50  ;;  %4618 = vmatprep.mubr.f32.mxu1 %v4457_v50  ;;  %6106 = vmatpush3.bf16.msra.mxu0 %v6105_v25 }
 0x4ee   :  { %4619 = vmatmul.mubr.f32.vlgmr.msra.gmra.mrb[2].mxu1 %v4456_v1  ;;  %v4465_v9 = vcombine.low %v9380_v20, %v4459_v27  ;;  %6107 = vmatprep.subr.bf16.mxu0 %v7886_v8 }
 0x4ef   :  { %6075 = vmatpush3.bf16.msra.mxu1 %v6074_v56  ;;  %4688 = vmatprep.mubr.f32.mxu1 %v4459_v27  ;;  %v4472_v21 = vrot.slane %v4464_v33, %v4471_v22 }
 0x4f0   :  { %6077 = vmatprep.subr.bf16.mxu1 %v6076_v19  ;;  %v4479_v38 = vrot.slane %v4465_v9, %v4471_v22 }
 0x4f1   :  { %6109 = vmatpush3.bf16.msra.mxu0 %v6108_v45 }
 0x4f2   :  { %v4480_v59 = vcombine.low %v4472_v21, %v4479_v38  ;;  %5065 = vmatprep.subr.mxu0 %v9686_v48 }
 0x4f3   :  { %6079 = vmatpush3.bf16.msra.mxu1 %v6078_v57 }
 0x4f4   :  { %6081 = vmatprep.subr.bf16.mxu1 %v6080_v60  ;;  %4482 = vst [vmem:[#allocation18] sm:$0xff] %v4480_v59  ;;  %v4973_v59 = vld [vmem:[#allocation14] ss:$0 sm:$0xff] }
 0x4f7   :  { %6083 = vmatpush3.bf16.msra.mxu1 %v6082_v46 }
 0x4f8   :  { %6085 = vmatprep.subr.bf16.mxu1 %v6084_v2 }
 0x4fb   :  { %6087 = vmatpush3.bf16.msra.mxu1 %v6086_v51 }
 0x4fc   :  { %6089 = vmatprep.subr.bf16.mxu1 %v6088_v32 }
 0x4ff   :  { %6091 = vmatpush3.bf16.msra.mxu1 %v6090_v3 }
 0x500   :  { %6093 = vmatprep.subr.bf16.mxu1 %v6092_v26 }
 0x503   :  { %6095 = vmatpush3.bf16.msra.mxu1 %v6094_v23 }
 0x504   :  { %6097 = vmatprep.subr.bf16.mxu1 %v6096_v31 }
 0x507   :  { %6099 = vmatpush3.bf16.msra.mxu1 %v6098_v58 }
 0x508   :  { %6101 = vmatprep.subr.bf16.mxu1 %v6100_v15 }
 0x50b   :  { %6103 = vmatpush3.bf16.msra.mxu1 %v6102_v5 }
 0x50e   :  { %4689 = vmatmul.mubr.f32.vlgmr.msra.gmra.mrb[4].mxu1 %v9380_v20 }
 0x5c1   :  { %v5009_v53 = vpop.f32.mrb[2].mxu1 }
 0x5c2   :  { %v5010_v29 = vpop.f32.mrb[3].mxu1 }
 0x5c3   :  { %v5011_v14 = vadd.f32 %v5010_v29, %v5009_v53 }
 0x5c5   :  { %v4621_v20 = vadd.f32 %v5011_v14, %v4972_v39 }
 0x5e1   :  { %v5044_v1 = vpop.f32.mrb[4].mxu1 }
 0x5e2   :  { %v5045_v35 = vpop.f32.mrb[5].mxu1 }
 0x5e3   :  { %v5046_v50 = vadd.f32 %v5045_v35, %v5044_v1 }
 0x5e5   :  { %v4691_v56 = vadd.f32 %v5046_v50, %v4621_v20 }
 0x5e7   :  { %v4695_v22 = vand.u32 2147483647, %v4691_v56  ;;  %v4694_v60 = vmax.f32 %v4691_v56, 0.0 }
 0x5e9   :  { %v4696_v27 = vsub.f32 0.0, %v4695_v22 }
 0x5eb   :  { %v4697_v19 = vmul.f32 1.442695, %v4696_v27 }
 0x5ed   :  { %7604 = vpow2.f32 %v4697_v19 }
 0x5f7   :  { %v7605_v41 = vpop.eup %7604 }
 0x5f8   :  { %v4699_v61 = vadd.f32 1.0, %v7605_v41  ;;  %v4702_v33 = vmul.f32 -0.5, %v7605_v41  ;;  %v4705_v52 = vand.u32 2147483647, %v7605_v41 }
 0x5fa   :  { %7606 = vlog2.f32 %v4699_v61  ;;  %v4703_v7 = vadd.f32 1.0, %v4702_v33  ;;  %vm4706_vm0 = vcmp.lt.f32.partialorder %v4705_v52, 0.0004427343 }
 0x5fc   :  { %v4704_v21 = vmul.f32 %v7605_v41, %v4703_v7 }
 0x604   :  { %v7607_v9 = vpop.eup %7606 }
 0x605   :  { %v4701_v57 = vmul.f32 0.6931472, %v7607_v9 }
 0x607   :  { %v4707_v17 = vsel %vm4706_vm0, %v4704_v21, %v4701_v57 }
 0x608   :  { %v4708_v47 = vadd.f32 %v4707_v17, %v4694_v60 }
 0x60a   :  { %7608 = vtanh.f32 %v4708_v47 }
 0x614   :  { %v7609_v38 = vpop.eup %7608 }
 0x615   :  { %v4710_v62 = vmul.f32 %v7609_v38, %v4691_v56 }
 0x617   :  { %5063 = vmatmul.mubr.msk.f32.vlgmr.msra.gmra.mrb[42].mxu0 %vm4722_vm1, %v4710_v62 }
 0x618   :  { %5067 = vmatprep.mubr.msk.f32.mxu0 %vm7887_vm10, %v9686_v48  ;;  %5066 = vmatpush3.msra.mxu0 %v4813_v10 }
 0x6ea   :  { %v4792_v46 = vpop.f32.mrb[42].mxu0 }
 0x6eb   :  { %v4793_v2 = vadd.f32 %v4973_v59, %v4792_v46  ;;  %v5064_v13 = vpop.f32.mrb[43].mxu0 }
 0x6ed   :  { %v4797_v18 = vand.u32 2147483647, %v4793_v2  ;;  %v4796_v55 = vmax.f32 %v4793_v2, 0.0 }
 0x6ef   :  { %v4798_v42 = vsub.f32 0.0, %v4797_v18 }
 0x6f1   :  { %v4799_v30 = vmul.f32 1.442695, %v4798_v42 }
 0x6f3   :  { %7610 = vpow2.f32 %v4799_v30 }
 0x6fd   :  { %v7611_v51 = vpop.eup %7610 }
 0x6fe   :  { %v4801_v32 = vadd.f32 1.0, %v7611_v51  ;;  %v4804_v34 = vmul.f32 -0.5, %v7611_v51  ;;  %v4807_v16 = vand.u32 2147483647, %v7611_v51 }
 0x700   :  { %7612 = vlog2.f32 %v4801_v32  ;;  %v4805_v54 = vadd.f32 1.0, %v4804_v34  ;;  %vm4808_vm2 = vcmp.lt.f32.partialorder %v4807_v16, 0.0004427343 }
 0x702   :  { %v4806_v26 = vmul.f32 %v7611_v51, %v4805_v54 }
 0x70a   :  { %v7613_v44 = vpop.eup %7612 }
 0x70b   :  { %v4803_v3 = vmul.f32 0.6931472, %v7613_v44 }
 0x70d   :  { %v4809_v49 = vsel %vm4808_vm2, %v4806_v26, %v4803_v3 }
 0x70e   :  { %v4810_v37 = vadd.f32 %v4809_v49, %v4796_v55 }
 0x710   :  { %7614 = vtanh.f32 %v4810_v37 }
 0x71a   :  { %v7615_v6 = vpop.eup %7614 }
 0x71b   :  { %v4812_v23 = vmul.f32 %v7615_v6, %v4793_v2 }
 0x71d   :  { %5068 = vmatmul.mubr.msk.f32.vlgmr.msra.gmra.mrb[44].mxu0 %vm4821_vm3, %v4812_v23 }
 0x71e   :  { %7825 = shalt.err (!%p7822_p6)
}
 0x71f   :  { %s7826_s25 = scalar_lea.hbm %s9521_s14, 128 }
 0x720   :  { %p7827_p7 = scmp.ne.s32.totalorder %s9521_s14, %s7826_s25  ;;  %p7830_p8 = scmp.lt.u32.totalorder %s7826_s25, %s9521_s14 }
 0x722   :  { %p7832_p9 = pnand %p7830_p8, %p7827_p7 }
 0x724   :  { %7835 = shalt.err (!%p7832_p9)
}
 0x725   :  { %4916 = dma.vmem_to_hbm [thread:$0]  %s4914_s3, 128, %s9521_s14, [#allocation19]   ;;  %v4975_v31 = vld [vmem:[#allocation16] ss:$0 sm:$0xff]  ;;  %vm4895_vm4 = vcmask 9216  }
 0x726   :  { %s7889_s16 = smov [#allocation17]  }
 0x727   :  { %s4903_s1 = sshll.u32 %s7889_s16, 4  ;;  %s4904_s1 = int_to_ptr.vmem [resolvable:$true] %s4903_s1 }
 0x728   :  { %s7836_s29 = scalar_lea.vmem %s4904_s1, 32  ;;  %p7841_p11 = scmp.lt.s32.totalorder %s4904_s1, %s4904_s1 }
 0x729   :  { %p7837_p10 = scmp.ne.s32.totalorder %s4904_s1, %s7836_s29  ;;  %p7842_p12 = scmp.lt.s32.totalorder %s7836_s29, %s7836_s29 }
 0x72b   :  { %p7843_p13 = por %p7842_p12, %p7841_p11 }
 0x72d   :  { %p7844_p0 = pnand %p7843_p13, %p7837_p10 }
 0x7f0   :  { %v4891_v28 = vpop.f32.mrb[44].mxu0 }
 0x7f1   :  { %v4892_v63 = vadd.f32 %v4975_v31, %v4891_v28  ;;  %v5069_v11 = vpop.f32.mrb[45].mxu0 }
 0x7f3   :  { %4896 = vst.msk [vmem:[#allocation17] sm:$0x3] %vm4895_vm4, %v4892_v63 }
 0x7f4   :  { %7847 = shalt.err (!%p7844_p0)
}
 0x7f5   :  { %s7848_s14 = scalar_lea.hbm %s9520_s13, 32 }
 0x7f6   :  { %p7849_p1 = scmp.ne.s32.totalorder %s9520_s13, %s7848_s14  ;;  %p7852_p2 = scmp.lt.u32.totalorder %s7848_s14, %s9520_s13 }
 0x7f8   :  { %p7854_p3 = pnand %p7852_p2, %p7849_p1 }
 0x7fa   :  { %7857 = shalt.err (!%p7854_p3)
}
 0x7fb   :  { %4906 = dma.vmem_to_hbm [thread:$0]  %s4904_s1, 32, %s9520_s13, [#allocation4]  }
 0x7fc   :  { %7868 = dma.done.wait [#allocation4], 32  }
 0x7fd   :  { %7869 = vsyncadd [#allocation4], 4294967264 }
 0x7fe   :  { %7870 = dma.done.wait [#allocation19], 128  }
 0x7ff   :  { %7871 = vsyncadd [#allocation19], 4294967168 }
 0x800   :  { %4923 = vsyncpa [#allocation3], 1 }
 0x801   :  { %4924 = vsyncpa [#allocation6], 1 }
 0x802   :  { %4925 = vsyncpa [#allocation9], 1 }
 0x803   :  { %4926 = vsyncpa [#allocation12], 1 }
 0x804   :  { %4927 = vsyncpa [#allocation15], 1 }
 0x805   :  { %4928 = vsyncpa [#allocation4], 1 }
 0x806   :  { %4929 = vsyncpa [#allocation19], 1 }

</bundles_post_ra>
